<compile_context>
chip_gen: v5e
topology: v5e:2x2
jax: 0.10.0
libtpu: 0.0.40
codegen_flags: <defaults>
</compile_context>

<pallas_src>
import functools

import jax
import jax.numpy as jnp
from jax.experimental import pallas as pl
from jax.experimental.pallas import tpu as pltpu


def _round_up(x, m):
    return ((x + m - 1) // m) * m


def _vq_tile_kernel(z_ref, ehi_ref, elo_ref, bias_ref,
                    zq_ref, hist_ref, err_ref,
                    *, n_valid, block_n, mask_rows):
    """One (TN, D_pad) tile of the VQ bottleneck.

    z_ref   : (TN, Dp) f32    flattened encoder rows (zero padded)
    ehi_ref : (Kp, Dp) bf16   codebook, bf16 "hi" part (grid-invariant)
    elo_ref : (Kp, Dp) bf16   codebook residual "lo" part (grid-invariant)
    bias_ref: (1,  Kp) f32    ||E_k||^2 (huge value on padded entries)
    zq_ref  : (TN, Dp) f32    quantized rows
    hist_ref: (1,1,Kp) f32    per-tile code-usage histogram
    err_ref : (1,1,128) f32   per-tile sum((z_q - z)^2), broadcast over lanes
    """
    z = z_ref[...]
    e_hi = ehi_ref[...]
    e_lo = elo_ref[...]
    bias = bias_ref[...]

    tn = z.shape[0]
    kp = e_hi.shape[0]

    # argmin_k ||z - E_k||^2 == argmin_k (||E_k||^2 - 2 z.E_k); the
    # row-constant ||z||^2 is dropped and the (1,Kp) bias is precomputed.
    # Cross term as a bf16 NT matmul (contract D of both operands): single
    # fast MXU pass, no transposed codebook copy.
    z_bf = z.astype(jnp.bfloat16)
    cross = jax.lax.dot_general(
        z_bf, e_hi,
        dimension_numbers=(((1,), (1,)), ((), ())),
        preferred_element_type=jnp.float32)                          # (TN,Kp)
    s = bias - 2.0 * cross                                           # (TN,Kp)

    # First-minimum argmin built from reductions on the SAME tensor s.
    k_iota = jax.lax.broadcasted_iota(jnp.int32, (tn, kp), 1)
    min_s = jnp.min(s, axis=-1, keepdims=True)
    idx = jnp.min(jnp.where(s == min_s, k_iota, kp), axis=-1, keepdims=True)
    onehot = (k_iota == idx).astype(jnp.float32)                     # (TN,Kp)

    if mask_rows:  # only traced when N was padded up to a tile multiple
        row = (jax.lax.broadcasted_iota(jnp.int32, (tn, 1), 0)
               + pl.program_id(0) * block_n)
        onehot = jnp.where(row < n_valid, onehot, 0.0)

    # Codebook lookup via two bf16 MXU matmuls (hi/lo split of E): onehot is
    # exact in bf16, so z_q keeps near-f32 precision at ~half the f32 cost.
    onehot_bf = onehot.astype(jnp.bfloat16)
    z_q = (jnp.dot(onehot_bf, e_hi, preferred_element_type=jnp.float32)
           + jnp.dot(onehot_bf, e_lo, preferred_element_type=jnp.float32))
    zq_ref[...] = z_q  # straight-through fwd value: z + sg[z_q - z] == z_q

    # Per-tile partial reductions; final scalar math happens in the wrapper.
    diff = z_q - z                                                   # padded cols -> 0
    err_ref[...] = jnp.full(err_ref.shape, jnp.sum(diff * diff), jnp.float32)
    hist_ref[...] = jnp.sum(onehot, axis=0, keepdims=True).reshape(hist_ref.shape)


def vqvae_forward(z_e_nchw, embedding, beta, *, block_n=1024):
    """VQVAE.forward(inputs) -> (embedding_loss, z_q, perplexity)."""
    B, C, H, W = z_e_nchw.shape
    D = C
    K = embedding.shape[0]

    # Glue: NCHW -> NHWC -> (N, D).
    z_flat = jnp.transpose(z_e_nchw, (0, 2, 3, 1)).reshape(-1, D).astype(jnp.float32)
    N = z_flat.shape[0]

    D_pad = _round_up(D, 128)
    K_pad = _round_up(K, 128)
    # Tile size: multiple of 8. TN=1024 fits v7x's 64 MiB VMEM at K_pad<=1024
    # with the single-copy / single-buffered codebook; raise further on
    # v5e/v6e (128 MiB) if profiling shows exposed DMA.
    TN = max(8, min(block_n, _round_up(N, 8)))
    N_pad = _round_up(N, TN)
    G = N_pad // TN
    mask_rows = (N_pad != N)

    z_p = jnp.pad(z_flat, ((0, N_pad - N), (0, D_pad - D)))

    e_f32 = embedding.astype(jnp.float32)
    e_p = jnp.pad(e_f32, ((0, K_pad - K), (0, D_pad - D)))
    # Single codebook resident, split hi/lo in bf16 (total bytes == one f32 copy).
    e_hi = e_p.astype(jnp.bfloat16)
    e_lo = (e_p - e_hi.astype(jnp.float32)).astype(jnp.bfloat16)

    e_sq = jnp.sum(e_f32 * e_f32, axis=1)
    # Padded codebook entries get a huge bias so they never win the argmin.
    bias = jnp.pad(e_sq, (0, K_pad - K), constant_values=1e30).reshape(1, K_pad)

    kernel = functools.partial(_vq_tile_kernel, n_valid=N, block_n=TN,
                               mask_rows=mask_rows)

    zq_p, hist, err = pl.pallas_call(
        kernel,
        out_shape=(
            jax.ShapeDtypeStruct((N_pad, D_pad), jnp.float32),
            jax.ShapeDtypeStruct((G, 1, K_pad), jnp.float32),
            jax.ShapeDtypeStruct((G, 1, 128), jnp.float32),
        ),
        grid_spec=pltpu.PrefetchScalarGridSpec(
            num_scalar_prefetch=0,
            grid=(G,),
            in_specs=[
                # z tile: streamed, default double-buffered.
                pl.BlockSpec((TN, D_pad), lambda i: (i, 0)),
                # Grid-invariant residents: single-buffered (constant index_map,
                # so no per-step DMA; a second buffer would be pure VMEM waste).
                pl.BlockSpec((K_pad, D_pad), lambda i: (0, 0),
                             pipeline_mode=pl.Buffered(1)),
                pl.BlockSpec((K_pad, D_pad), lambda i: (0, 0),
                             pipeline_mode=pl.Buffered(1)),
                pl.BlockSpec((1, K_pad), lambda i: (0, 0),
                             pipeline_mode=pl.Buffered(1)),
            ],
            out_specs=[
                pl.BlockSpec((TN, D_pad), lambda i: (i, 0)),      # z_q tile
                pl.BlockSpec((1, 1, K_pad), lambda i: (i, 0, 0)), # histogram partial
                pl.BlockSpec((1, 1, 128), lambda i: (i, 0, 0)),   # sq-error partial
            ],
        ),
        compiler_params=pltpu.CompilerParams(
            dimension_semantics=("parallel",),
            vmem_limit_bytes=48 * 1024 * 1024,
        ),
    )(z_p, e_hi, e_lo, bias)

    # Tiny final reductions in plain JAX.
    err_total = jnp.sum(err[:, 0, 0])
    mse = err_total / jnp.float32(N * D)
    loss = (1.0 + beta) * mse                     # mse + beta*mse (forward value)

    counts = jnp.sum(hist[:, 0, :K], axis=0)      # (K,) code-usage counts
    e_mean = counts / jnp.float32(N)
    perplexity = jnp.exp(-jnp.sum(e_mean * jnp.log(e_mean + 1e-10)))

    # Glue: (N, D) -> NHWC -> NCHW.
    zq_flat = zq_p[:N, :D]
    z_q = jnp.transpose(zq_flat.reshape(B, H, W, C), (0, 3, 1, 2))
    return loss, z_q, perplexity


def make_vqvae_params(key, n_embeddings, embedding_dim):
    # nn.Embedding weight initialized uniform(-1/n_e, 1/n_e) as in the repo.
    return jax.random.uniform(
        key, (n_embeddings, embedding_dim), dtype=jnp.float32,
        minval=-1.0 / n_embeddings, maxval=1.0 / n_embeddings)


def _reference_forward(z_e, embedding, beta, *, bf16_distance):
    """Pure-JAX reference of the PyTorch VectorQuantizer forward.

    With bf16_distance=True the nearest-code selection uses the same
    bf16-rounded operands as the kernel (everything else f32), so index
    choices match the kernel exactly (the only sanctioned deviation from the
    f32 PyTorch math is argmin behaviour on near-exact ties).
    """
    B, C, H, W = z_e.shape
    z = jnp.transpose(z_e, (0, 2, 3, 1)).reshape(-1, C).astype(jnp.float32)
    if bf16_distance:
        zc = z.astype(jnp.bfloat16)
        ec = embedding.astype(jnp.bfloat16)
    else:
        zc, ec = z, embedding.astype(jnp.float32)
    cross = jax.lax.dot_general(zc, ec, (((1,), (1,)), ((), ())),
                                preferred_element_type=jnp.float32)
    d = jnp.sum(embedding.astype(jnp.float32) ** 2, axis=1)[None, :] - 2.0 * cross
    idx = jnp.argmin(d, axis=1)
    onehot = jax.nn.one_hot(idx, embedding.shape[0], dtype=jnp.float32)
    z_q = onehot @ embedding.astype(jnp.float32)
    mse = jnp.mean((z_q - z) ** 2)
    loss = mse + beta * mse
    e_mean = jnp.mean(onehot, axis=0)
    perplexity = jnp.exp(-jnp.sum(e_mean * jnp.log(e_mean + 1e-10)))
    z_q_nchw = jnp.transpose(z_q.reshape(B, H, W, C), (0, 3, 1, 2))
    return loss, z_q_nchw, perplexity


if __name__ == "__main__":
    # Small, module-consistent shapes: z_e is (B, embedding_dim, H, W).
    B, embedding_dim, H, W = 2, 4, 16, 16
    n_embeddings = 32
    beta = 0.25

    key = jax.random.PRNGKey(0)
    k_emb, k_in = jax.random.split(key)

    embedding = make_vqvae_params(k_emb, n_embeddings, embedding_dim)
    z_e = jax.random.normal(k_in, (B, embedding_dim, H, W), dtype=jnp.float32)

    fwd = jax.jit(functools.partial(vqvae_forward, beta=beta))
    embedding_loss, z_q, perplexity = jax.block_until_ready(fwd(z_e, embedding))

    assert z_q.shape == (B, embedding_dim, H, W)
    assert embedding_loss.shape == () and perplexity.shape == ()

    # Tight check against a reference that uses the kernel's bf16 nearest-code
    # selection (indices match exactly; z_q/loss/perplexity are near-f32).
    ref_loss, ref_zq, ref_perp = _reference_forward(z_e, embedding, beta,
                                                    bf16_distance=True)
    assert jnp.allclose(embedding_loss, ref_loss, rtol=1e-4, atol=1e-5)
    assert jnp.allclose(perplexity, ref_perp, rtol=1e-4, atol=1e-5)
    assert jnp.allclose(z_q, ref_zq, rtol=1e-4, atol=1e-5)

    # Coarse sanity check against the exact-f32 PyTorch math (argmin may flip
    # on near-ties, which barely moves the scalar outputs).
    f32_loss, _, f32_perp = _reference_forward(z_e, embedding, beta,
                                               bf16_distance=False)
    assert jnp.allclose(embedding_loss, f32_loss, rtol=1e-3, atol=1e-5)
    assert jnp.allclose(perplexity, f32_perp, rtol=5e-2, atol=1e-3)

    print("KERNEL_OK")
</pallas_src>

<mosaic_0001>
module attributes {stable_mosaic.version = 11 : i64} {
  func.func @_vq_tile_kernel(%arg0: i32, %arg1: memref<512x128xf32, #tpu.memory_space<vmem>>, %arg2: memref<128x128xbf16, #tpu.memory_space<vmem>>, %arg3: memref<128x128xbf16, #tpu.memory_space<vmem>>, %arg4: memref<1x128xf32, #tpu.memory_space<vmem>>, %arg5: memref<512x128xf32, #tpu.memory_space<vmem>>, %arg6: memref<1x1x128xf32, #tpu.memory_space<vmem>>, %arg7: memref<1x1x128xf32, #tpu.memory_space<vmem>>) attributes {dimension_semantics = [#tpu.dimension_semantics<parallel>], iteration_bounds = array<i64: 1>, scalar_prefetch = 0 : i64, scratch_operands = 0 : i64, tpu.core_type = #tpu.core_type<tc>, window_params = [{transform_indices = @transform_0, window_bounds = array<i64: 512, 128>}, {pipeline_mode = #tpu.pipeline_mode<synchronous>, transform_indices = @transform_1, window_bounds = array<i64: 128, 128>}, {pipeline_mode = #tpu.pipeline_mode<synchronous>, transform_indices = @transform_2, window_bounds = array<i64: 128, 128>}, {pipeline_mode = #tpu.pipeline_mode<synchronous>, transform_indices = @transform_3, window_bounds = array<i64: 1, 128>}, {transform_indices = @transform_4, window_bounds = array<i64: 512, 128>}, {transform_indices = @transform_5, window_bounds = array<i64: 1, 1, 128>}, {transform_indices = @transform_6, window_bounds = array<i64: 1, 1, 128>}]} {
    %c0 = arith.constant 0 : index
    %c0_0 = arith.constant 0 : index
    %0 = vector.load %arg1[%c0, %c0_0] : memref<512x128xf32, #tpu.memory_space<vmem>>, vector<512x128xf32>
    %c0_1 = arith.constant 0 : index
    %c0_2 = arith.constant 0 : index
    %1 = vector.load %arg2[%c0_1, %c0_2] : memref<128x128xbf16, #tpu.memory_space<vmem>>, vector<128x128xbf16>
    %c0_3 = arith.constant 0 : index
    %c0_4 = arith.constant 0 : index
    %2 = vector.load %arg3[%c0_3, %c0_4] : memref<128x128xbf16, #tpu.memory_space<vmem>>, vector<128x128xbf16>
    %c0_5 = arith.constant 0 : index
    %c0_6 = arith.constant 0 : index
    %3 = vector.load %arg4[%c0_5, %c0_6] : memref<1x128xf32, #tpu.memory_space<vmem>>, vector<1x128xf32>
    %4 = arith.truncf %0 : vector<512x128xf32> to vector<512x128xbf16>
    %cst = arith.constant dense<0.000000e+00> : vector<512x128xf32>
    %5 = tpu.matmul %4, %1, %cst {dimension_numbers = #tpu.dot_dimension_numbers<[1], [1], [0], [0], [0, 0, 1, 0], [], []>} : vector<512x128xbf16>, vector<128x128xbf16>, vector<512x128xf32> -> vector<512x128xf32>
    %cst_7 = arith.constant 2.000000e+00 : f32
    %6 = vector.broadcast %cst_7 : f32 to vector<512x128xf32>
    %7 = arith.mulf %6, %5 : vector<512x128xf32>
    %8 = vector.broadcast %3 : vector<1x128xf32> to vector<512x128xf32>
    %9 = arith.subf %8, %7 : vector<512x128xf32>
    %10 = tpu.iota {dimensions = array<i32: 1>} : vector<512x128xi32>
    %cst_8 = arith.constant dense<0x7F800000> : vector<512xf32>
    %11 = vector.multi_reduction <minimumf>, %9, %cst_8 [1] : vector<512x128xf32> to vector<512xf32>
    %12 = vector.shape_cast %11 : vector<512xf32> to vector<512x1xf32>
    %13 = vector.broadcast %12 : vector<512x1xf32> to vector<512x128xf32>
    %14 = arith.cmpf oeq, %9, %13 : vector<512x128xf32>
    %c128_i32 = arith.constant 128 : i32
    %15 = vector.broadcast %c128_i32 : i32 to vector<512x128xi32>
    %16 = arith.select %14, %10, %15 : vector<512x128xi1>, vector<512x128xi32>
    %cst_9 = arith.constant dense<2147483647> : vector<512xi32>
    %17 = vector.multi_reduction <minsi>, %16, %cst_9 [1] : vector<512x128xi32> to vector<512xi32>
    %18 = vector.shape_cast %17 : vector<512xi32> to vector<512x1xi32>
    %19 = vector.broadcast %18 : vector<512x1xi32> to vector<512x128xi32>
    %20 = arith.cmpi eq, %10, %19 : vector<512x128xi32>
    %21 = arith.extui %20 : vector<512x128xi1> to vector<512x128xi32>
    %22 = arith.sitofp %21 : vector<512x128xi32> to vector<512x128xf32>
    %23 = arith.truncf %22 : vector<512x128xf32> to vector<512x128xbf16>
    %cst_10 = arith.constant dense<0.000000e+00> : vector<512x128xf32>
    %24 = tpu.matmul %23, %1, %cst_10 {dimension_numbers = #tpu.dot_dimension_numbers<[1], [0], [0], [1], [0, 0, 1, 1], [], []>} : vector<512x128xbf16>, vector<128x128xbf16>, vector<512x128xf32> -> vector<512x128xf32>
    %cst_11 = arith.constant dense<0.000000e+00> : vector<512x128xf32>
    %25 = tpu.matmul %23, %2, %cst_11 {dimension_numbers = #tpu.dot_dimension_numbers<[1], [0], [0], [1], [0, 0, 1, 1], [], []>} : vector<512x128xbf16>, vector<128x128xbf16>, vector<512x128xf32> -> vector<512x128xf32>
    %26 = arith.addf %24, %25 : vector<512x128xf32>
    %c0_12 = arith.constant 0 : index
    %c0_13 = arith.constant 0 : index
    %27 = vector.load %arg5[%c0_12, %c0_13] : memref<512x128xf32, #tpu.memory_space<vmem>>, vector<512x128xf32>
    tpu.vector_store %arg5[%c0_12, %c0_13], %26 {strides = array<i32>} : memref<512x128xf32, #tpu.memory_space<vmem>>, vector<512x128xf32>,
    %28 = arith.subf %26, %0 : vector<512x128xf32>
    %29 = arith.mulf %28, %28 : vector<512x128xf32>
    %30 = vector.shape_cast %29 : vector<512x128xf32> to vector<1x512x128xf32>
    %cst_14 = arith.constant dense<0.000000e+00> : vector<1xf32>
    %31 = vector.multi_reduction <add>, %30, %cst_14 [1, 2] : vector<1x512x128xf32> to vector<1xf32>
    %32 = vector.shape_cast %31 : vector<1xf32> to vector<1x1x1xf32>
    %33 = vector.extract %32[0, 0, 0] : f32 from vector<1x1x1xf32>
    %34 = vector.broadcast %33 : f32 to vector<1x1x128xf32>
    %c0_15 = arith.constant 0 : index
    %c0_16 = arith.constant 0 : index
    %c0_17 = arith.constant 0 : index
    %35 = vector.load %arg7[%c0_15, %c0_16, %c0_17] : memref<1x1x128xf32, #tpu.memory_space<vmem>>, vector<1x1x128xf32>
    tpu.vector_store %arg7[%c0_15, %c0_16, %c0_17], %34 {strides = array<i32>} : memref<1x1x128xf32, #tpu.memory_space<vmem>>, vector<1x1x128xf32>,
    %cst_18 = arith.constant dense<0.000000e+00> : vector<128xf32>
    %36 = vector.multi_reduction <add>, %22, %cst_18 [0] : vector<512x128xf32> to vector<128xf32>
    %37 = vector.shape_cast %36 : vector<128xf32> to vector<1x128xf32>
    %38 = vector.shape_cast %37 : vector<1x128xf32> to vector<1x1x128xf32>
    %c0_19 = arith.constant 0 : index
    %c0_20 = arith.constant 0 : index
    %c0_21 = arith.constant 0 : index
    %39 = vector.load %arg6[%c0_19, %c0_20, %c0_21] : memref<1x1x128xf32, #tpu.memory_space<vmem>>, vector<1x1x128xf32>
    tpu.vector_store %arg6[%c0_19, %c0_20, %c0_21], %38 {strides = array<i32>} : memref<1x1x128xf32, #tpu.memory_space<vmem>>, vector<1x1x128xf32>,
    return
  }
  func.func @transform_0(%arg0: i32) -> (i32, i32) {
    %c0_i32 = arith.constant 0 : i32
    %c0_i32_0 = arith.constant 0 : i32
    return %arg0, %c0_i32 : i32, i32
  }
  func.func @transform_1(%arg0: i32) -> (i32, i32) {
    %c0_i32 = arith.constant 0 : i32
    %c0_i32_0 = arith.constant 0 : i32
    %c0_i32_1 = arith.constant 0 : i32
    return %c0_i32, %c0_i32_0 : i32, i32
  }
  func.func @transform_2(%arg0: i32) -> (i32, i32) {
    %c0_i32 = arith.constant 0 : i32
    %c0_i32_0 = arith.constant 0 : i32
    %c0_i32_1 = arith.constant 0 : i32
    return %c0_i32, %c0_i32_0 : i32, i32
  }
  func.func @transform_3(%arg0: i32) -> (i32, i32) {
    %c0_i32 = arith.constant 0 : i32
    %c0_i32_0 = arith.constant 0 : i32
    %c0_i32_1 = arith.constant 0 : i32
    return %c0_i32, %c0_i32_0 : i32, i32
  }
  func.func @transform_4(%arg0: i32) -> (i32, i32) {
    %c0_i32 = arith.constant 0 : i32
    %c0_i32_0 = arith.constant 0 : i32
    return %arg0, %c0_i32 : i32, i32
  }
  func.func @transform_5(%arg0: i32) -> (i32, i32, i32) {
    %c0_i32 = arith.constant 0 : i32
    %c0_i32_0 = arith.constant 0 : i32
    %c0_i32_1 = arith.constant 0 : i32
    return %arg0, %c0_i32, %c0_i32_0 : i32, i32, i32
  }
  func.func @transform_6(%arg0: i32) -> (i32, i32, i32) {
    %c0_i32 = arith.constant 0 : i32
    %c0_i32_0 = arith.constant 0 : i32
    %c0_i32_1 = arith.constant 0 : i32
    return %arg0, %c0_i32, %c0_i32_0 : i32, i32, i32
  }
}

</mosaic_0001>

<bundles_post_ra>
// kernel: vqvae_forward.1
= control target key start
LH: loop header
LB: loop body
LE: loop exit
PB: predicated region body
PF: predicated region fallthrough
CT: control target
= control target key end

     0   :  { %s5431_s1 = inlined_call_operand.vmem [shape: bf16[128,128], index: 1, kind: input, shape index: {}]   ;;  %s5432_s0 = inlined_call_operand.vmem [shape: f32[512,128], index: 0, kind: input, shape index: {}]   ;;  %s5433_s3 = inlined_call_operand.vmem [shape: f32[1,128], index: 3, kind: input, shape index: {}]   ;;  %s5434_s2 = inlined_call_operand.vmem [shape: bf16[128,128], index: 2, kind: input, shape index: {}]   ;;  %s5435_s4 = inlined_call_operand.vmem [shape: f32[512,128], index: 4, kind: output, shape index: {0}]   ;;  %s5436_s5 = inlined_call_operand.vmem [shape: f32[1,1,128], index: 5, kind: output, shape index: {1}]   ;;  %s5437_s6 = inlined_call_operand.vmem [shape: f32[1,1,128], index: 6, kind: output, shape index: {2}]  }
   0x1   :  { %v2872_v0 = vld [vmem:[%s5431_s1 + $0x38] sm:$0xff]  ;;  %v2871_v1 = vld [vmem:[%s5431_s1 + $0x30] sm:$0xff]  ;;  %v2870_v2 = vld [vmem:[%s5431_s1 + $0x28] sm:$0xff] }
   0x2   :  { %197 = vmatpush.bf16.xpose.msra.mxu0 %v2872_v0  ;;  %2881 = vmatpush.bf16.xpose.msra.mxu3 %v2872_v0  ;;  %v2869_v3 = vld [vmem:[%s5431_s1 + $0x20] sm:$0xff]  ;;  %v2868_v4 = vld [vmem:[%s5431_s1 + $0x18] sm:$0xff]  ;;  %v2867_v5 = vld [vmem:[%s5431_s1 + $0x10] sm:$0xff] }
   0x3   :  { %2092 = vmatpush.bf16.msra.mxu2 %v2872_v0  ;;  %v2866_v6 = vld [vmem:[%s5431_s1 + $0x8] sm:$0xff]  ;;  %v2865_v7 = vld [vmem:[%s5431_s1] sm:$0xff]  ;;  %v66_v10 = vld [vmem:[%s5432_s0 + $0x170] sm:$0xff] }
   0x4   :  { %v20_v8 = vld [vmem:[%s5432_s0] sm:$0xff]  ;;  %v21_v9 = vld [vmem:[%s5432_s0 + $0x8] sm:$0xff]  ;;  %v67_v11 = vld [vmem:[%s5432_s0 + $0x178] sm:$0xff] }
   0x5   :  { %v117_v12 = vpack.c.bf16 %v21_v9, %v20_v8  ;;  %v140_v13 = vpack.c.bf16 %v67_v11, %v66_v10  ;;  %v22_v14 = vld [vmem:[%s5432_s0 + $0x10] sm:$0xff]  ;;  %v23_v15 = vld [vmem:[%s5432_s0 + $0x18] sm:$0xff]  ;;  %v68_v16 = vld [vmem:[%s5432_s0 + $0x180] sm:$0xff] }
   0x6   :  { %v69_v17 = vld [vmem:[%s5432_s0 + $0x188] sm:$0xff]  ;;  %v118_v18 = vpack.c.bf16 %v23_v15, %v22_v14  ;;  %v24_v20 = vld [vmem:[%s5432_s0 + $0x20] sm:$0xff]  ;;  %v70_v22 = vld [vmem:[%s5432_s0 + $0x190] sm:$0xff] }
   0x7   :  { %2093 = vmatpush.bf16.msra.mxu2 %v2871_v1  ;;  %v141_v19 = vpack.c.bf16 %v69_v17, %v68_v16  ;;  %v25_v21 = vld [vmem:[%s5432_s0 + $0x28] sm:$0xff]  ;;  %v71_v23 = vld [vmem:[%s5432_s0 + $0x198] sm:$0xff]  ;;  %v26_v26 = vld [vmem:[%s5432_s0 + $0x30] sm:$0xff] }
   0x8   :  { %v119_v24 = vpack.c.bf16 %v25_v21, %v24_v20  ;;  %v142_v25 = vpack.c.bf16 %v71_v23, %v70_v22  ;;  %v27_v27 = vld [vmem:[%s5432_s0 + $0x38] sm:$0xff]  ;;  %v72_v28 = vld [vmem:[%s5432_s0 + $0x1a0] sm:$0xff]  ;;  %v73_v29 = vld [vmem:[%s5432_s0 + $0x1a8] sm:$0xff] }
   0x9   :  { %v120_v30 = vpack.c.bf16 %v27_v27, %v26_v26  ;;  %v143_v31 = vpack.c.bf16 %v73_v29, %v72_v28  ;;  %v28_v32 = vld [vmem:[%s5432_s0 + $0x40] sm:$0xff]  ;;  %v29_v33 = vld [vmem:[%s5432_s0 + $0x48] sm:$0xff]  ;;  %v74_v34 = vld [vmem:[%s5432_s0 + $0x1b0] sm:$0xff] }
   0xa   :  { %198 = vmatpush.bf16.xpose.msra.mxu0 %v2871_v1  ;;  %2882 = vmatpush.bf16.xpose.msra.mxu3 %v2871_v1  ;;  %v75_v35 = vld [vmem:[%s5432_s0 + $0x1b8] sm:$0xff]  ;;  %v121_v36 = vpack.c.bf16 %v29_v33, %v28_v32  ;;  %v30_v38 = vld [vmem:[%s5432_s0 + $0x50] sm:$0xff]  ;;  %v76_v40 = vld [vmem:[%s5432_s0 + $0x1c0] sm:$0xff] }
   0xb   :  { %2094 = vmatpush.bf16.msra.mxu2 %v2870_v2  ;;  %v144_v37 = vpack.c.bf16 %v75_v35, %v74_v34  ;;  %v31_v39 = vld [vmem:[%s5432_s0 + $0x58] sm:$0xff]  ;;  %v77_v41 = vld [vmem:[%s5432_s0 + $0x1c8] sm:$0xff]  ;;  %v32_v44 = vld [vmem:[%s5432_s0 + $0x60] sm:$0xff] }
   0xc   :  { %v122_v42 = vpack.c.bf16 %v31_v39, %v30_v38  ;;  %v145_v43 = vpack.c.bf16 %v77_v41, %v76_v40  ;;  %v33_v45 = vld [vmem:[%s5432_s0 + $0x68] sm:$0xff]  ;;  %v78_v46 = vld [vmem:[%s5432_s0 + $0x1d0] sm:$0xff]  ;;  %v79_v47 = vld [vmem:[%s5432_s0 + $0x1d8] sm:$0xff] }
   0xd   :  { %v123_v48 = vpack.c.bf16 %v33_v45, %v32_v44  ;;  %v146_v49 = vpack.c.bf16 %v79_v47, %v78_v46  ;;  %v34_v50 = vld [vmem:[%s5432_s0 + $0x70] sm:$0xff]  ;;  %v35_v51 = vld [vmem:[%s5432_s0 + $0x78] sm:$0xff]  ;;  %v80_v52 = vld [vmem:[%s5432_s0 + $0x1e0] sm:$0xff] }
   0xe   :  { %v81_v53 = vld [vmem:[%s5432_s0 + $0x1e8] sm:$0xff]  ;;  %v124_v54 = vpack.c.bf16 %v35_v51, %v34_v50  ;;  %v36_v56 = vld [vmem:[%s5432_s0 + $0x80] sm:$0xff]  ;;  %v43_v26 = vld [vmem:[%s5432_s0 + $0xb8] sm:$0xff] }
   0xf   :  { %2095 = vmatpush.bf16.msra.mxu2 %v2869_v3  ;;  %v147_v55 = vpack.c.bf16 %v81_v53, %v80_v52  ;;  %v37_v57 = vld [vmem:[%s5432_s0 + $0x88] sm:$0xff]  ;;  %v3150_v59 = vld [vmem:[%s5433_s3] ss:$0 sm:$0xff] }
  0x10   :  { %v125_v58 = vpack.c.bf16 %v37_v57, %v36_v56  ;;  %v40_v14 = vld [vmem:[%s5432_s0 + $0xa0] sm:$0xff]  ;;  %v41_v15 = vld [vmem:[%s5432_s0 + $0xa8] sm:$0xff]  ;;  %v46_v57 = vld [vmem:[%s5432_s0 + $0xd0] sm:$0xff] }
  0x11   :  { %v127_v17 = vpack.c.bf16 %v41_v15, %v40_v14  ;;  %v48_v14 = vld [vmem:[%s5432_s0 + $0xe0] sm:$0xff]  ;;  %v49_v15 = vld [vmem:[%s5432_s0 + $0xe8] sm:$0xff] }
  0x12   :  { %199 = vmatpush.bf16.xpose.msra.mxu0 %v2870_v2  ;;  %2883 = vmatpush.bf16.xpose.msra.mxu3 %v2870_v2 }
  0x13   :  { %2096 = vmatpush.bf16.msra.mxu2 %v2868_v4 }
  0x17   :  { %2097 = vmatpush.bf16.msra.mxu2 %v2867_v5 }
  0x1a   :  { %200 = vmatpush.bf16.xpose.msra.mxu0 %v2869_v3  ;;  %2884 = vmatpush.bf16.xpose.msra.mxu3 %v2869_v3  ;;  %v38_v3 = vld [vmem:[%s5432_s0 + $0x90] sm:$0xff] }
  0x1b   :  { %2098 = vmatpush.bf16.msra.mxu2 %v2866_v6 }
  0x1f   :  { %2099 = vmatpush.bf16.msra.mxu2 %v2865_v7 }
  0x22   :  { %201 = vmatpush.bf16.xpose.msra.mxu0 %v2868_v4  ;;  %2885 = vmatpush.bf16.xpose.msra.mxu3 %v2868_v4  ;;  %v39_v4 = vld [vmem:[%s5432_s0 + $0x98] sm:$0xff] }
  0x2a   :  { %202 = vmatpush.bf16.xpose.msra.mxu0 %v2867_v5  ;;  %2886 = vmatpush.bf16.xpose.msra.mxu3 %v2867_v5 }
  0x32   :  { %203 = vmatpush.bf16.xpose.msra.mxu0 %v2866_v6  ;;  %2887 = vmatpush.bf16.xpose.msra.mxu3 %v2866_v6  ;;  %v126_v6 = vpack.c.bf16 %v39_v4, %v38_v3 }
  0x3a   :  { %204 = vmatpush.bf16.xpose.msra.mxu0 %v2865_v7  ;;  %2888 = vmatpush.bf16.xpose.msra.mxu3 %v2865_v7 }
  0x41   :  { %205 = vmatmul.bf16.vlgmr.msra.gmra.mxu0 %v117_v12  ;;  %320 = vmatmul.bf16.vlgmr.msra.gmra.mxu3 %v140_v13 }
  0x51   :  { %210 = vmatmul.bf16.gmra.mxu0 %v118_v18  ;;  %325 = vmatmul.bf16.gmra.mxu3 %v141_v19 }
  0x61   :  { %215 = vmatmul.bf16.gmra.mxu0 %v119_v24  ;;  %330 = vmatmul.bf16.gmra.mxu3 %v142_v25  ;;  %v42_v25 = vld [vmem:[%s5432_s0 + $0xb0] sm:$0xff] }
  0x71   :  { %220 = vmatmul.bf16.gmra.mxu0 %v120_v30  ;;  %335 = vmatmul.bf16.gmra.mxu3 %v143_v31  ;;  %v128_v30 = vpack.c.bf16 %v43_v26, %v42_v25 }
  0x81   :  { %225 = vmatmul.bf16.gmra.mxu0 %v121_v36  ;;  %340 = vmatmul.bf16.gmra.mxu3 %v144_v37 }
  0x91   :  { %230 = vmatmul.bf16.gmra.mxu0 %v122_v42  ;;  %345 = vmatmul.bf16.gmra.mxu3 %v145_v43  ;;  %v44_v42 = vld [vmem:[%s5432_s0 + $0xc0] sm:$0xff]  ;;  %v45_v43 = vld [vmem:[%s5432_s0 + $0xc8] sm:$0xff] }
  0x92   :  { %v129_v46 = vpack.c.bf16 %v45_v43, %v44_v42 }
  0xa1   :  { %235 = vmatmul.bf16.gmra.mxu0 %v123_v48  ;;  %350 = vmatmul.bf16.gmra.mxu3 %v146_v49 }
  0xb1   :  { %240 = vmatmul.bf16.gmra.mxu0 %v124_v54  ;;  %355 = vmatmul.bf16.gmra.mxu3 %v147_v55 }
  0xbe   :  { %v206_v60 = vpop.f32.mrf.mxu0 }
  0xbf   :  { %v366_v61 = vmul.f32 2.0, %v206_v60 }
  0xc1   :  { %245 = vmatmul.bf16.gmra.mxu0 %v125_v58  ;;  %v3153_v62 = vsub.f32 %v3150_v59, %v366_v61  ;;  %v47_v58 = vld [vmem:[%s5432_s0 + $0xd8] sm:$0xff] }
  0xc3   :  { %499 = vmin.xlane.f32.xlu0 %v3153_v62 }
  0xc4   :  { %v3156_v63 = vpop.f32.mrf.mxu3 }
  0xc5   :  { %5512 = vst [vmem:[#allocation2_spill] sm:$0xff] %v3156_v63 }
  0xc6   :  { %v208_v0 = vpop.f32.mrf.mxu0 }
  0xc7   :  { %v367_v1 = vmul.f32 2.0, %v208_v0  ;;  %v130_v0 = vpack.c.bf16 %v47_v58, %v46_v57 }
  0xc9   :  { %v3159_v2 = vsub.f32 %v3150_v59, %v367_v1 }
  0xcb   :  { %501 = vmin.xlane.f32.xlu0 %v3159_v2 }
  0xcc   :  { %v3168_v5 = vpop.f32.mrf.mxu3 }
  0xcd   :  { %5513 = vst [vmem:[#allocation3_spill] sm:$0xff] %v3168_v5 }
  0xce   :  { %v211_v7 = vpop.f32.mrf.mxu0 }
  0xcf   :  { %v368_v8 = vmul.f32 2.0, %v211_v7 }
  0xd1   :  { %250 = vmatmul.bf16.gmra.mxu0 %v126_v6  ;;  %v3171_v9 = vsub.f32 %v3150_v59, %v368_v8 }
  0xd3   :  { %503 = vmin.xlane.f32.xlu1 %v3171_v9 }
  0xd4   :  { %v3174_v10 = vpop.f32.mrf.mxu3 }
  0xd5   :  { %5514 = vst [vmem:[#allocation4_spill] sm:$0xff] %v3174_v10 }
  0xd6   :  { %v213_v11 = vpop.f32.mrf.mxu0 }
  0xd7   :  { %v369_v12 = vmul.f32 2.0, %v213_v11 }
  0xd9   :  { %v3177_v13 = vsub.f32 %v3150_v59, %v369_v12 }
  0xdb   :  { %505 = vmin.xlane.f32.xlu1 %v3177_v13 }
  0xdc   :  { %v3186_v16 = vpop.f32.mrf.mxu3 }
  0xdd   :  { %5515 = vst [vmem:[#allocation5_spill] sm:$0xff] %v3186_v16 }
  0xde   :  { %v216_v18 = vpop.f32.mrf.mxu0 }
  0xdf   :  { %v370_v19 = vmul.f32 2.0, %v216_v18 }
  0xe1   :  { %255 = vmatmul.bf16.gmra.mxu0 %v127_v17  ;;  %v3189_v20 = vsub.f32 %v3150_v59, %v370_v19 }
  0xe3   :  { %507 = vmin.xlane.f32.xlu2 %v3189_v20 }
  0xe4   :  { %v331_v21 = vpop.f32.mrf.mxu3 }
  0xe5   :  { %v416_v22 = vmul.f32 2.0, %v331_v21  ;;  %v131_v21 = vpack.c.bf16 %v49_v15, %v48_v14 }
  0xe6   :  { %v218_v23 = vpop.f32.mrf.mxu0 }
  0xe7   :  { %v3193_v24 = vsub.f32 %v3150_v59, %v416_v22  ;;  %v371_v28 = vmul.f32 2.0, %v218_v23 }
  0xe9   :  { %v3207_v33 = vsub.f32 %v3150_v59, %v371_v28 }
  0xeb   :  { %599 = vmin.xlane.f32.xlu2 %v3193_v24 }
  0xec   :  { %v333_v27 = vpop.f32.mrf.mxu3 }
  0xed   :  { %v417_v29 = vmul.f32 2.0, %v333_v27 }
  0xee   :  { %v221_v31 = vpop.f32.mrf.mxu0 }
  0xef   :  { %v3203_v32 = vsub.f32 %v3150_v59, %v417_v29  ;;  %v372_v35 = vmul.f32 2.0, %v221_v31 }
  0xf1   :  { %260 = vmatmul.bf16.gmra.mxu0 %v128_v30  ;;  %601 = vmin.xlane.f32.xlu0 %v3203_v32  ;;  %v3215_v40 = vsub.f32 %v3150_v59, %v372_v35  ;;  %v51_v35 = vld [vmem:[%s5432_s0 + $0xf8] sm:$0xff] }
  0xf3   :  { %509 = vmin.xlane.f32.xlu2 %v3207_v33 }
  0xf4   :  { %v336_v34 = vpop.f32.mrf.mxu3 }
  0xf5   :  { %v418_v36 = vmul.f32 2.0, %v336_v34  ;;  %v50_v34 = vld [vmem:[%s5432_s0 + $0xf0] sm:$0xff] }
  0xf6   :  { %v223_v37 = vpop.f32.mrf.mxu0  ;;  %v132_v42 = vpack.c.bf16 %v51_v35, %v50_v34  ;;  %v55_v34 = vld [vmem:[%s5432_s0 + $0x118] sm:$0xff] }
  0xf7   :  { %v373_v38 = vmul.f32 2.0, %v223_v37  ;;  %v3211_v39 = vsub.f32 %v3150_v59, %v418_v36 }
  0xf9   :  { %603 = vmin.xlane.f32.xlu1 %v3211_v39  ;;  %v3218_v41 = vsub.f32 %v3150_v59, %v373_v38 }
  0xfb   :  { %511 = vmin.xlane.f32.xlu2 %v3215_v40  ;;  %513 = vmin.xlane.f32.xlu0 %v3218_v41 }
  0xfc   :  { %v338_v44 = vpop.f32.mrf.mxu3 }
  0xfd   :  { %v419_v45 = vmul.f32 2.0, %v338_v44 }
  0xfe   :  { %v226_v47 = vpop.f32.mrf.mxu0 }
  0xff   :  { %v374_v48 = vmul.f32 2.0, %v226_v47  ;;  %v3229_v49 = vsub.f32 %v3150_v59, %v419_v45 }
 0x101   :  { %265 = vmatmul.bf16.gmra.mxu0 %v129_v46  ;;  %v3232_v50 = vsub.f32 %v3150_v59, %v374_v48  ;;  %v497_v46 = vlaneseq }
 0x103   :  { %605 = vmin.xlane.f32.xlu2 %v3229_v49  ;;  %515 = vmin.xlane.f32.xlu0 %v3232_v50 }
 0x104   :  { %v341_v51 = vpop.f32.mrf.mxu3 }
 0x105   :  { %v420_v52 = vmul.f32 2.0, %v341_v51 }
 0x106   :  { %v228_v53 = vpop.f32.mrf.mxu0 }
 0x107   :  { %v375_v54 = vmul.f32 2.0, %v228_v53  ;;  %v3237_v55 = vsub.f32 %v3150_v59, %v420_v52  ;;  %v3302_v52 = vand.u32 127, %v497_v46 }
 0x109   :  { %v3240_v56 = vsub.f32 %v3150_v59, %v375_v54 }
 0x10b   :  { %607 = vmin.xlane.f32.xlu0 %v3237_v55  ;;  %517 = vmin.xlane.f32.xlu1 %v3240_v56 }
 0x10c   :  { %v343_v60 = vpop.f32.mrf.mxu3 }
 0x10d   :  { %v421_v61 = vmul.f32 2.0, %v343_v60 }
 0x10e   :  { %v231_v1 = vpop.f32.mrf.mxu0 }
 0x10f   :  { %v3251_v3 = vsub.f32 %v3150_v59, %v421_v61  ;;  %v376_v6 = vmul.f32 2.0, %v231_v1  ;;  %v52_v1 = vld [vmem:[%s5432_s0 + $0x100] sm:$0xff] }
 0x111   :  { %270 = vmatmul.bf16.gmra.mxu0 %v130_v0  ;;  %v3255_v11 = vsub.f32 %v3150_v59, %v376_v6 }
 0x113   :  { %609 = vmin.xlane.f32.xlu1 %v3251_v3 }
 0x114   :  { %v346_v4 = vpop.f32.mrf.mxu3 }
 0x115   :  { %v422_v18 = vmul.f32 2.0, %v346_v4 }
 0x116   :  { %v233_v7 = vpop.f32.mrf.mxu0 }
 0x117   :  { %v377_v8 = vmul.f32 2.0, %v233_v7  ;;  %v3269_v23 = vsub.f32 %v3150_v59, %v422_v18 }
 0x119   :  { %v3258_v12 = vsub.f32 %v3150_v59, %v377_v8  ;;  %5516 = vst [vmem:[#allocation6_spill] sm:$0xff] %v3269_v23 }
 0x11b   :  { %519 = vmin.xlane.f32.xlu1 %v3255_v11  ;;  %521 = vmin.xlane.f32.xlu2 %v3258_v12 }
 0x11c   :  { %v348_v17 = vpop.f32.mrf.mxu3 }
 0x11d   :  { %v423_v19 = vmul.f32 2.0, %v348_v17 }
 0x11e   :  { %v236_v22 = vpop.f32.mrf.mxu0 }
 0x11f   :  { %v3272_v25 = vsub.f32 %v3150_v59, %v423_v19  ;;  %v378_v27 = vmul.f32 2.0, %v236_v22 }
 0x121   :  { %275 = vmatmul.bf16.gmra.mxu0 %v131_v21  ;;  %v3280_v31 = vsub.f32 %v3150_v59, %v378_v27 }
 0x123   :  { %611 = vmin.xlane.f32.xlu1 %v3269_v23  ;;  %613 = vmin.xlane.f32.xlu2 %v3272_v25 }
 0x124   :  { %v351_v26 = vpop.f32.mrf.mxu3 }
 0x125   :  { %v424_v28 = vmul.f32 2.0, %v351_v26 }
 0x126   :  { %v238_v29 = vpop.f32.mrf.mxu0 }
 0x127   :  { %v3277_v30 = vsub.f32 %v3150_v59, %v424_v28  ;;  %v379_v37 = vmul.f32 2.0, %v238_v29  ;;  %v54_v29 = vld [vmem:[%s5432_s0 + $0x110] sm:$0xff] }
 0x128   :  { %v134_v35 = vpack.c.bf16 %v55_v34, %v54_v29 }
 0x129   :  { %5517 = vst [vmem:[#allocation7_spill] sm:$0xff] %v3277_v30  ;;  %v3295_v47 = vsub.f32 %v3150_v59, %v379_v37 }
 0x12b   :  { %615 = vmin.xlane.f32.xlu2 %v3277_v30  ;;  %523 = vmin.xlane.f32.xlu1 %v3280_v31 }
 0x12c   :  { %v353_v36 = vpop.f32.mrf.mxu3 }
 0x12d   :  { %v425_v38 = vmul.f32 2.0, %v353_v36 }
 0x12e   :  { %v241_v43 = vpop.f32.mrf.mxu0 }
 0x12f   :  { %v380_v44 = vmul.f32 2.0, %v241_v43  ;;  %v3291_v45 = vsub.f32 %v3150_v59, %v425_v38 }
 0x131   :  { %5518 = vst [vmem:[#allocation8_spill] sm:$0xff] %v3291_v45  ;;  %280 = vmatmul.bf16.gmra.mxu0 %v132_v42  ;;  %617 = vmin.xlane.f32.xlu0 %v3291_v45  ;;  %v3298_v48 = vsub.f32 %v3150_v59, %v380_v44 }
 0x133   :  { %525 = vmin.xlane.f32.xlu2 %v3295_v47  ;;  %527 = vmin.xlane.f32.xlu1 %v3298_v48 }
 0x134   :  { %v356_v51 = vpop.f32.mrf.mxu3 }
 0x135   :  { %v426_v53 = vmul.f32 2.0, %v356_v51 }
 0x136   :  { %v500_v54 = vpop.xlane.xlu0 %499  ;;  %v243_v57 = vpop.f32.mrf.mxu0 }
 0x137   :  { %vm627_vm0 = vcmp.eq.f32.partialorder %v3153_v62, %v500_v54  ;;  %v381_v58 = vmul.f32 2.0, %v243_v57  ;;  %v3306_v60 = vsub.f32 %v3150_v59, %v426_v53  ;;  %v53_v62 = vld [vmem:[%s5432_s0 + $0x108] sm:$0xff] }
 0x138   :  { %v3309_v61 = vsel %vm627_vm0, %v3302_v52, 128  ;;  %v133_v6 = vpack.c.bf16 %v53_v62, %v52_v1  ;;  %v57_v1 = vld [vmem:[%s5432_s0 + $0x128] sm:$0xff] }
 0x139   :  { %5519 = vst [vmem:[#allocation9_spill] sm:$0xff] %v3306_v60  ;;  %619 = vmin.xlane.f32.xlu0 %v3306_v60  ;;  %v3313_v0 = vsub.f32 %v3150_v59, %v381_v58  ;;  %v756_v4 = vshra.s32 %v3309_v61, 16  ;;  %v56_v58 = vld [vmem:[%s5432_s0 + $0x120] sm:$0xff] }
 0x13b   :  { %529 = vmin.xlane.f32.xlu2 %v3313_v0  ;;  %v3324_v15 = vcvt.s32.f32 %v756_v4  ;;  %v135_v4 = vpack.c.bf16 %v57_v1, %v56_v58 }
 0x13e   :  { %v502_v7 = vpop.xlane.xlu0 %501  ;;  %v246_v8 = vpop.f32.mrf.mxu0 }
 0x13f   :  { %vm628_vm1 = vcmp.eq.f32.partialorder %v3159_v2, %v502_v7  ;;  %v382_v14 = vmul.f32 2.0, %v246_v8 }
 0x140   :  { %v3331_v18 = vsel %vm628_vm1, %v3302_v52, 128 }
 0x141   :  { %759 = vmin.xlane.f32.xlu0 %v3324_v15  ;;  %v3328_v17 = vsub.f32 %v3150_v59, %v382_v14  ;;  %285 = vmatmul.bf16.gmra.mxu0 %v133_v6  ;;  %v770_v19 = vshra.s32 %v3331_v18, 16 }
 0x143   :  { %531 = vmin.xlane.f32.xlu1 %v3328_v17  ;;  %v3336_v26 = vcvt.s32.f32 %v770_v19 }
 0x146   :  { %v504_v21 = vpop.xlane.xlu1 %503  ;;  %v248_v22 = vpop.f32.mrf.mxu0 }
 0x147   :  { %vm629_vm2 = vcmp.eq.f32.partialorder %v3171_v9, %v504_v21  ;;  %v383_v2 = vmul.f32 2.0, %v248_v22 }
 0x148   :  { %v3342_v28 = vsel %vm629_vm2, %v3302_v52, 128 }
 0x149   :  { %v3339_v27 = vsub.f32 %v3150_v59, %v383_v2  ;;  %v784_v9 = vshra.s32 %v3342_v28, 16 }
 0x14b   :  { %773 = vmin.xlane.f32.xlu1 %v3336_v26  ;;  %533 = vmin.xlane.f32.xlu2 %v3339_v27  ;;  %v3357_v42 = vcvt.s32.f32 %v784_v9 }
 0x14e   :  { %v506_v36 = vpop.xlane.xlu1 %505  ;;  %v251_v37 = vpop.f32.mrf.mxu0 }
 0x14f   :  { %vm630_vm3 = vcmp.eq.f32.partialorder %v3177_v13, %v506_v36  ;;  %v384_v44 = vmul.f32 2.0, %v251_v37 }
 0x150   :  { %v3355_v38 = vsel %vm630_vm3, %v3302_v52, 128 }
 0x151   :  { %v798_v43 = vshra.s32 %v3355_v38, 16  ;;  %290 = vmatmul.bf16.gmra.mxu0 %v134_v35  ;;  %v3365_v13 = vsub.f32 %v3150_v59, %v384_v44 }
 0x153   :  { %787 = vmin.xlane.f32.xlu1 %v3357_v42  ;;  %v3361_v46 = vcvt.s32.f32 %v798_v43 }
 0x155   :  { %801 = vmin.xlane.f32.xlu2 %v3361_v46 }
 0x156   :  { %v508_v51 = vpop.xlane.xlu2 %507  ;;  %v253_v53 = vpop.f32.mrf.mxu0 }
 0x157   :  { %v385_v54 = vmul.f32 2.0, %v253_v53  ;;  %vm631_vm4 = vcmp.eq.f32.partialorder %v3189_v20, %v508_v51 }
 0x158   :  { %v3379_v62 = vsel %vm631_vm4, %v3302_v52, 128 }
 0x159   :  { %v3369_v57 = vsub.f32 %v3150_v59, %v385_v54  ;;  %v812_v8 = vshra.s32 %v3379_v62, 16 }
 0x15b   :  { %535 = vmin.xlane.f32.xlu1 %v3365_v13  ;;  %v3388_v19 = vcvt.s32.f32 %v812_v8 }
 0x15d   :  { %537 = vmin.xlane.f32.xlu2 %v3369_v57 }
 0x15e   :  { %v600_v20 = vpop.xlane.xlu2 %599  ;;  %v256_v6 = vpop.f32.mrf.mxu0 }
 0x15f   :  { %v386_v7 = vmul.f32 2.0, %v256_v6  ;;  %vm677_vm5 = vcmp.eq.f32.partialorder %v3193_v24, %v600_v20 }
 0x160   :  { %v3391_v21 = vsel %vm677_vm5, %v3302_v52, 128 }
 0x161   :  { %v3385_v14 = vsub.f32 %v3150_v59, %v386_v7  ;;  %295 = vmatmul.bf16.gmra.mxu0 %v135_v4  ;;  %5520 = vst [vmem:[#allocation10_spill] sm:$0xff] %v3391_v21  ;;  %v1456_v24 = vshra.s32 %v3391_v21, 16 }
 0x163   :  { %539 = vmin.xlane.f32.xlu1 %v3385_v14  ;;  %v3403_v36 = vcvt.s32.f32 %v1456_v24 }
 0x164   :  { %v602_v22 = vpop.xlane.xlu0 %601 }
 0x165   :  { %815 = vmin.xlane.f32.xlu2 %v3388_v19  ;;  %vm678_vm7 = vcmp.eq.f32.partialorder %v3203_v32, %v602_v22  ;;  %5521 = vst [vmem:[#allocation11_spill] sm:$0xff] %v3403_v36 }
 0x166   :  { %v510_v2 = vpop.xlane.xlu2 %509  ;;  %v258_v29 = vpop.f32.mrf.mxu0  ;;  %v3406_v37 = vsel %vm678_vm7, %v3302_v52, 128 }
 0x167   :  { %vm632_vm6 = vcmp.eq.f32.partialorder %v3207_v33, %v510_v2  ;;  %5522 = vst [vmem:[#allocation12_spill] sm:$0xff] %v3406_v37  ;;  %v387_v51 = vmul.f32 2.0, %v258_v29  ;;  %v1470_v32 = vshra.s32 %v3406_v37, 16 }
 0x168   :  { %v3397_v34 = vsel %vm632_vm6, %v3302_v52, 128 }
 0x169   :  { %v826_v9 = vshra.s32 %v3397_v34, 16  ;;  %v3416_v1 = vcvt.s32.f32 %v1470_v32  ;;  %v3419_v4 = vsub.f32 %v3150_v59, %v387_v51 }
 0x16b   :  { %v3401_v35 = vcvt.s32.f32 %v826_v9  ;;  %5523 = vst [vmem:[#allocation13_spill] sm:$0xff] %v3416_v1 }
 0x16c   :  { %v604_v43 = vpop.xlane.xlu1 %603 }
 0x16d   :  { %829 = vmin.xlane.f32.xlu0 %v3401_v35  ;;  %1459 = vmin.xlane.f32.xlu2 %v3403_v36  ;;  %vm679_vm8 = vcmp.eq.f32.partialorder %v3211_v39, %v604_v43 }
 0x16e   :  { %v512_v33 = vpop.xlane.xlu2 %511  ;;  %v514_v44 = vpop.xlane.xlu0 %513  ;;  %v3422_v20 = vsel %vm679_vm8, %v3302_v52, 128 }
 0x16f   :  { %v261_v53 = vpop.f32.mrf.mxu0  ;;  %vm633_vm9 = vcmp.eq.f32.partialorder %v3215_v40, %v512_v33  ;;  %5524 = vst [vmem:[#allocation14_spill] sm:$0xff] %v3422_v20  ;;  %v1484_v8 = vshra.s32 %v3422_v20, 16  ;;  %vm634_vm11 = vcmp.eq.f32.partialorder %v3218_v41, %v514_v44 }
 0x170   :  { %v388_v54 = vmul.f32 2.0, %v261_v53  ;;  %v3425_v6 = vsel %vm633_vm9, %v3302_v52, 128 }
 0x171   :  { %v840_v22 = vshra.s32 %v3425_v6, 16  ;;  %v3438_v24 = vcvt.s32.f32 %v1484_v8 }
 0x172   :  { %v3414_v58 = vsub.f32 %v3150_v59, %v388_v54 }
 0x173   :  { %5525 = vst [vmem:[#allocation15_spill] sm:$0xff] %v3438_v24  ;;  %v3440_v9 = vcvt.s32.f32 %v840_v22 }
 0x174   :  { %543 = vmin.xlane.f32.xlu1 %v3414_v58 }
 0x175   :  { %1473 = vmin.xlane.f32.xlu0 %v3416_v1  ;;  %541 = vmin.xlane.f32.xlu2 %v3419_v4 }
 0x176   :  { %v606_v39 = vpop.xlane.xlu2 %605  ;;  %v516_v40 = vpop.xlane.xlu0 %515 }
 0x177   :  { %vm680_vm10 = vcmp.eq.f32.partialorder %v3229_v49, %v606_v39  ;;  %v263_v7 = vpop.f32.mrf.mxu0  ;;  %v3445_v49 = vsel %vm634_vm11, %v3302_v52, 128  ;;  %vm635_vm12 = vcmp.eq.f32.partialorder %v3232_v50, %v516_v40 }
 0x178   :  { %v3434_v2 = vsel %vm680_vm10, %v3302_v52, 128  ;;  %v389_v51 = vmul.f32 2.0, %v263_v7  ;;  %v854_v53 = vshra.s32 %v3445_v49, 16  ;;  %v3463_v7 = vsel %vm635_vm12, %v3302_v52, 128 }
 0x179   :  { %v1498_v29 = vshra.s32 %v3434_v2, 16 }
 0x17a   :  { %v3457_v39 = vcvt.s32.f32 %v854_v53  ;;  %v3460_v8 = vsub.f32 %v3150_v59, %v389_v51 }
 0x17b   :  { %v3442_v43 = vcvt.s32.f32 %v1498_v29  ;;  %v868_v29 = vshra.s32 %v3463_v7, 16 }
 0x17d   :  { %1487 = vmin.xlane.f32.xlu0 %v3438_v24  ;;  %843 = vmin.xlane.f32.xlu2 %v3440_v9 }
 0x17e   :  { %1501 = vmin.xlane.f32.xlu1 %v3442_v43  ;;  %v518_v33 = vpop.xlane.xlu1 %517  ;;  %v608_v41 = vpop.xlane.xlu0 %607 }
 0x17f   :  { %v266_v44 = vpop.f32.mrf.mxu0  ;;  %vm636_vm13 = vcmp.eq.f32.partialorder %v3240_v56, %v518_v33  ;;  %vm681_vm14 = vcmp.eq.f32.partialorder %v3237_v55, %v608_v41  ;;  %v3479_v41 = vcvt.s32.f32 %v868_v29 }
 0x180   :  { %v390_v32 = vmul.f32 2.0, %v266_v44  ;;  %v3466_v22 = vsel %vm636_vm13, %v3302_v52, 128  ;;  %v3469_v50 = vsel %vm681_vm14, %v3302_v52, 128 }
 0x181   :  { %v882_v40 = vshra.s32 %v3466_v22, 16  ;;  %v1512_v33 = vshra.s32 %v3469_v50, 16 }
 0x182   :  { %v3455_v54 = vsub.f32 %v3150_v59, %v390_v32 }
 0x183   :  { %v3477_v51 = vcvt.s32.f32 %v882_v40  ;;  %v3481_v44 = vcvt.s32.f32 %v1512_v33 }
 0x185   :  { %857 = vmin.xlane.f32.xlu0 %v3457_v39  ;;  %545 = vmin.xlane.f32.xlu2 %v3460_v8 }
 0x186   :  { %547 = vmin.xlane.f32.xlu1 %v3455_v54  ;;  %v610_v55 = vpop.xlane.xlu1 %609 }
 0x187   :  { %v268_v56 = vpop.f32.mrf.mxu0  ;;  %vm682_vm15 = vcmp.eq.f32.partialorder %v3251_v3, %v610_v55 }
 0x188   :  { %v391_v10 = vmul.f32 2.0, %v268_v56  ;;  %v3495_v33 = vsel %vm682_vm15, %v3302_v52, 128 }
 0x18a   :  { %v3492_v29 = vsub.f32 %v3150_v59, %v391_v10 }
 0x18d   :  { %885 = vmin.xlane.f32.xlu0 %v3477_v51  ;;  %871 = vmin.xlane.f32.xlu2 %v3479_v41 }
 0x18e   :  { %1515 = vmin.xlane.f32.xlu1 %v3481_v44  ;;  %v520_v53 = vpop.xlane.xlu1 %519  ;;  %v522_v32 = vpop.xlane.xlu2 %521 }
 0x18f   :  { %v271_v16 = vpop.f32.mrf.mxu0  ;;  %vm638_vm0 = vcmp.eq.f32.partialorder %v3258_v12, %v522_v32  ;;  %vm637_vm1 = vcmp.eq.f32.partialorder %v3255_v11, %v520_v53 }
 0x190   :  { %v392_v5 = vmul.f32 2.0, %v271_v16  ;;  %v3498_v63 = vsel %vm638_vm0, %v3302_v52, 128  ;;  %v3517_v30 = vsel %vm637_vm1, %v3302_v52, 128 }
 0x191   :  { %v910_v10 = vshra.s32 %v3498_v63, 16  ;;  %v896_v53 = vshra.s32 %v3517_v30, 16 }
 0x192   :  { %v3489_v40 = vsub.f32 %v3150_v59, %v392_v5  ;;  %v1526_v5 = vshra.s32 %v3495_v33, 16 }
 0x193   :  { %v3514_v60 = vcvt.s32.f32 %v910_v10  ;;  %v83_v10 = vld [vmem:[%s5432_s0 + $0x1f8] sm:$0xff]  ;;  %v3532_v24 = vcvt.s32.f32 %v896_v53 }
 0x194   :  { %v3512_v32 = vcvt.s32.f32 %v1526_v5  ;;  %v82_v5 = vld [vmem:[%s5432_s0 + $0x1f0] sm:$0xff] }
 0x195   :  { %549 = vmin.xlane.f32.xlu2 %v3492_v29  ;;  %551 = vmin.xlane.f32.xlu0 %v3489_v40 }
 0x196   :  { %v3502_v16 = vpop.xlane.xlu1 %611  ;;  %v3504_v3 = vpop.xlane.xlu2 %613 }
 0x197   :  { %5526 = vst [vmem:[#allocation16_spill] sm:$0xff] %v3502_v16  ;;  %v273_v12 = vpop.f32.mrf.mxu0 }
 0x198   :  { %v393_v55 = vmul.f32 2.0, %v273_v12 }
 0x19a   :  { %v3510_v56 = vsub.f32 %v3150_v59, %v393_v55  ;;  %v148_v55 = vpack.c.bf16 %v83_v10, %v82_v5 }
 0x19c   :  { %553 = vmin.xlane.f32.xlu1 %v3510_v56  ;;  %360 = vmatmul.bf16.gmra.mxu3 %v148_v55 }
 0x19d   :  { %1529 = vmin.xlane.f32.xlu2 %v3512_v32  ;;  %913 = vmin.xlane.f32.xlu0 %v3514_v60 }
 0x19e   :  { %v3522_v45 = vpop.xlane.xlu2 %615  ;;  %v524_v12 = vpop.xlane.xlu1 %523 }
 0x19f   :  { %5527 = vst [vmem:[#allocation17_spill] sm:$0xff] %v3522_v45  ;;  %v276_v11 = vpop.f32.mrf.mxu0  ;;  %vm639_vm2 = vcmp.eq.f32.partialorder %v3280_v31, %v524_v12 }
 0x1a0   :  { %v3535_v20 = vsel %vm639_vm2, %v3302_v52, 128 }
 0x1a1   :  { %5528 = vst [vmem:[#allocation18_spill] sm:$0xff] %v3535_v20  ;;  %v924_v1 = vshra.s32 %v3535_v20, 16 }
 0x1a3   :  { %v3546_v5 = vcvt.s32.f32 %v924_v1 }
 0x1a4   :  { %v3537_v45 = vpop.xlane.xlu0 %617 }
 0x1a5   :  { %5529 = vst [vmem:[#allocation19_spill] sm:$0xff] %v3537_v45  ;;  %899 = vmin.xlane.f32.xlu2 %v3532_v24 }
 0x1a6   :  { %v526_v31 = vpop.xlane.xlu2 %525  ;;  %5530 = vst [vmem:[#allocation20_spill] sm:$0xff] %v3546_v5  ;;  %v528_v55 = vpop.xlane.xlu1 %527 }
 0x1a7   :  { %vm640_vm3 = vcmp.eq.f32.partialorder %v3295_v47, %v526_v31  ;;  %v278_v12 = vpop.f32.mrf.mxu0  ;;  %v394_v47 = vmul.f32 2.0, %v276_v11  ;;  %vm641_vm4 = vcmp.eq.f32.partialorder %v3298_v48, %v528_v55 }
 0x1a8   :  { %v3543_v23 = vsel %vm640_vm3, %v3302_v52, 128  ;;  %v395_v31 = vmul.f32 2.0, %v278_v12 }
 0x1a9   :  { %v938_v53 = vshra.s32 %v3543_v23, 16  ;;  %v3559_v1 = vsub.f32 %v3150_v59, %v394_v47 }
 0x1ab   :  { %v3548_v10 = vcvt.s32.f32 %v938_v53  ;;  %v3562_v53 = vsub.f32 %v3150_v59, %v395_v31  ;;  %v769_v31 = vand.u32 65535, %v3331_v18  ;;  %v58_v18 = vld [vmem:[%s5432_s0 + $0x130] sm:$0xff] }
 0x1ac   :  { %v3550_v16 = vpop.xlane.xlu0 %619 }
 0x1ad   :  { %5531 = vst [vmem:[#allocation21_spill] sm:$0xff] %v3550_v16  ;;  %927 = vmin.xlane.f32.xlu2 %v3546_v5  ;;  %941 = vmin.xlane.f32.xlu0 %v3548_v10  ;;  %v3565_v16 = vsel %vm641_vm4, %v3302_v52, 128  ;;  %v771_v20 = vcvt.s32.f32 %v769_v31 }
 0x1ae   :  { %5533 = vst [vmem:[#allocation23_spill] sm:$0xff] %v3565_v16  ;;  %v530_v11 = vpop.xlane.xlu2 %529  ;;  %v952_v12 = vshra.s32 %v3565_v16, 16 }
 0x1af   :  { %v281_v45 = vpop.f32.mrf.mxu0  ;;  %vm642_vm5 = vcmp.eq.f32.partialorder %v3313_v0, %v530_v11  ;;  %v59_v11 = vld [vmem:[%s5432_s0 + $0x138] sm:$0xff] }
 0x1b0   :  { %v396_v37 = vmul.f32 2.0, %v281_v45  ;;  %v3578_v21 = vcvt.s32.f32 %v952_v12 }
 0x1b2   :  { %v3556_v36 = vsub.f32 %v3150_v59, %v396_v37  ;;  %v755_v37 = vand.u32 65535, %v3309_v61  ;;  %5534 = vst [vmem:[#allocation24_spill] sm:$0xff] %v3578_v21 }
 0x1b4   :  { %5532 = vst [vmem:[#allocation22_spill] sm:$0xff] %v3556_v36  ;;  %559 = vmin.xlane.f32.xlu1 %v3556_v36  ;;  %v3570_v45 = vpop.xlane.xlu0 %759  ;;  %v757_v47 = vcvt.s32.f32 %v755_v37  ;;  %v3581_v36 = vsel %vm642_vm5, %v3302_v52, 128  ;;  %v358_v37 = vpop.f32.mrf.mxu3 }
 0x1b5   :  { %555 = vmin.xlane.f32.xlu2 %v3559_v1  ;;  %557 = vmin.xlane.f32.xlu0 %v3562_v53  ;;  %vm761_vm6 = vcmp.eq.f32.partialorder %v3324_v15, %v3570_v45  ;;  %5535 = vst [vmem:[#allocation25_spill] sm:$0xff] %v3581_v36  ;;  %v966_v0 = vshra.s32 %v3581_v36, 16 }
 0x1b6   :  { %v532_v48 = vpop.xlane.xlu1 %531  ;;  %v762_v5 = vsel %vm761_vm6, %v757_v47, inf  ;;  %v427_v47 = vmul.f32 2.0, %v358_v37 }
 0x1b7   :  { %v283_v55 = vpop.f32.mrf.mxu0  ;;  %vm643_vm8 = vcmp.eq.f32.partialorder %v3328_v17, %v532_v48  ;;  %v3599_v31 = vcvt.s32.f32 %v966_v0 }
 0x1b8   :  { %v397_v61 = vmul.f32 2.0, %v283_v55  ;;  %v136_v55 = vpack.c.bf16 %v59_v11, %v58_v18  ;;  %v3610_v17 = vsub.f32 %v3150_v59, %v427_v47  ;;  %v797_v11 = vand.u32 65535, %v3355_v38 }
 0x1ba   :  { %300 = vmatmul.bf16.gmra.mxu0 %v136_v55  ;;  %5536 = vst [vmem:[#allocation26_spill] sm:$0xff] %v3610_v17 }
 0x1bd   :  { %955 = vmin.xlane.f32.xlu2 %v3578_v21  ;;  %763 = vmin.xlane.f32.xlu0 %v762_v5  ;;  %v3602_v21 = vsel %vm643_vm8, %v3302_v52, 128 }
 0x1be   :  { %v3584_v16 = vpop.xlane.xlu1 %773  ;;  %v534_v5 = vpop.xlane.xlu2 %533  ;;  %v980_v48 = vshra.s32 %v3602_v21, 16 }
 0x1bf   :  { %vm775_vm7 = vcmp.eq.f32.partialorder %v3336_v26, %v3584_v16  ;;  %v286_v15 = vpop.f32.mrf.mxu0  ;;  %v3597_v26 = vsub.f32 %v3150_v59, %v397_v61  ;;  %vm644_vm9 = vcmp.eq.f32.partialorder %v3339_v27, %v534_v5  ;;  %v799_v5 = vcvt.s32.f32 %v797_v11 }
 0x1c0   :  { %v776_v12 = vsel %vm775_vm7, %v771_v20, inf  ;;  %v783_v20 = vand.u32 65535, %v3342_v28  ;;  %v3620_v37 = vcvt.s32.f32 %v980_v48  ;;  %v3623_v28 = vsel %vm644_vm9, %v3302_v52, 128 }
 0x1c1   :  { %777 = vmin.xlane.f32.xlu1 %v776_v12  ;;  %5537 = vst [vmem:[#allocation27_spill] sm:$0xff] %v3623_v28  ;;  %v398_v55 = vmul.f32 2.0, %v286_v15 }
 0x1c2   :  { %v785_v0 = vcvt.s32.f32 %v783_v20 }
 0x1c3   :  { %v3631_v48 = vsub.f32 %v3150_v59, %v398_v55 }
 0x1c5   :  { %969 = vmin.xlane.f32.xlu0 %v3599_v31  ;;  %561 = vmin.xlane.f32.xlu2 %v3597_v26 }
 0x1c6   :  { %v3606_v36 = vpop.xlane.xlu1 %787 }
 0x1c7   :  { %v288_v61 = vpop.f32.mrf.mxu0  ;;  %vm789_vm10 = vcmp.eq.f32.partialorder %v3357_v42, %v3606_v36  ;;  %v994_v42 = vshra.s32 %v3623_v28, 16 }
 0x1c8   :  { %v3613_v18 = vpop.xlane.xlu2 %801  ;;  %v790_v12 = vsel %vm789_vm10, %v785_v0, inf }
 0x1c9   :  { %621 = vmin.xlane.f32.xlu1 %v3610_v17  ;;  %vm803_vm11 = vcmp.eq.f32.partialorder %v3361_v46, %v3613_v18  ;;  %v3633_v15 = vcvt.s32.f32 %v994_v42  ;;  %v399_v46 = vmul.f32 2.0, %v288_v61  ;;  %v825_v61 = vand.u32 65535, %v3397_v34 }
 0x1ca   :  { %v804_v38 = vsel %vm803_vm11, %v799_v5, inf  ;;  %v811_v17 = vand.u32 65535, %v3379_v62 }
 0x1cb   :  { %5538 = vst [vmem:[#allocation28_spill] sm:$0xff] %v3633_v15  ;;  %v827_v28 = vcvt.s32.f32 %v825_v61 }
 0x1cc   :  { %v813_v34 = vcvt.s32.f32 %v811_v17 }
 0x1cd   :  { %791 = vmin.xlane.f32.xlu0 %v790_v12  ;;  %983 = vmin.xlane.f32.xlu2 %v3620_v37  ;;  %v61_v12 = vld [vmem:[%s5432_s0 + $0x148] sm:$0xff] }
 0x1ce   :  { %v536_v27 = vpop.xlane.xlu1 %535 }
 0x1cf   :  { %v291_v47 = vpop.f32.mrf.mxu0  ;;  %vm645_vm12 = vcmp.eq.f32.partialorder %v3365_v13, %v536_v27  ;;  %v60_v13 = vld [vmem:[%s5432_s0 + $0x140] sm:$0xff] }
 0x1d0   :  { %v538_v20 = vpop.xlane.xlu2 %537  ;;  %v3636_v0 = vsel %vm645_vm12, %v3302_v52, 128  ;;  %v137_v5 = vpack.c.bf16 %v61_v12, %v60_v13  ;;  %v400_v62 = vmul.f32 2.0, %v291_v47 }
 0x1d1   :  { %805 = vmin.xlane.f32.xlu1 %v804_v38  ;;  %5539 = vst [vmem:[#allocation29_spill] sm:$0xff] %v3636_v0  ;;  %v1008_v11 = vshra.s32 %v3636_v0, 16  ;;  %v3652_v38 = vsub.f32 %v3150_v59, %v399_v46  ;;  %vm646_vm0 = vcmp.eq.f32.partialorder %v3369_v57, %v538_v20 }
 0x1d2   :  { %305 = vmatmul.bf16.gmra.mxu0 %v137_v5  ;;  %v3677_v17 = vsub.f32 %v3150_v59, %v400_v62 }
 0x1d3   :  { %v3649_v42 = vcvt.s32.f32 %v1008_v11 }
 0x1d4   :  { %5542 = vst [vmem:[#allocation32_spill] sm:$0xff] %v3677_v17 }
 0x1d5   :  { %997 = vmin.xlane.f32.xlu0 %v3633_v15  ;;  %563 = vmin.xlane.f32.xlu2 %v3631_v48  ;;  %5540 = vst [vmem:[#allocation30_spill] sm:$0xff] %v3649_v42 }
 0x1d6   :  { %v540_v13 = vpop.xlane.xlu1 %539 }
 0x1d7   :  { %v293_v27 = vpop.f32.mrf.mxu0  ;;  %vm647_vm15 = vcmp.eq.f32.partialorder %v3385_v14, %v540_v13  ;;  %v1497_v13 = vand.u32 65535, %v3434_v2 }
 0x1d8   :  { %v3647_v55 = vpop.xlane.xlu2 %815  ;;  %v401_v12 = vmul.f32 2.0, %v293_v27  ;;  %v3688_v27 = vsel %vm646_vm0, %v3302_v52, 128 }
 0x1d9   :  { %vm817_vm14 = vcmp.eq.f32.partialorder %v3388_v19, %v3647_v55 }
 0x1da   :  { %v818_v5 = vsel %vm817_vm14, %v813_v34, inf  ;;  %v3670_v61 = vsub.f32 %v3150_v59, %v401_v12  ;;  %v1022_v34 = vshra.s32 %v3688_v27, 16 }
 0x1dc   :  { %5541 = vst [vmem:[#allocation31_spill] sm:$0xff] %v3670_v61 }
 0x1dd   :  { %1011 = vmin.xlane.f32.xlu2 %v3649_v42  ;;  %565 = vmin.xlane.f32.xlu0 %v3652_v38 }
 0x1df   :  { %v3666_v11 = vpop.f32.mrf.mxu0 }
 0x1e0   :  { %v3658_v0 = vpop.xlane.xlu0 %829  ;;  %v3660_v15 = vpop.xlane.xlu2 %1459 }
 0x1e1   :  { %vm831_vm13 = vcmp.eq.f32.partialorder %v3401_v35, %v3658_v0 }
 0x1e2   :  { %v832_v46 = vsel %vm831_vm13, %v827_v28, inf  ;;  %v3680_v28 = vsel %vm647_vm15, %v3302_v52, 128 }
 0x1e3   :  { %833 = vmin.xlane.f32.xlu1 %v832_v46  ;;  %v1036_v20 = vshra.s32 %v3680_v28, 16 }
 0x1e5   :  { %819 = vmin.xlane.f32.xlu0 %v818_v5 }
 0x1e7   :  { %v544_v19 = vpop.xlane.xlu1 %543  ;;  %v298_v57 = vpop.f32.mrf.mxu0 }
 0x1e8   :  { %v3672_v42 = vpop.xlane.xlu0 %1473  ;;  %v542_v35 = vpop.xlane.xlu2 %541  ;;  %v403_v46 = vmul.f32 2.0, %v298_v57  ;;  %v853_v57 = vand.u32 65535, %v3445_v49  ;;  %vm649_vm3 = vcmp.eq.f32.partialorder %v3414_v58, %v544_v19  ;;  %v2880_v58 = vld [vmem:[%s5434_s2 + $0x38] sm:$0xff]  ;;  %v2879_v19 = vld [vmem:[%s5434_s2 + $0x30] sm:$0xff] }
 0x1e9   :  { %vm648_vm1 = vcmp.eq.f32.partialorder %v3419_v4, %v542_v35  ;;  %v3703_v35 = vcvt.s32.f32 %v1036_v20  ;;  %v839_v20 = vand.u32 65535, %v3425_v6  ;;  %1923 = vmatpush.bf16.msra.mxu1 %v2880_v58  ;;  %2889 = vmatpush.bf16.msrb.mxu3 %v2880_v58 }
 0x1ea   :  { %v3683_v47 = vsel %vm648_vm1, %v3302_v52, 128  ;;  %v3709_v2 = vsub.f32 %v3150_v59, %v403_v46  ;;  %v63_v59 = vld [vmem:[%s5432_s0 + $0x158] sm:$0xff]  ;;  %v855_v49 = vcvt.s32.f32 %v853_v57 }
 0x1eb   :  { %569 = vmin.xlane.f32.xlu1 %v3670_v61  ;;  %v1050_v14 = vshra.s32 %v3683_v47, 16  ;;  %v1499_v61 = vcvt.s32.f32 %v1497_v13  ;;  %v62_v13 = vld [vmem:[%s5432_s0 + $0x150] sm:$0xff] }
 0x1ec   :  { %5544 = vst [vmem:[#allocation34_spill] sm:$0xff] %v3709_v2 }
 0x1ed   :  { %567 = vmin.xlane.f32.xlu0 %v3677_v17  ;;  %v3691_v4 = vcvt.s32.f32 %v1050_v14  ;;  %v3706_v14 = vcvt.s32.f32 %v1022_v34  ;;  %1924 = vmatpush.bf16.msra.mxu1 %v2879_v19 }
 0x1ee   :  { %2890 = vmatpush.bf16.msrb.mxu3 %v2879_v19 }
 0x1ef   :  { %1053 = vmin.xlane.f32.xlu2 %v3691_v4 }
 0x1f0   :  { %v3697_v12 = vpop.xlane.xlu0 %1487  ;;  %v3699_v5 = vpop.xlane.xlu2 %843 }
 0x1f1   :  { %v3701_v62 = vpop.xlane.xlu1 %1501  ;;  %vm845_vm6 = vcmp.eq.f32.partialorder %v3440_v9, %v3699_v5 }
 0x1f2   :  { %5543 = vst [vmem:[#allocation33_spill] sm:$0xff] %v3701_v62  ;;  %vm1503_vm2 = vcmp.eq.f32.partialorder %v3442_v43, %v3701_v62 }
 0x1f3   :  { %1039 = vmin.xlane.f32.xlu1 %v3703_v35  ;;  %v3714_v17 = vsel %vm1503_vm2, %v1499_v61, inf  ;;  %v138_v61 = vpack.c.bf16 %v63_v59, %v62_v13 }
 0x1f5   :  { %1025 = vmin.xlane.f32.xlu0 %v3706_v14  ;;  %310 = vmatmul.bf16.gmra.mxu0 %v138_v61 }
 0x1f7   :  { %573 = vmin.xlane.f32.xlu2 %v3709_v2  ;;  %v841_v2 = vcvt.s32.f32 %v839_v20 }
 0x1f8   :  { %v3725_v46 = vpop.xlane.xlu0 %857  ;;  %v546_v43 = vpop.xlane.xlu2 %545 }
 0x1f9   :  { %vm650_vm4 = vcmp.eq.f32.partialorder %v3460_v8, %v546_v43  ;;  %v548_v6 = vpop.xlane.xlu1 %547  ;;  %vm859_vm5 = vcmp.eq.f32.partialorder %v3457_v39, %v3725_v46  ;;  %v3744_v39 = vsel %vm649_vm3, %v3302_v52, 128  ;;  %v846_v9 = vsel %vm845_vm6, %v841_v2, inf }
 0x1fa   :  { %v3734_v34 = vsel %vm650_vm4, %v3302_v52, 128  ;;  %vm651_vm7 = vcmp.eq.f32.partialorder %v3455_v54, %v548_v6  ;;  %v860_v62 = vsel %vm859_vm5, %v855_v49, inf  ;;  %v1064_v13 = vshra.s32 %v3744_v39, 16  ;;  %v2878_v6 = vld [vmem:[%s5434_s2 + $0x28] sm:$0xff] }
 0x1fb   :  { %v3738_v57 = vsel %vm651_vm7, %v3302_v52, 128  ;;  %861 = vmin.xlane.f32.xlu1 %v860_v62  ;;  %v1078_v54 = vshra.s32 %v3734_v34, 16  ;;  %v1511_v62 = vand.u32 65535, %v3469_v50  ;;  %1925 = vmatpush.bf16.msra.mxu1 %v2878_v6  ;;  %vm684_vm4 = vcmp.eq.f32.partialorder %v3272_v25, %v3504_v3 }
 0x1fc   :  { %v1092_v8 = vshra.s32 %v3738_v57, 16  ;;  %v3767_v50 = vcvt.s32.f32 %v1064_v13  ;;  %2891 = vmatpush.bf16.msrb.mxu3 %v2878_v6  ;;  %v1525_v6 = vand.u32 65535, %v3495_v33  ;;  %v2874_v33 = vld [vmem:[%s5434_s2 + $0x8] sm:$0xff]  ;;  %v3882_v25 = vsel %vm684_vm4, %v3302_v52, 128 }
 0x1fd   :  { %847 = vmin.xlane.f32.xlu0 %v846_v9  ;;  %v3762_v49 = vcvt.s32.f32 %v1078_v54  ;;  %v1513_v61 = vcvt.s32.f32 %v1511_v62  ;;  %v881_v9 = vand.u32 65535, %v3466_v22  ;;  %v766_v3 = vcvt.f32.s32 %v3570_v45 }
 0x1fe   :  { %v3752_v20 = vcvt.s32.f32 %v1092_v8  ;;  %v867_v8 = vand.u32 65535, %v3463_v7  ;;  %v402_v7 = vmul.f32 2.0, %v3666_v11  ;;  %v2875_v11 = vld [vmem:[%s5434_s2 + $0x10] sm:$0xff] }
 0x1ff   :  { %v883_v19 = vcvt.s32.f32 %v881_v9  ;;  %v767_v45 = vshll.u32 %v766_v3, 16  ;;  %v5556_v3 = vld [vmem:[#allocation25_spill] sm:$0xff] }
 0x200   :  { %1095 = vmin.xlane.f32.xlu2 %v3752_v20  ;;  %v3756_v2 = vpop.xlane.xlu0 %885  ;;  %v3758_v59 = vpop.xlane.xlu2 %871  ;;  %v869_v13 = vcvt.s32.f32 %v867_v8 }
 0x201   :  { %v3760_v43 = vpop.xlane.xlu1 %1515  ;;  %vm887_vm9 = vcmp.eq.f32.partialorder %v3477_v51, %v3756_v2  ;;  %vm873_vm10 = vcmp.eq.f32.partialorder %v3479_v41, %v3758_v59  ;;  %v2876_v51 = vld [vmem:[%s5434_s2 + $0x18] sm:$0xff]  ;;  %v3792_v41 = vld [vmem:[%s5433_s3] ss:$0 sm:$0xff] }
 0x202   :  { %5545 = vst [vmem:[#allocation35_spill] sm:$0xff] %v3760_v43  ;;  %vm1517_vm8 = vcmp.eq.f32.partialorder %v3481_v44, %v3760_v43  ;;  %v2877_v44 = vld [vmem:[%s5434_s2 + $0x20] sm:$0xff]  ;;  %v888_v62 = vsel %vm887_vm9, %v883_v19, inf  ;;  %v3795_v9 = vsub.f32 %v3792_v41, %v402_v7  ;;  %v895_v7 = vand.u32 65535, %v3517_v30 }
 0x203   :  { %1081 = vmin.xlane.f32.xlu1 %v3762_v49  ;;  %v3772_v58 = vsel %vm1517_vm8, %v1513_v61, inf  ;;  %1926 = vmatpush.bf16.msra.mxu1 %v2877_v44  ;;  %v874_v61 = vsel %vm873_vm10, %v869_v13, inf }
 0x204   :  { %2892 = vmatpush.bf16.msrb.mxu3 %v2877_v44  ;;  %v1527_v44 = vcvt.s32.f32 %v1525_v6  ;;  %v897_v6 = vcvt.s32.f32 %v895_v7 }
 0x205   :  { %1067 = vmin.xlane.f32.xlu0 %v3767_v50 }
 0x207   :  { %1927 = vmatpush.bf16.msra.mxu1 %v2876_v51 }
 0x208   :  { %v550_v54 = vpop.xlane.xlu2 %549  ;;  %v552_v22 = vpop.xlane.xlu0 %551  ;;  %2893 = vmatpush.bf16.msrb.mxu3 %v2876_v51  ;;  %v909_v51 = vand.u32 65535, %v3498_v63 }
 0x209   :  { %vm652_vm12 = vcmp.eq.f32.partialorder %v3492_v29, %v550_v54  ;;  %vm653_vm0 = vcmp.eq.f32.partialorder %v3489_v40, %v552_v22  ;;  %v937_v40 = vand.u32 65535, %v3543_v23  ;;  %v2913_v22 = vld [vmem:[%s5431_s1 + $0x28] sm:$0xff] }
 0x20a   :  { %v3826_v63 = vsel %vm652_vm12, %v3302_v52, 128 }
 0x20b   :  { %889 = vmin.xlane.f32.xlu1 %v888_v62  ;;  %1928 = vmatpush.bf16.msra.mxu1 %v2875_v11  ;;  %v1106_v54 = vshra.s32 %v3826_v63, 16 }
 0x20c   :  { %2894 = vmatpush.bf16.msrb.mxu3 %v2875_v11  ;;  %v911_v11 = vcvt.s32.f32 %v909_v51 }
 0x20d   :  { %875 = vmin.xlane.f32.xlu0 %v874_v61  ;;  %v3844_v7 = vcvt.s32.f32 %v1106_v54 }
 0x20f   :  { %v554_v62 = vpop.xlane.xlu1 %553  ;;  %1929 = vmatpush.bf16.msra.mxu1 %v2874_v33 }
 0x210   :  { %v3800_v8 = vpop.xlane.xlu2 %1529  ;;  %v3810_v13 = vpop.xlane.xlu0 %913  ;;  %2895 = vmatpush.bf16.msrb.mxu3 %v2874_v33  ;;  %vm654_vm13 = vcmp.eq.f32.partialorder %v3510_v56, %v554_v62  ;;  %v2911_v56 = vld [vmem:[%s5431_s1 + $0x38] sm:$0xff]  ;;  %v2912_v62 = vld [vmem:[%s5431_s1 + $0x30] sm:$0xff] }
 0x211   :  { %5546 = vst [vmem:[#allocation36_spill] sm:$0xff] %v3800_v8  ;;  %vm1531_vm11 = vcmp.eq.f32.partialorder %v3512_v32, %v3800_v8  ;;  %vm915_vm14 = vcmp.eq.f32.partialorder %v3514_v60, %v3810_v13  ;;  %v2873_v32 = vld [vmem:[%s5434_s2] sm:$0xff]  ;;  %v3829_v30 = vsel %vm654_vm13, %v3302_v52, 128 }
 0x212   :  { %v3808_v19 = vsel %vm1531_vm11, %v1527_v44, inf  ;;  %v916_v60 = vsel %vm915_vm14, %v911_v11, inf }
 0x213   :  { %571 = vmin.xlane.f32.xlu1 %v3795_v9  ;;  %1930 = vmatpush.bf16.msra.mxu1 %v2873_v32 }
 0x214   :  { %2896 = vmatpush.bf16.msrb.mxu3 %v2873_v32  ;;  %v3849_v32 = vsel %vm653_vm0, %v3302_v52, 128 }
 0x218   :  { %v3821_v61 = vpop.xlane.xlu2 %899  ;;  %2897 = vmatpush.bf16.msra.mxu3 %v2911_v56  ;;  %v2914_v56 = vld [vmem:[%s5431_s1 + $0x20] sm:$0xff] }
 0x219   :  { %vm901_vm15 = vcmp.eq.f32.partialorder %v3532_v24, %v3821_v61  ;;  %v1134_v24 = vshra.s32 %v3829_v30, 16 }
 0x21a   :  { %v902_v29 = vsel %vm901_vm15, %v897_v6, inf  ;;  %v1120_v6 = vshra.s32 %v3849_v32, 16 }
 0x21b   :  { %903 = vmin.xlane.f32.xlu0 %v902_v29  ;;  %917 = vmin.xlane.f32.xlu1 %v916_v60  ;;  %v3846_v51 = vcvt.s32.f32 %v1134_v24  ;;  %v939_v60 = vcvt.s32.f32 %v937_v40  ;;  %v5551_v40 = vld [vmem:[#allocation18_spill] sm:$0xff] }
 0x21c   :  { %2898 = vmatpush.bf16.msra.mxu3 %v2912_v62  ;;  %v3865_v23 = vcvt.s32.f32 %v1120_v6  ;;  %5552 = vst [vmem:[#allocation18_spill] sm:$0xff] %v3882_v25 }
 0x21d   :  { %5547 = vst [vmem:[#allocation37_spill] sm:$0xff] %v3846_v51 }
 0x21e   :  { %5548 = vst [vmem:[#allocation38_spill] sm:$0xff] %v3865_v23 }
 0x220   :  { %v3837_v44 = vpop.xlane.xlu2 %927  ;;  %v3839_v33 = vpop.xlane.xlu0 %941  ;;  %2899 = vmatpush.bf16.msra.mxu3 %v2913_v22  ;;  %v2915_v22 = vld [vmem:[%s5431_s1 + $0x18] sm:$0xff] }
 0x221   :  { %vm943_vm1 = vcmp.eq.f32.partialorder %v3548_v10, %v3839_v33 }
 0x222   :  { %v944_v24 = vsel %vm943_vm1, %v939_v60, inf }
 0x223   :  { %1109 = vmin.xlane.f32.xlu0 %v3844_v7  ;;  %1137 = vmin.xlane.f32.xlu1 %v3846_v51 }
 0x224   :  { %2900 = vmatpush.bf16.msra.mxu3 %v2914_v56 }
 0x228   :  { %v556_v11 = vpop.xlane.xlu2 %555  ;;  %v558_v29 = vpop.xlane.xlu0 %557  ;;  %2901 = vmatpush.bf16.msra.mxu3 %v2915_v22  ;;  %v2916_v22 = vld [vmem:[%s5431_s1 + $0x10] sm:$0xff] }
 0x229   :  { %vm655_vm2 = vcmp.eq.f32.partialorder %v3559_v1, %v556_v11  ;;  %vm656_vm3 = vcmp.eq.f32.partialorder %v3562_v53, %v558_v29  ;;  %v560_v1 = vpop.xlane.xlu1 %559  ;;  %v923_v53 = vand.u32 65535, %v5551_v40  ;;  %v5554_v29 = vld [vmem:[#allocation20_spill] sm:$0xff]  ;;  %v1554_v40 = vshra.s32 %v3882_v25, 16 }
 0x22a   :  { %v3870_v54 = vsel %vm655_vm2, %v3302_v52, 128  ;;  %v3873_v10 = vsel %vm656_vm3, %v3302_v52, 128  ;;  %vm929_vm5 = vcmp.eq.f32.partialorder %v5554_v29, %v3837_v44  ;;  %v64_v29 = vld [vmem:[%s5432_s0 + $0x160] sm:$0xff] }
 0x22b   :  { %5549 = vst [vmem:[#allocation39_spill] sm:$0xff] %v3870_v54  ;;  %1123 = vmin.xlane.f32.xlu0 %v3865_v23  ;;  %945 = vmin.xlane.f32.xlu1 %v944_v24  ;;  %v1162_v62 = vshra.s32 %v3873_v10, 16  ;;  %v1148_v11 = vshra.s32 %v3870_v54, 16  ;;  %v925_v24 = vcvt.s32.f32 %v923_v53  ;;  %v65_v53 = vld [vmem:[%s5432_s0 + $0x168] sm:$0xff]  ;;  %v3912_v51 = vcvt.s32.f32 %v1554_v40  ;;  %v2918_v40 = vld [vmem:[%s5431_s1] sm:$0xff] }
 0x22c   :  { %5550 = vst [vmem:[#allocation40_spill] sm:$0xff] %v3873_v10  ;;  %2902 = vmatpush.bf16.msra.mxu3 %v2916_v22  ;;  %v139_v54 = vpack.c.bf16 %v65_v53, %v64_v29  ;;  %v5555_v10 = vld [vmem:[#allocation22_spill] sm:$0xff] }
 0x22d   :  { %v3885_v6 = vcvt.s32.f32 %v1162_v62  ;;  %v780_v62 = vcvt.f32.s32 %v3584_v16  ;;  %v3898_v8 = vcvt.s32.f32 %v1148_v11  ;;  %vm657_vm6 = vcmp.eq.f32.partialorder %v5555_v10, %v560_v1 }
 0x22e   :  { %v965_v11 = vand.u32 65535, %v5556_v3  ;;  %315 = vmatmul.bf16.gmra.mxu0 %v139_v54 }
 0x22f   :  { %5553 = vst [vmem:[#allocation41_spill] sm:$0xff] %v3885_v6  ;;  %1165 = vmin.xlane.f32.xlu2 %v3885_v6  ;;  %v930_v6 = vsel %vm929_vm5, %v925_v24, inf  ;;  %v781_v22 = vshll.u32 %v780_v62, 16  ;;  %v5557_v24 = vld [vmem:[#allocation10_spill] sm:$0xff] }
 0x230   :  { %v3891_v60 = vpop.xlane.xlu2 %955  ;;  %v764_v56 = vpop.xlane.xlu0 %763  ;;  %v1455_v29 = vand.u32 65535, %v5557_v24  ;;  %v5560_v24 = vld [vmem:[#allocation12_spill] sm:$0xff] }
 0x231   :  { %v765_v43 = vcvt.f32.s32 %v764_v56  ;;  %v2917_v56 = vld [vmem:[%s5431_s1 + $0x8] sm:$0xff] }
 0x232   :  { %2903 = vmatpush.bf16.msra.mxu3 %v2917_v56  ;;  %v1457_v62 = vcvt.s32.f32 %v1455_v29  ;;  %v1469_v29 = vand.u32 65535, %v5560_v24 }
 0x233   :  { %v768_v25 = vadd.s32 %v767_v45, %v765_v43  ;;  %931 = vmin.xlane.f32.xlu0 %v930_v6  ;;  %1151 = vmin.xlane.f32.xlu1 %v3898_v8  ;;  %v3916_v43 = vsel %vm657_vm6, %v3302_v52, 128  ;;  %v5559_v6 = vld [vmem:[#allocation11_spill] sm:$0xff]  ;;  %v967_v45 = vcvt.s32.f32 %v965_v11  ;;  %v5477_v11 = vmov 1.0|1.0  }
 0x234   :  { %v778_v16 = vpop.xlane.xlu1 %777  ;;  %5558 = vst [vmem:[#allocation20_spill] sm:$0xff] %v3916_v43  ;;  %vm1461_vm8 = vcmp.eq.f32.partialorder %v5559_v6, %v3660_v15  ;;  %v5565_v6 = vld [vmem:[#allocation13_spill] sm:$0xff] }
 0x235   :  { %v779_v23 = vcvt.f32.s32 %v778_v16  ;;  %vm1651_vm7 = vcmp.eq.s32.totalorder %v3302_v52, %v768_v25  ;;  %v5474_v25 = vmov 0.0   ;;  %vm1475_vm13 = vcmp.eq.f32.partialorder %v5565_v6, %v3672_v42 }
 0x236   :  { %2904 = vmatpush.bf16.msra.mxu3 %v2918_v40  ;;  %v2641_v53 = vsel %vm1651_vm7, 1.0, %v5474_v25 }
 0x237   :  { %v782_v10 = vadd.s32 %v781_v22, %v779_v23  ;;  %1557 = vmin.xlane.f32.xlu2 %v3912_v51  ;;  %v1176_v23 = vshra.s32 %v3916_v43, 16  ;;  %v1462_v22 = vsel %vm1461_vm8, %v1457_v62, inf  ;;  %v5563_v43 = vld [vmem:[#allocation16_spill] sm:$0xff]  ;;  %v361_v62 = vpop.f32.mrf.mxu3 }
 0x238   :  { %v3920_v54 = vpop.xlane.xlu0 %969  ;;  %v562_v1 = vpop.xlane.xlu2 %561 }
 0x239   :  { %vm1652_vm9 = vcmp.eq.s32.totalorder %v3302_v52, %v782_v10  ;;  %vm971_vm10 = vcmp.eq.f32.partialorder %v3599_v31, %v3920_v54  ;;  %v794_v10 = vcvt.f32.s32 %v3606_v36  ;;  %v3942_v40 = vcvt.s32.f32 %v1176_v23  ;;  %v5566_v36 = vld [vmem:[#allocation24_spill] sm:$0xff] }
 0x23a   :  { %v2642_v16 = vsel %vm1652_vm9, 1.0, %v5474_v25  ;;  %vm2737_vm11 = vmpackc.low %vm1652_vm9, %vm1651_vm7  ;;  %v972_v3 = vsel %vm971_vm10, %v967_v45, inf  ;;  %v5562_v45 = vld [vmem:[#allocation23_spill] sm:$0xff]  ;;  %vm658_vm14 = vcmp.eq.f32.partialorder %v3597_v26, %v562_v1  ;;  %vm957_vm15 = vcmp.eq.f32.partialorder %v5566_v36, %v3891_v60 }
 0x23b   :  { %2738 = vmatmul.msk.bf16.vlgmr.msra.gmra.mxu1 %vm2737_vm11, %v5477_v11  ;;  %v2527_v56 = vadd.f32 %v2642_v16, %v2641_v53  ;;  %2802 = vmatmul.msk.bf16.vlgmr.msra.gmra.mxu2 %vm2737_vm11, %v5477_v11  ;;  %5561 = vst [vmem:[#allocation22_spill] sm:$0xff] %v3942_v40  ;;  %v951_v25 = vand.u32 65535, %v5562_v45  ;;  %v5564_v53 = vld [vmem:[#allocation6_spill] sm:$0xff]  ;;  %v1471_v23 = vcvt.s32.f32 %v1469_v29  ;;  %v795_v24 = vshll.u32 %v794_v10, 16 }
 0x23c   :  { %1463 = vmin.xlane.f32.xlu0 %v1462_v22  ;;  %973 = vmin.xlane.f32.xlu1 %v972_v3  ;;  %v3938_v31 = vpop.xlane.xlu1 %621  ;;  %vm683_vm12 = vcmp.eq.f32.partialorder %v5564_v53, %v5563_v43  ;;  %v979_v22 = vand.u32 65535, %v3602_v21  ;;  %v808_v43 = vcvt.f32.s32 %v3613_v18  ;;  %v3961_v26 = vsel %vm658_vm14, %v3302_v52, 128 }
 0x23d   :  { %v953_v53 = vcvt.s32.f32 %v951_v25  ;;  %v3958_v11 = vsel %vm683_vm12, %v3302_v52, 128  ;;  %v1476_v6 = vsel %vm1475_vm13, %v1471_v23, inf  ;;  %5567 = vst [vmem:[#allocation25_spill] sm:$0xff] %v3961_v26  ;;  %v1190_v23 = vshra.s32 %v3961_v26, 16 }
 0x23e   :  { %v981_v29 = vcvt.s32.f32 %v979_v22  ;;  %v809_v10 = vshll.u32 %v808_v43, 16 }
 0x23f   :  { %1179 = vmin.xlane.f32.xlu2 %v3942_v40  ;;  %v958_v40 = vsel %vm957_vm15, %v953_v53, inf  ;;  %v363_v22 = vpop.f32.mrf.mxu3 }
 0x240   :  { %v792_v16 = vpop.xlane.xlu0 %791  ;;  %v3951_v3 = vpop.xlane.xlu2 %983 }
 0x241   :  { %v793_v45 = vcvt.f32.s32 %v792_v16  ;;  %vm985_vm0 = vcmp.eq.f32.partialorder %v3620_v37, %v3951_v3  ;;  %v5568_v16 = vmov 0.0  }
 0x242   :  { %v986_v25 = vsel %vm985_vm0, %v981_v29, inf }
 0x243   :  { %v796_v1 = vadd.s32 %v795_v24, %v793_v45  ;;  %v1540_v24 = vshra.s32 %v3958_v11, 16 }
 0x244   :  { %959 = vmin.xlane.f32.xlu0 %v958_v40  ;;  %1477 = vmin.xlane.f32.xlu1 %v1476_v6  ;;  %v806_v21 = vpop.xlane.xlu1 %805 }
 0x245   :  { %v807_v18 = vcvt.f32.s32 %v806_v21  ;;  %vm1653_vm1 = vcmp.eq.s32.totalorder %v3302_v52, %v796_v1  ;;  %v3981_v21 = vcvt.s32.f32 %v1190_v23  ;;  %v3983_v29 = vcvt.s32.f32 %v1540_v24  ;;  %v5574_v1 = vld [vmem:[#allocation27_spill] sm:$0xff]  ;;  %v5575_v24 = vld [vmem:[#allocation28_spill] sm:$0xff] }
 0x246   :  { %v2643_v36 = vsel %vm1653_vm1, 1.0, %v5568_v16 }
 0x247   :  { %v810_v45 = vadd.s32 %v809_v10, %v807_v18  ;;  %987 = vmin.xlane.f32.xlu2 %v986_v25  ;;  %v2528_v37 = vadd.f32 %v2643_v36, %v2527_v56  ;;  %5571 = vst [vmem:[#allocation12_spill] sm:$0xff] %v3981_v21  ;;  %v5572_v56 = vmov 1.0|1.0   ;;  %v429_v18 = vmul.f32 2.0, %v363_v22 }
 0x248   :  { %v3971_v40 = vpop.xlane.xlu0 %997  ;;  %v564_v53 = vpop.xlane.xlu2 %563  ;;  %v993_v36 = vand.u32 65535, %v5574_v1  ;;  %v822_v22 = vcvt.f32.s32 %v3647_v55  ;;  %v5577_v1 = vld [vmem:[#allocation29_spill] sm:$0xff] }
 0x249   :  { %5569 = vst [vmem:[#allocation10_spill] sm:$0xff] %v3971_v40  ;;  %vm659_vm2 = vcmp.eq.f32.partialorder %v3631_v48, %v564_v53  ;;  %vm1654_vm3 = vcmp.eq.s32.totalorder %v3302_v52, %v810_v45  ;;  %vm999_vm5 = vcmp.eq.f32.partialorder %v5575_v24, %v3971_v40  ;;  %v3997_v45 = vsub.f32 %v3792_v41, %v429_v18 }
 0x24a   :  { %v3976_v43 = vsel %vm659_vm2, %v3302_v52, 128  ;;  %v2644_v6 = vsel %vm1654_vm3, 1.0, %v5568_v16  ;;  %vm2739_vm4 = vmpackc.low %vm1654_vm3, %vm1653_vm1  ;;  %v836_v53 = vcvt.f32.s32 %v3658_v0  ;;  %v5578_v0 = vld [vmem:[#allocation30_spill] sm:$0xff] }
 0x24b   :  { %5570 = vst [vmem:[#allocation11_spill] sm:$0xff] %v3976_v43  ;;  %2740 = vmatmul.msk.bf16.gmra.mxu1 %vm2739_vm4, %v5572_v56  ;;  %v2529_v10 = vadd.f32 %v2644_v6, %v2528_v37  ;;  %2804 = vmatmul.msk.bf16.gmra.mxu2 %vm2739_vm4, %v5572_v56  ;;  %v1204_v48 = vshra.s32 %v3976_v43, 16  ;;  %v995_v37 = vcvt.s32.f32 %v993_v36  ;;  %v428_v43 = vmul.f32 2.0, %v361_v62 }
 0x24c   :  { %1193 = vmin.xlane.f32.xlu0 %v3981_v21  ;;  %1543 = vmin.xlane.f32.xlu1 %v3983_v29  ;;  %5576 = vst [vmem:[#allocation16_spill] sm:$0xff] %v3997_v45  ;;  %v837_v26 = vshll.u32 %v836_v53, 16  ;;  %v823_v62 = vshll.u32 %v822_v22, 16 }
 0x24d   :  { %v3990_v25 = vcvt.s32.f32 %v1204_v48  ;;  %v1000_v6 = vsel %vm999_vm5, %v995_v37, inf  ;;  %v4007_v36 = vsub.f32 %v3792_v41, %v428_v43 }
 0x24f   :  { %5573 = vst [vmem:[#allocation23_spill] sm:$0xff] %v3990_v25  ;;  %1207 = vmin.xlane.f32.xlu2 %v3990_v25  ;;  %v1007_v25 = vand.u32 65535, %v5577_v1 }
 0x250   :  { %v566_v23 = vpop.xlane.xlu0 %565  ;;  %v4002_v48 = vpop.xlane.xlu2 %1011 }
 0x251   :  { %vm660_vm6 = vcmp.eq.f32.partialorder %v3652_v38, %v566_v23  ;;  %vm1013_vm7 = vcmp.eq.f32.partialorder %v5578_v0, %v4002_v48  ;;  %v1009_v55 = vcvt.s32.f32 %v1007_v25  ;;  %v1021_v0 = vand.u32 65535, %v3688_v27 }
 0x252   :  { %v4012_v40 = vsel %vm660_vm6, %v3302_v52, 128 }
 0x253   :  { %5579 = vst [vmem:[#allocation6_spill] sm:$0xff] %v4012_v40  ;;  %v1014_v53 = vsel %vm1013_vm7, %v1009_v55, inf }
 0x254   :  { %1001 = vmin.xlane.f32.xlu0 %v1000_v6  ;;  %625 = vmin.xlane.f32.xlu1 %v3997_v45  ;;  %v301_v45 = vpop.f32.mrf.mxu0 }
 0x255   :  { %v404_v38 = vmul.f32 2.0, %v301_v45 }
 0x256   :  { %v834_v21 = vpop.xlane.xlu1 %833 }
 0x257   :  { %v835_v24 = vcvt.f32.s32 %v834_v21  ;;  %v1218_v21 = vshra.s32 %v4012_v40, 16  ;;  %v4025_v45 = vsub.f32 %v3792_v41, %v404_v38  ;;  %v5583_v38 = vld [vmem:[#allocation15_spill] sm:$0xff] }
 0x258   :  { %v820_v18 = vpop.xlane.xlu0 %819  ;;  %vm1489_vm11 = vcmp.eq.f32.partialorder %v5583_v38, %v3697_v12 }
 0x259   :  { %v838_v37 = vadd.s32 %v837_v26, %v835_v24  ;;  %v821_v6 = vcvt.f32.s32 %v820_v18  ;;  %v4027_v18 = vcvt.s32.f32 %v1218_v21 }
 0x25b   :  { %v824_v1 = vadd.s32 %v823_v62, %v821_v6  ;;  %vm1656_vm9 = vcmp.eq.s32.totalorder %v3302_v52, %v838_v37  ;;  %5580 = vst [vmem:[#allocation13_spill] sm:$0xff] %v4027_v18  ;;  %v1049_v62 = vand.u32 65535, %v3683_v47  ;;  %v5582_v37 = vld [vmem:[#allocation14_spill] sm:$0xff] }
 0x25c   :  { %623 = vmin.xlane.f32.xlu0 %v4007_v36  ;;  %1015 = vmin.xlane.f32.xlu1 %v1014_v53  ;;  %v2646_v23 = vsel %vm1656_vm9, 1.0, %v5568_v16  ;;  %v1483_v6 = vand.u32 65535, %v5582_v37 }
 0x25d   :  { %vm1655_vm8 = vcmp.eq.s32.totalorder %v3302_v52, %v824_v1  ;;  %v303_v1 = vpop.f32.mrf.mxu0  ;;  %v1051_v47 = vcvt.s32.f32 %v1049_v62 }
 0x25e   :  { %v4017_v43 = vpop.xlane.xlu1 %569  ;;  %v2645_v26 = vsel %vm1655_vm8, 1.0, %v5568_v16  ;;  %vm2741_vm10 = vmpackc.low %vm1656_vm9, %vm1655_vm8  ;;  %v1485_v21 = vcvt.s32.f32 %v1483_v6  ;;  %v405_v38 = vmul.f32 2.0, %v303_v1  ;;  %v5585_v6 = vld [vmem:[#allocation8_spill] sm:$0xff] }
 0x25f   :  { %2742 = vmatmul.msk.bf16.gmra.mxu1 %vm2741_vm10, %v5572_v56  ;;  %v2530_v25 = vadd.f32 %v2645_v26, %v2529_v10  ;;  %2806 = vmatmul.msk.bf16.gmra.mxu2 %vm2741_vm10, %v5572_v56  ;;  %v1023_v26 = vcvt.s32.f32 %v1021_v0  ;;  %v850_v0 = vcvt.f32.s32 %v3699_v5 }
 0x260   :  { %v568_v22 = vpop.xlane.xlu0 %567  ;;  %v4055_v5 = vsub.f32 %v3792_v41, %v405_v38 }
 0x261   :  { %v2531_v24 = vadd.f32 %v2646_v23, %v2530_v25  ;;  %v864_v25 = vcvt.f32.s32 %v3725_v46  ;;  %v1490_v23 = vsel %vm1489_vm11, %v1485_v21, inf }
 0x262   :  { %v4033_v10 = vpop.xlane.xlu2 %1053 }
 0x263   :  { %5581 = vst [vmem:[#allocation24_spill] sm:$0xff] %v4033_v10  ;;  %vm1055_vm12 = vcmp.eq.f32.partialorder %v3691_v4, %v4033_v10  ;;  %v5584_v4 = vld [vmem:[#allocation19_spill] sm:$0xff]  ;;  %v865_v10 = vshll.u32 %v864_v25, 16 }
 0x264   :  { %1221 = vmin.xlane.f32.xlu0 %v4027_v18  ;;  %575 = vmin.xlane.f32.xlu1 %v4025_v45  ;;  %v1056_v37 = vsel %vm1055_vm12, %v1051_v47, inf  ;;  %v1035_v18 = vand.u32 65535, %v3680_v28  ;;  %vm686_vm14 = vcmp.eq.f32.partialorder %v5585_v6, %v5584_v4  ;;  %v851_v47 = vshll.u32 %v850_v0, 16 }
 0x265   :  { %v306_v62 = vpop.f32.mrf.mxu0  ;;  %v4058_v1 = vsel %vm686_vm14, %v3302_v52, 128 }
 0x266   :  { %v4036_v55 = vpop.xlane.xlu1 %1039  ;;  %v1037_v21 = vcvt.s32.f32 %v1035_v18 }
 0x267   :  { %vm1041_vm0 = vcmp.eq.f32.partialorder %v3703_v35, %v4036_v55  ;;  %v1063_v35 = vand.u32 65535, %v3744_v39  ;;  %v5588_v39 = vld [vmem:[#allocation7_spill] sm:$0xff] }
 0x268   :  { %v4038_v53 = vpop.xlane.xlu0 %1025 }
 0x269   :  { %vm1027_vm13 = vcmp.eq.f32.partialorder %v3706_v14, %v4038_v53  ;;  %v1065_v6 = vcvt.s32.f32 %v1063_v35 }
 0x26a   :  { %v1028_v27 = vsel %vm1027_vm13, %v1023_v26, inf  ;;  %v5586_v26 = vld [vmem:[#allocation32_spill] sm:$0xff] }
 0x26b   :  { %1029 = vmin.xlane.f32.xlu2 %v1028_v27  ;;  %vm661_vm15 = vcmp.eq.f32.partialorder %v5586_v26, %v568_v22  ;;  %v1582_v22 = vshra.s32 %v4058_v1, 16 }
 0x26c   :  { %1491 = vmin.xlane.f32.xlu0 %v1490_v23  ;;  %1057 = vmin.xlane.f32.xlu1 %v1056_v37  ;;  %v4061_v25 = vsel %vm661_vm15, %v3302_v52, 128  ;;  %v1042_v23 = vsel %vm1041_vm0, %v1037_v21, inf }
 0x26d   :  { %v1232_v37 = vshra.s32 %v4061_v25, 16  ;;  %v4082_v26 = vcvt.s32.f32 %v1582_v22 }
 0x26e   :  { %v862_v40 = vpop.xlane.xlu1 %861 }
 0x26f   :  { %v863_v14 = vcvt.f32.s32 %v862_v40  ;;  %v4084_v21 = vcvt.s32.f32 %v1232_v37 }
 0x270   :  { %v848_v46 = vpop.xlane.xlu0 %847 }
 0x271   :  { %v866_v27 = vadd.s32 %v865_v10, %v863_v14  ;;  %v849_v28 = vcvt.f32.s32 %v848_v46  ;;  %v308_v46 = vpop.f32.mrf.mxu0 }
 0x273   :  { %v852_v40 = vadd.s32 %v851_v47, %v849_v28  ;;  %577 = vmin.xlane.f32.xlu2 %v4055_v5  ;;  %vm1658_vm2 = vcmp.eq.s32.totalorder %v3302_v52, %v866_v27  ;;  %v892_v27 = vcvt.f32.s32 %v3756_v2  ;;  %v406_v28 = vmul.f32 2.0, %v306_v62  ;;  %v5590_v2 = vld [vmem:[#allocation31_spill] sm:$0xff] }
 0x274   :  { %1043 = vmin.xlane.f32.xlu0 %v1042_v23  ;;  %1505 = vmin.xlane.f32.xlu1 %v3714_v17  ;;  %v5587_v17 = vld [vmem:[#allocation17_spill] sm:$0xff]  ;;  %v2648_v38 = vsel %vm1658_vm2, 1.0, %v5568_v16  ;;  %vm662_vm7 = vcmp.eq.f32.partialorder %v5590_v2, %v4017_v43 }
 0x275   :  { %vm1657_vm1 = vcmp.eq.s32.totalorder %v3302_v52, %v852_v40  ;;  %vm685_vm4 = vcmp.eq.f32.partialorder %v5588_v39, %v5587_v17  ;;  %v407_v40 = vmul.f32 2.0, %v308_v46  ;;  %v893_v22 = vshll.u32 %v892_v27, 16 }
 0x276   :  { %v4069_v18 = vpop.xlane.xlu1 %1081  ;;  %v2647_v10 = vsel %vm1657_vm1, 1.0, %v5568_v16  ;;  %vm2743_vm3 = vmpackc.low %vm1658_vm2, %vm1657_vm1  ;;  %v4087_v47 = vsel %vm685_vm4, %v3302_v52, 128  ;;  %v4095_v37 = vsub.f32 %v3792_v41, %v406_v28 }
 0x277   :  { %2744 = vmatmul.msk.bf16.gmra.mxu1 %vm2743_vm3, %v5572_v56  ;;  %v2532_v0 = vadd.f32 %v2647_v10, %v2531_v24  ;;  %2808 = vmatmul.msk.bf16.gmra.mxu2 %vm2743_vm3, %v5572_v56  ;;  %v1568_v35 = vshra.s32 %v4087_v47, 16  ;;  %v4102_v17 = vsub.f32 %v3792_v41, %v407_v40  ;;  %vm1083_vm11 = vcmp.eq.f32.partialorder %v3762_v49, %v4069_v18 }
 0x278   :  { %v4078_v4 = vpop.xlane.xlu0 %1067 }
 0x279   :  { %v2533_v14 = vadd.f32 %v2648_v38, %v2532_v0  ;;  %vm1069_vm5 = vcmp.eq.f32.partialorder %v3767_v50, %v4078_v4  ;;  %v878_v50 = vcvt.f32.s32 %v3758_v59  ;;  %v5589_v0 = vld [vmem:[#allocation26_spill] sm:$0xff] }
 0x27a   :  { %v1070_v24 = vsel %vm1069_vm5, %v1065_v6, inf  ;;  %vm688_vm6 = vcmp.eq.f32.partialorder %v5589_v0, %v3938_v31  ;;  %v4104_v6 = vcvt.s32.f32 %v1568_v35  ;;  %v1077_v31 = vand.u32 65535, %v3734_v34 }
 0x27b   :  { %1585 = vmin.xlane.f32.xlu2 %v4082_v26  ;;  %v879_v39 = vshll.u32 %v878_v50, 16  ;;  %v4107_v46 = vsel %vm688_vm6, %v3302_v52, 128 }
 0x27c   :  { %1235 = vmin.xlane.f32.xlu0 %v4084_v21  ;;  %1071 = vmin.xlane.f32.xlu1 %v1070_v24  ;;  %v4110_v24 = vsel %vm662_vm7, %v3302_v52, 128  ;;  %v1610_v50 = vshra.s32 %v4107_v46, 16  ;;  %v1079_v35 = vcvt.s32.f32 %v1077_v31 }
 0x27d   :  { %v1246_v40 = vshra.s32 %v4110_v24, 16 }
 0x27e   :  { %v890_v23 = vpop.xlane.xlu1 %889  ;;  %v1084_v2 = vsel %vm1083_vm11, %v1079_v35, inf }
 0x27f   :  { %v891_v10 = vcvt.f32.s32 %v890_v23  ;;  %v4128_v0 = vcvt.s32.f32 %v1246_v40  ;;  %v311_v40 = vpop.f32.mrf.mxu0 }
 0x280   :  { %v876_v62 = vpop.xlane.xlu0 %875 }
 0x281   :  { %v894_v59 = vadd.s32 %v893_v22, %v891_v10  ;;  %v877_v38 = vcvt.f32.s32 %v876_v62  ;;  %v4126_v10 = vpop.xlane.xlu2 %573  ;;  %v4130_v62 = vcvt.s32.f32 %v1610_v50 }
 0x283   :  { %v880_v27 = vadd.s32 %v879_v39, %v877_v38  ;;  %579 = vmin.xlane.f32.xlu2 %v4095_v37  ;;  %vm1660_vm9 = vcmp.eq.s32.totalorder %v3302_v52, %v894_v59  ;;  %v920_v39 = vcvt.f32.s32 %v3810_v13  ;;  %v1105_v13 = vand.u32 65535, %v3826_v63  ;;  %v5593_v63 = vld [vmem:[#allocation9_spill] sm:$0xff] }
 0x284   :  { %1571 = vmin.xlane.f32.xlu1 %v4104_v6  ;;  %581 = vmin.xlane.f32.xlu0 %v4102_v17  ;;  %v2650_v34 = vsel %vm1660_vm9, 1.0, %v5568_v16 }
 0x285   :  { %vm1659_vm8 = vcmp.eq.s32.totalorder %v3302_v52, %v880_v27  ;;  %v921_v38 = vshll.u32 %v920_v39, 16 }
 0x286   :  { %v572_v43 = vpop.xlane.xlu1 %571  ;;  %v2649_v28 = vsel %vm1659_vm8, 1.0, %v5568_v16  ;;  %vm2745_vm10 = vmpackc.low %vm1660_vm9, %vm1659_vm8 }
 0x287   :  { %2746 = vmatmul.msk.bf16.gmra.mxu1 %vm2745_vm10, %v5572_v56  ;;  %v2534_v23 = vadd.f32 %v2649_v28, %v2533_v14  ;;  %2810 = vmatmul.msk.bf16.gmra.mxu2 %vm2745_vm10, %v5572_v56  ;;  %v906_v14 = vcvt.f32.s32 %v3821_v61  ;;  %vm663_vm12 = vcmp.eq.f32.partialorder %v3795_v9, %v572_v43 }
 0x288   :  { %v4139_v61 = vsel %vm663_vm12, %v3302_v52, 128 }
 0x289   :  { %v2535_v22 = vadd.f32 %v2650_v34, %v2534_v23  ;;  %v907_v27 = vshll.u32 %v906_v14, 16  ;;  %5591 = vst [vmem:[#allocation27_spill] sm:$0xff] %v4139_v61  ;;  %v1091_v34 = vand.u32 65535, %v3738_v57  ;;  %v4145_v35 = vpop.xlane.xlu2 %1095  ;;  %v1260_v57 = vshra.s32 %v4139_v61, 16 }
 0x28a   :  { %vm1097_vm2 = vcmp.eq.f32.partialorder %v3752_v20, %v4145_v35 }
 0x28b   :  { %1085 = vmin.xlane.f32.xlu2 %v1084_v2  ;;  %v5592_v2 = vld [vmem:[#allocation21_spill] sm:$0xff] }
 0x28c   :  { %1249 = vmin.xlane.f32.xlu1 %v4128_v0  ;;  %1613 = vmin.xlane.f32.xlu0 %v4130_v62  ;;  %vm687_vm15 = vcmp.eq.f32.partialorder %v5593_v63, %v5592_v2  ;;  %v1133_v2 = vand.u32 65535, %v3829_v30  ;;  %v934_v63 = vcvt.f32.s32 %v3837_v44  ;;  %v5596_v44 = vld [vmem:[#allocation34_spill] sm:$0xff] }
 0x28d   :  { %vm664_vm4 = vcmp.eq.f32.partialorder %v5596_v44, %v4126_v10 }
 0x28e   :  { %v904_v49 = vpop.xlane.xlu0 %903  ;;  %v918_v59 = vpop.xlane.xlu1 %917  ;;  %v1135_v30 = vcvt.s32.f32 %v1133_v2 }
 0x28f   :  { %v905_v31 = vcvt.f32.s32 %v904_v49  ;;  %v919_v28 = vcvt.f32.s32 %v918_v59  ;;  %v1107_v49 = vcvt.s32.f32 %v1105_v13 }
 0x291   :  { %v908_v50 = vadd.s32 %v907_v27, %v905_v31  ;;  %v922_v23 = vadd.s32 %v921_v38, %v919_v28  ;;  %v408_v38 = vmul.f32 2.0, %v311_v40  ;;  %v313_v27 = vpop.f32.mrf.mxu0  ;;  %v4167_v31 = vsel %vm687_vm15, %v3302_v52, 128 }
 0x292   :  { %v4169_v28 = vcvt.s32.f32 %v1260_v57  ;;  %v1596_v40 = vshra.s32 %v4167_v31, 16 }
 0x293   :  { %1533 = vmin.xlane.f32.xlu2 %v3808_v19  ;;  %vm1661_vm13 = vcmp.eq.s32.totalorder %v3302_v52, %v908_v50  ;;  %vm1662_vm14 = vcmp.eq.s32.totalorder %v3302_v52, %v922_v23  ;;  %v4173_v20 = vsub.f32 %v3792_v41, %v408_v38 }
 0x294   :  { %1519 = vmin.xlane.f32.xlu1 %v3772_v58  ;;  %v2651_v9 = vsel %vm1661_vm13, 1.0, %v5568_v16  ;;  %v2652_v19 = vsel %vm1662_vm14, 1.0, %v5568_v16  ;;  %vm2747_vm0 = vmpackc.low %vm1662_vm14, %vm1661_vm13  ;;  %5594 = vst [vmem:[#allocation28_spill] sm:$0xff] %v4169_v28 }
 0x295   :  { %v2536_v43 = vadd.f32 %v2651_v9, %v2535_v22  ;;  %v1093_v22 = vcvt.s32.f32 %v1091_v34  ;;  %v948_v9 = vcvt.f32.s32 %v3839_v33  ;;  %v5595_v33 = vld [vmem:[#allocation37_spill] sm:$0xff] }
 0x296   :  { %v4151_v39 = vpop.xlane.xlu0 %1109  ;;  %v4153_v14 = vpop.xlane.xlu1 %1137 }
 0x297   :  { %2748 = vmatmul.msk.bf16.gmra.mxu1 %vm2747_vm0, %v5572_v56  ;;  %v2537_v59 = vadd.f32 %v2652_v19, %v2536_v43  ;;  %2812 = vmatmul.msk.bf16.gmra.mxu2 %vm2747_vm0, %v5572_v56  ;;  %vm1111_vm1 = vcmp.eq.f32.partialorder %v3844_v7, %v4151_v39  ;;  %v1098_v50 = vsel %vm1097_vm2, %v1093_v22, inf  ;;  %v409_v7 = vmul.f32 2.0, %v313_v27 }
 0x298   :  { %v1112_v58 = vsel %vm1111_vm1, %v1107_v49, inf  ;;  %v4183_v43 = vcvt.s32.f32 %v1596_v40  ;;  %v949_v57 = vshll.u32 %v948_v9, 16  ;;  %vm1139_vm3 = vcmp.eq.f32.partialorder %v5595_v33, %v4153_v14 }
 0x299   :  { %1113 = vmin.xlane.f32.xlu0 %v1112_v58  ;;  %v4179_v34 = vsub.f32 %v3792_v41, %v409_v7  ;;  %v1119_v41 = vand.u32 65535, %v3849_v32  ;;  %v935_v58 = vshll.u32 %v934_v63, 16  ;;  %v5597_v7 = vld [vmem:[#allocation38_spill] sm:$0xff]  ;;  %v1140_v40 = vsel %vm1139_vm3, %v1135_v30, inf }
 0x29a   :  { %v4201_v9 = vsel %vm664_vm4, %v3302_v52, 128 }
 0x29b   :  { %1099 = vmin.xlane.f32.xlu2 %v1098_v50  ;;  %5598 = vst [vmem:[#allocation29_spill] sm:$0xff] %v4201_v9 }
 0x29c   :  { %1263 = vmin.xlane.f32.xlu1 %v4169_v28  ;;  %v5600_v28 = vld [vmem:[#allocation18_spill] sm:$0xff] }
 0x29d   :  { %v1553_v2 = vand.u32 65535, %v5600_v28 }
 0x29e   :  { %v4176_v23 = vpop.xlane.xlu0 %1123  ;;  %v946_v13 = vpop.xlane.xlu1 %945 }
 0x29f   :  { %v947_v49 = vcvt.f32.s32 %v946_v13  ;;  %vm1125_vm5 = vcmp.eq.f32.partialorder %v5597_v7, %v4176_v23  ;;  %v1121_v13 = vcvt.s32.f32 %v1119_v41  ;;  %v1274_v41 = vshra.s32 %v4201_v9, 16  ;;  %v5602_v7 = vld [vmem:[#allocation40_spill] sm:$0xff] }
 0x2a1   :  { %583 = vmin.xlane.f32.xlu0 %v4173_v20  ;;  %v950_v27 = vadd.s32 %v949_v57, %v947_v49  ;;  %v1126_v33 = vsel %vm1125_vm5, %v1121_v13, inf  ;;  %v1555_v57 = vcvt.s32.f32 %v1553_v2  ;;  %v962_v2 = vcvt.f32.s32 %v3891_v60 }
 0x2a2   :  { %v4187_v19 = vpop.xlane.xlu2 %1165 }
 0x2a3   :  { %1599 = vmin.xlane.f32.xlu2 %v4183_v43  ;;  %vm1664_vm7 = vcmp.eq.s32.totalorder %v3302_v52, %v950_v27  ;;  %v4215_v27 = vcvt.s32.f32 %v1274_v41  ;;  %v5605_v41 = vld [vmem:[#allocation41_spill] sm:$0xff] }
 0x2a4   :  { %585 = vmin.xlane.f32.xlu1 %v4179_v34  ;;  %v2654_v28 = vsel %vm1664_vm7, 1.0, %v5568_v16  ;;  %vm1167_vm10 = vcmp.eq.f32.partialorder %v5605_v41, %v4187_v19 }
 0x2a5   :  { %5601 = vst [vmem:[#allocation14_spill] sm:$0xff] %v4215_v27 }
 0x2a6   :  { %v932_v22 = vpop.xlane.xlu0 %931  ;;  %v4194_v38 = vpop.xlane.xlu1 %1151 }
 0x2a7   :  { %v933_v50 = vcvt.f32.s32 %v932_v22  ;;  %vm1153_vm11 = vcmp.eq.f32.partialorder %v3898_v8, %v4194_v38  ;;  %v1539_v8 = vand.u32 65535, %v3958_v11 }
 0x2a9   :  { %v936_v32 = vadd.s32 %v935_v58, %v933_v50  ;;  %1141 = vmin.xlane.f32.xlu0 %v1140_v40  ;;  %v1466_v50 = vcvt.f32.s32 %v3660_v15  ;;  %v1161_v40 = vand.u32 65535, %v5602_v7 }
 0x2aa   :  { %v4203_v63 = vpop.xlane.xlu2 %1557 }
 0x2ab   :  { %5599 = vst [vmem:[#allocation30_spill] sm:$0xff] %v4203_v63  ;;  %1127 = vmin.xlane.f32.xlu2 %v1126_v33  ;;  %vm1663_vm6 = vcmp.eq.s32.totalorder %v3302_v52, %v936_v32  ;;  %vm1559_vm9 = vcmp.eq.f32.partialorder %v3912_v51, %v4203_v63  ;;  %v976_v51 = vcvt.f32.s32 %v3920_v54  ;;  %v5604_v32 = vld [vmem:[#allocation39_spill] sm:$0xff]  ;;  %v1467_v15 = vshll.u32 %v1466_v50, 16 }
 0x2ac   :  { %v2653_v10 = vsel %vm1663_vm6, 1.0, %v5568_v16  ;;  %vm2749_vm8 = vmpackc.low %vm1664_vm7, %vm1663_vm6  ;;  %v1560_v44 = vsel %vm1559_vm9, %v1555_v57, inf  ;;  %v1147_v33 = vand.u32 65535, %v5604_v32  ;;  %v1163_v57 = vcvt.s32.f32 %v1161_v40 }
 0x2ad   :  { %2750 = vmatmul.msk.bf16.gmra.mxu1 %vm2749_vm8, %v5572_v56  ;;  %v2538_v49 = vadd.f32 %v2653_v10, %v2537_v59  ;;  %2814 = vmatmul.msk.bf16.gmra.mxu2 %vm2749_vm8, %v5572_v56  ;;  %v1480_v59 = vcvt.f32.s32 %v3672_v42  ;;  %v977_v42 = vshll.u32 %v976_v51, 16  ;;  %v990_v54 = vcvt.f32.s32 %v3951_v3 }
 0x2ae   :  { %v1149_v9 = vcvt.s32.f32 %v1147_v33  ;;  %v5608_v33 = vmov 0 }
 0x2af   :  { %v2539_v58 = vadd.f32 %v2654_v28, %v2538_v49  ;;  %v1464_v22 = vpop.xlane.xlu0 %1463  ;;  %v974_v30 = vpop.xlane.xlu1 %973  ;;  %v1481_v28 = vshll.u32 %v1480_v59, 16  ;;  %v991_v3 = vshll.u32 %v990_v54, 16 }
 0x2b0   :  { %v975_v10 = vcvt.f32.s32 %v974_v30  ;;  %v1465_v49 = vcvt.f32.s32 %v1464_v22  ;;  %v1154_v51 = vsel %vm1153_vm11, %v1149_v9, inf }
 0x2b1   :  { %1561 = vmin.xlane.f32.xlu0 %v1560_v44  ;;  %v963_v44 = vshll.u32 %v962_v2, 16 }
 0x2b2   :  { %v4221_v13 = vpop.xlane.xlu2 %1179  ;;  %v978_v60 = vadd.s32 %v977_v42, %v975_v10  ;;  %v4231_v61 = vadd.s32 %v1467_v15, %v1465_v49 }
 0x2b3   :  { %5603 = vst [vmem:[#allocation15_spill] sm:$0xff] %v4221_v13  ;;  %1277 = vmin.xlane.f32.xlu2 %v4215_v27  ;;  %v1168_v27 = vsel %vm1167_vm10, %v1163_v57, inf }
 0x2b4   :  { %5606 = vst [vmem:[#allocation19_spill] sm:$0xff] %v4231_v61  ;;  %vm1666_vm13 = vcmp.eq.s32.totalorder %v3302_v52, %v978_v60  ;;  %vm1701_vm0 = vcmp.eq.s32.totalorder %v3302_v52, %v4231_v61 }
 0x2b5   :  { %v2656_v10 = vsel %vm1666_vm13, 1.0, %v5568_v16 }
 0x2b7   :  { %v960_v7 = vpop.xlane.xlu0 %959  ;;  %v1478_v63 = vpop.xlane.xlu1 %1477 }
 0x2b8   :  { %v961_v32 = vcvt.f32.s32 %v960_v7  ;;  %v1479_v30 = vcvt.f32.s32 %v1478_v63  ;;  %v1932_v22 = vpop.f32.mrf.mxu1  ;;  %v5611_v7 = vld [vmem:[#allocation10_spill] sm:$0xff] }
 0x2b9   :  { %1169 = vmin.xlane.f32.xlu0 %v1168_v27  ;;  %v1004_v60 = vcvt.f32.s32 %v5611_v7 }
 0x2ba   :  { %v964_v50 = vadd.s32 %v963_v44, %v961_v32  ;;  %v4233_v59 = vadd.s32 %v1481_v28, %v1479_v30  ;;  %v988_v40 = vpop.xlane.xlu2 %987  ;;  %v1541_v28 = vcvt.s32.f32 %v1539_v8  ;;  %v2919_v30 = vld [vmem:[%s5432_s0] sm:$0xff]  ;;  %v2920_v8 = vld [vmem:[%s5432_s0 + $0x8] sm:$0xff] }
 0x2bb   :  { %v989_v2 = vcvt.f32.s32 %v988_v40  ;;  %1155 = vmin.xlane.f32.xlu2 %v1154_v51 }
 0x2bc   :  { %5607 = vst [vmem:[#allocation8_spill] sm:$0xff] %v4233_v59  ;;  %vm1665_vm12 = vcmp.eq.s32.totalorder %v3302_v52, %v964_v50  ;;  %vm1702_vm14 = vcmp.eq.s32.totalorder %v3302_v52, %v4233_v59 }
 0x2bd   :  { %v992_v63 = vadd.s32 %v991_v3, %v989_v2  ;;  %v2655_v27 = vsel %vm1665_vm12, 1.0, %v5568_v16  ;;  %vm2751_vm15 = vmpackc.low %vm1666_vm13, %vm1665_vm12  ;;  %v5612_v2 = vld [vmem:[#allocation16_spill] sm:$0xff] }
 0x2be   :  { %2752 = vmatmul.msk.bf16.gmra.mxu1 %vm2751_vm15, %v5572_v56  ;;  %v2540_v9 = vadd.f32 %v2655_v27, %v2539_v58  ;;  %vm4250_vm1 = vmpackc.low %vm1702_vm14, %vm1701_vm0  ;;  %2816 = vmatmul.msk.bf16.gmra.mxu2 %vm2751_vm15, %v5572_v56  ;;  %v2101_v11 = vpop.f32.mrf.mxu2 }
 0x2bf   :  { %v5609_v33 = vsel %vm4250_vm1, 4294967295, %v5608_v33  ;;  %2788 = vmatmul.msk.bf16.vlgmr.msrb.gmra.mxu3 %vm4250_vm1, %v5572_v56  ;;  %v2102_v58 = vadd.f32 %v2101_v11, %v1932_v22  ;;  %v4259_v49 = vpop.xlane.xlu0 %1193  ;;  %v4261_v41 = vpop.xlane.xlu1 %1543  ;;  %vm1667_vm2 = vcmp.eq.s32.totalorder %v3302_v52, %v992_v63  ;;  %v2921_v63 = vld [vmem:[%s5432_s0 + $0x10] sm:$0xff] }
 0x2c0   :  { %5610 = vst [vmem:[#allocation32_spill] sm:$0xff] %v5609_v33  ;;  %v2541_v15 = vadd.f32 %v2656_v10, %v2540_v9  ;;  %vm1545_vm3 = vcmp.eq.f32.partialorder %v3983_v29, %v4261_v41  ;;  %v2657_v42 = vsel %vm1667_vm2, 1.0, %v5568_v16  ;;  %v1934_v57 = vpop.f32.mrf.mxu1  ;;  %v1005_v29 = vshll.u32 %v1004_v60, 16 }
 0x2c1   :  { %2261 = vst [vmem:[%s5435_s4] sm:$0xff] %v2102_v58  ;;  %v1546_v44 = vsel %vm1545_vm3, %v1541_v28, inf  ;;  %v2325_v22 = vsub.f32 %v2102_v58, %v2919_v30  ;;  %v1018_v28 = vcvt.f32.s32 %v4002_v48 }
 0x2c2   :  { %v2542_v54 = vadd.f32 %v2657_v42, %v2541_v15 }
 0x2c3   :  { %1547 = vmin.xlane.f32.xlu2 %v1546_v44  ;;  %v2389_v58 = vmul.f32 %v2325_v22, %v2325_v22  ;;  %v316_v44 = vpop.f32.mrf.mxu0 }
 0x2c6   :  { %v2103_v32 = vpop.f32.mrf.mxu2 }
 0x2c7   :  { %v2104_v50 = vadd.f32 %v2103_v32, %v1934_v57  ;;  %v1002_v40 = vpop.xlane.xlu0 %1001  ;;  %v626_v51 = vpop.xlane.xlu1 %625 }
 0x2c8   :  { %v1003_v3 = vcvt.f32.s32 %v1002_v40  ;;  %vm690_vm4 = vcmp.eq.f32.partialorder %v5612_v2, %v626_v51  ;;  %v1937_v42 = vpop.f32.mrf.mxu1  ;;  %v410_v40 = vmul.f32 2.0, %v316_v44  ;;  %v1019_v51 = vshll.u32 %v1018_v28, 16 }
 0x2c9   :  { %2262 = vst [vmem:[%s5435_s4 + $0x8] sm:$0xff] %v2104_v50  ;;  %v2326_v27 = vsub.f32 %v2104_v50, %v2920_v8  ;;  %v4284_v9 = vsel %vm690_vm4, %v3302_v52, 128 }
 0x2ca   :  { %v1006_v11 = vadd.s32 %v1005_v29, %v1003_v3  ;;  %v1638_v10 = vshra.s32 %v4284_v9, 16 }
 0x2cb   :  { %v2390_v15 = vmul.f32 %v2326_v27, %v2326_v27 }
 0x2cc   :  { %vm1668_vm5 = vcmp.eq.s32.totalorder %v3302_v52, %v1006_v11  ;;  %v4289_v57 = vcvt.s32.f32 %v1638_v10 }
 0x2cd   :  { %v2453_v7 = vadd.f32 %v2390_v15, %v2389_v58  ;;  %v2658_v60 = vsel %vm1668_vm5, 1.0, %v5568_v16  ;;  %vm2753_vm6 = vmpackc.low %vm1668_vm5, %vm1667_vm2  ;;  %v4319_v58 = vpop.xlane.xlu2 %1207 }
 0x2ce   :  { %2754 = vmatmul.msk.bf16.gmra.mxu1 %vm2753_vm6, %v5572_v56  ;;  %v2543_v32 = vadd.f32 %v2658_v60, %v2542_v54  ;;  %2818 = vmatmul.msk.bf16.gmra.mxu2 %vm2753_vm6, %v5572_v56  ;;  %v2106_v30 = vpop.f32.mrf.mxu2 }
 0x2cf   :  { %1641 = vmin.xlane.f32.xlu1 %v4289_v57  ;;  %v2107_v48 = vadd.f32 %v2106_v30, %v1937_v42  ;;  %v624_v22 = vpop.xlane.xlu0 %623  ;;  %v1016_v50 = vpop.xlane.xlu1 %1015  ;;  %v5613_v30 = vld [vmem:[#allocation20_spill] sm:$0xff] }
 0x2d0   :  { %vm689_vm7 = vcmp.eq.f32.partialorder %v4007_v36, %v624_v22  ;;  %v1017_v29 = vcvt.f32.s32 %v1016_v50  ;;  %v4311_v36 = vld [vmem:[%s5433_s3] ss:$0 sm:$0xff]  ;;  %v1939_v42 = vpop.f32.mrf.mxu1 }
 0x2d1   :  { %2263 = vst [vmem:[%s5435_s4 + $0x10] sm:$0xff] %v2107_v48  ;;  %v2327_v54 = vsub.f32 %v2107_v48, %v2921_v63  ;;  %v4305_v3 = vsel %vm689_vm7, %v3302_v52, 128  ;;  %v4314_v11 = vsub.f32 %v4311_v36, %v410_v40  ;;  %v1175_v48 = vand.u32 65535, %v5613_v30 }
 0x2d2   :  { %v1624_v2 = vshra.s32 %v4305_v3, 16  ;;  %v1020_v8 = vadd.s32 %v1019_v51, %v1017_v29  ;;  %v5614_v51 = vld [vmem:[#allocation25_spill] sm:$0xff] }
 0x2d3   :  { %v2391_v27 = vmul.f32 %v2327_v54, %v2327_v54  ;;  %v1189_v29 = vand.u32 65535, %v5614_v51  ;;  %v5615_v54 = vld [vmem:[#allocation22_spill] sm:$0xff] }
 0x2d4   :  { %v4316_v10 = vcvt.s32.f32 %v1624_v2  ;;  %vm1669_vm8 = vcmp.eq.s32.totalorder %v3302_v52, %v1020_v8  ;;  %vm1181_vm10 = vcmp.eq.f32.partialorder %v5615_v54, %v4221_v13 }
 0x2d5   :  { %v2454_v15 = vadd.f32 %v2453_v7, %v2391_v27  ;;  %v2659_v28 = vsel %vm1669_vm8, 1.0, %v5568_v16  ;;  %v2923_v7 = vld [vmem:[%s5432_s0 + $0x18] sm:$0xff]  ;;  %v1177_v27 = vcvt.s32.f32 %v1175_v48  ;;  %v1191_v30 = vcvt.s32.f32 %v1189_v29 }
 0x2d6   :  { %1627 = vmin.xlane.f32.xlu0 %v4316_v10  ;;  %v2108_v44 = vpop.f32.mrf.mxu2  ;;  %v2544_v60 = vadd.f32 %v2659_v28, %v2543_v32  ;;  %v5616_v28 = vld [vmem:[#allocation12_spill] sm:$0xff]  ;;  %v5618_v29 = vld [vmem:[#allocation33_spill] sm:$0xff] }
 0x2d7   :  { %587 = vmin.xlane.f32.xlu1 %v4314_v11  ;;  %v2109_v22 = vadd.f32 %v2108_v44, %v1939_v42  ;;  %v4327_v50 = vpop.xlane.xlu0 %1221  ;;  %v576_v40 = vpop.xlane.xlu1 %575  ;;  %vm1195_vm11 = vcmp.eq.f32.partialorder %v5616_v28, %v4259_v49  ;;  %v1182_v51 = vsel %vm1181_vm10, %v1177_v27, inf }
 0x2d8   :  { %vm665_vm9 = vcmp.eq.f32.partialorder %v4025_v45, %v576_v40  ;;  %v1032_v45 = vcvt.f32.s32 %v4038_v53  ;;  %v318_v44 = vpop.f32.mrf.mxu0 }
 0x2d9   :  { %2264 = vst [vmem:[%s5435_s4 + $0x18] sm:$0xff] %v2109_v22  ;;  %v2328_v32 = vsub.f32 %v2109_v22, %v2923_v7  ;;  %v4338_v63 = vsel %vm665_vm9, %v3302_v52, 128  ;;  %v1196_v7 = vsel %vm1195_vm11, %v1191_v30, inf  ;;  %v411_v59 = vmul.f32 2.0, %v318_v44 }
 0x2da   :  { %v1288_v2 = vshra.s32 %v4338_v63, 16  ;;  %v1033_v61 = vshll.u32 %v1032_v45, 16  ;;  %v1046_v30 = vcvt.f32.s32 %v4036_v55 }
 0x2db   :  { %v2392_v42 = vmul.f32 %v2328_v32, %v2328_v32  ;;  %v1494_v32 = vcvt.f32.s32 %v3697_v12 }
 0x2dc   :  { %v4346_v40 = vcvt.s32.f32 %v1288_v2  ;;  %v1942_v13 = vpop.f32.mrf.mxu1  ;;  %v1508_v2 = vcvt.f32.s32 %v5618_v29 }
 0x2dd   :  { %v2455_v22 = vadd.f32 %v2454_v15, %v2392_v42  ;;  %v4352_v15 = vsub.f32 %v4311_v36, %v411_v59  ;;  %v5620_v42 = vld [vmem:[#allocation24_spill] sm:$0xff] }
 0x2de   :  { %5617 = vst [vmem:[#allocation17_spill] sm:$0xff] %v4346_v40  ;;  %1291 = vmin.xlane.f32.xlu2 %v4346_v40  ;;  %1183 = vmin.xlane.f32.xlu0 %v1182_v51  ;;  %v1030_v54 = vpop.xlane.xlu2 %1029  ;;  %v1060_v51 = vcvt.f32.s32 %v5620_v42 }
 0x2df   :  { %1197 = vmin.xlane.f32.xlu1 %v1196_v7  ;;  %v1492_v48 = vpop.xlane.xlu0 %1491  ;;  %v1031_v53 = vcvt.f32.s32 %v1030_v54  ;;  %v1058_v33 = vpop.xlane.xlu1 %1057  ;;  %5619 = vst [vmem:[#allocation7_spill] sm:$0xff] %v4352_v15  ;;  %v1509_v54 = vshll.u32 %v1508_v2, 16 }
 0x2e0   :  { %v1493_v45 = vcvt.f32.s32 %v1492_v48  ;;  %v1059_v12 = vcvt.f32.s32 %v1058_v33  ;;  %v5621_v48 = vld [vmem:[#allocation6_spill] sm:$0xff] }
 0x2e1   :  { %v1034_v28 = vadd.s32 %v1033_v61, %v1031_v53  ;;  %v2924_v61 = vld [vmem:[%s5432_s0 + $0x20] sm:$0xff]  ;;  %v1217_v8 = vand.u32 65535, %v5621_v48  ;;  %v1061_v53 = vshll.u32 %v1060_v51, 16  ;;  %v5622_v51 = vld [vmem:[#allocation13_spill] sm:$0xff] }
 0x2e2   :  { %v2111_v27 = vpop.f32.mrf.mxu2  ;;  %vm1223_vm2 = vcmp.eq.f32.partialorder %v5622_v51, %v4327_v50 }
 0x2e3   :  { %v2112_v44 = vadd.f32 %v2111_v27, %v1942_v13  ;;  %vm1670_vm12 = vcmp.eq.s32.totalorder %v3302_v52, %v1034_v28  ;;  %v1495_v13 = vshll.u32 %v1494_v32, 16  ;;  %v1047_v28 = vshll.u32 %v1046_v30, 16 }
 0x2e4   :  { %v2660_v7 = vsel %vm1670_vm12, 1.0, %v5568_v16  ;;  %vm2755_vm13 = vmpackc.low %vm1670_vm12, %vm1669_vm8  ;;  %v1062_v32 = vadd.s32 %v1061_v53, %v1059_v12  ;;  %v1944_v30 = vpop.f32.mrf.mxu1 }
 0x2e5   :  { %2265 = vst [vmem:[%s5435_s4 + $0x20] sm:$0xff] %v2112_v44  ;;  %v2329_v59 = vsub.f32 %v2112_v44, %v2924_v61  ;;  %2756 = vmatmul.msk.bf16.gmra.mxu1 %vm2755_vm13, %v5572_v56  ;;  %v2545_v55 = vadd.f32 %v2660_v7, %v2544_v60  ;;  %2820 = vmatmul.msk.bf16.gmra.mxu2 %vm2755_vm13, %v5572_v56 }
 0x2e6   :  { %589 = vmin.xlane.f32.xlu2 %v4352_v15  ;;  %v578_v33 = vpop.xlane.xlu2 %577  ;;  %v4371_v44 = vadd.s32 %v1495_v13, %v1493_v45  ;;  %v1581_v15 = vand.u32 65535, %v4058_v1  ;;  %v1219_v45 = vcvt.s32.f32 %v1217_v8  ;;  %v2925_v1 = vld [vmem:[%s5432_s0 + $0x28] sm:$0xff]  ;;  %vm1672_vm7 = vcmp.eq.s32.totalorder %v3302_v52, %v1062_v32 }
 0x2e7   :  { %v2393_v29 = vmul.f32 %v2329_v59, %v2329_v59  ;;  %v1044_v27 = vpop.xlane.xlu0 %1043  ;;  %v1506_v42 = vpop.xlane.xlu1 %1505  ;;  %vm666_vm15 = vcmp.eq.f32.partialorder %v4055_v5, %v578_v33 }
 0x2e8   :  { %v1045_v61 = vcvt.f32.s32 %v1044_v27  ;;  %v1507_v60 = vcvt.f32.s32 %v1506_v42  ;;  %v4374_v7 = vsel %vm666_vm15, %v3302_v52, 128  ;;  %v1074_v27 = vcvt.f32.s32 %v4078_v4 }
 0x2e9   :  { %v2456_v2 = vadd.f32 %v2455_v22, %v2393_v29  ;;  %v1302_v48 = vshra.s32 %v4374_v7, 16  ;;  %vm1703_vm3 = vcmp.eq.s32.totalorder %v3302_v52, %v4371_v44  ;;  %v1224_v12 = vsel %vm1223_vm2, %v1219_v45, inf }
 0x2ea   :  { %v1048_v59 = vadd.s32 %v1047_v28, %v1045_v61  ;;  %v4380_v40 = vadd.s32 %v1509_v54, %v1507_v60  ;;  %v2113_v5 = vpop.f32.mrf.mxu2  ;;  %v1583_v53 = vcvt.s32.f32 %v1581_v15  ;;  %v1075_v32 = vshll.u32 %v1074_v27, 16 }
 0x2eb   :  { %v4382_v13 = vcvt.s32.f32 %v1302_v48  ;;  %v2114_v33 = vadd.f32 %v2113_v5, %v1944_v30  ;;  %v2662_v30 = vsel %vm1672_vm7, 1.0, %v5568_v16  ;;  %v5627_v5 = vld [vmem:[#allocation11_spill] sm:$0xff] }
 0x2ec   :  { %vm1704_vm4 = vcmp.eq.s32.totalorder %v3302_v52, %v4380_v40  ;;  %vm1671_vm5 = vcmp.eq.s32.totalorder %v3302_v52, %v1048_v59  ;;  %v1203_v45 = vand.u32 65535, %v5627_v5 }
 0x2ed   :  { %2266 = vst [vmem:[%s5435_s4 + $0x28] sm:$0xff] %v2114_v33  ;;  %v2330_v22 = vsub.f32 %v2114_v33, %v2925_v1  ;;  %vm4402_vm6 = vmpackc.low %vm1704_vm4, %vm1703_vm3  ;;  %1305 = vmin.xlane.f32.xlu0 %v4382_v13  ;;  %v2661_v54 = vsel %vm1671_vm5, 1.0, %v5568_v16 }
 0x2ee   :  { %2790 = vmatmul.msk.bf16.gmra.mxu3 %vm4402_vm6, %v5572_v56  ;;  %1225 = vmin.xlane.f32.xlu2 %v1224_v12  ;;  %v4415_v8 = vpop.xlane.xlu2 %1585  ;;  %vm4417_vm8 = vmpackc.low %vm1672_vm7, %vm1671_vm5  ;;  %v2546_v29 = vadd.f32 %v2661_v54, %v2545_v55  ;;  %v1567_v55 = vand.u32 65535, %v4087_v47 }
 0x2ef   :  { %v2394_v42 = vmul.f32 %v2330_v22, %v2330_v22  ;;  %v4421_v61 = vpop.xlane.xlu0 %1235  ;;  %v1072_v60 = vpop.xlane.xlu1 %1071  ;;  %vm1587_vm9 = vcmp.eq.f32.partialorder %v4082_v26, %v4415_v8  ;;  %v5628_v22 = vld [vmem:[#allocation23_spill] sm:$0xff] }
 0x2f0   :  { %v1073_v48 = vcvt.f32.s32 %v1072_v60  ;;  %v1588_v51 = vsel %vm1587_vm9, %v1583_v53, inf  ;;  %v2547_v15 = vadd.f32 %v2662_v30, %v2546_v29  ;;  %vm1209_vm11 = vcmp.eq.f32.partialorder %v5628_v22, %v4319_v58  ;;  %v5629_v30 = vld [vmem:[#allocation2_spill] sm:$0xff] }
 0x2f1   :  { %v2457_v59 = vadd.f32 %v2456_v2, %v2394_v42  ;;  %1589 = vmin.xlane.f32.xlu1 %v1588_v51  ;;  %v1205_v2 = vcvt.s32.f32 %v1203_v45  ;;  %v1569_v53 = vcvt.s32.f32 %v1567_v55  ;;  %v2926_v45 = vld [vmem:[%s5432_s0 + $0x30] sm:$0xff]  ;;  %v1231_v22 = vand.u32 65535, %v4061_v25 }
 0x2f2   :  { %v1076_v33 = vadd.s32 %v1075_v32, %v1073_v48  ;;  %v1088_v48 = vcvt.f32.s32 %v4069_v18  ;;  %v5631_v25 = vld [vmem:[#allocation36_spill] sm:$0xff]  ;;  %vm1237_vm2 = vcmp.eq.f32.partialorder %v4084_v21, %v4421_v61 }
 0x2f3   :  { %v1210_v28 = vsel %vm1209_vm11, %v1205_v2, inf }
 0x2f4   :  { %v1947_v1 = vpop.f32.mrf.mxu1  ;;  %vm1673_vm10 = vcmp.eq.s32.totalorder %v3302_v52, %v1076_v33 }
 0x2f5   :  { %2758 = vmatmul.msk.bf16.gmra.mxu1 %vm4417_vm8, %v5572_v56  ;;  %2822 = vmatmul.msk.bf16.gmra.mxu2 %vm4417_vm8, %v5572_v56  ;;  %v2663_v26 = vsel %vm1673_vm10, 1.0, %v5568_v16 }
 0x2f6   :  { %v580_v47 = vpop.xlane.xlu2 %579  ;;  %v2548_v27 = vadd.f32 %v2663_v26, %v2547_v15  ;;  %v412_v15 = vmul.f32 2.0, %v5629_v30  ;;  %v1233_v30 = vcvt.s32.f32 %v1231_v22 }
 0x2f7   :  { %v4440_v12 = vpop.xlane.xlu1 %1571  ;;  %vm667_vm12 = vcmp.eq.f32.partialorder %v4095_v37, %v580_v47  ;;  %v582_v54 = vpop.xlane.xlu0 %581 }
 0x2f8   :  { %vm1573_vm13 = vcmp.eq.f32.partialorder %v4104_v6, %v4440_v12  ;;  %v4446_v29 = vsel %vm667_vm12, %v3302_v52, 128  ;;  %vm668_vm15 = vcmp.eq.f32.partialorder %v4102_v17, %v582_v54 }
 0x2f9   :  { %v4450_v42 = vsel %vm668_vm15, %v3302_v52, 128  ;;  %v1574_v60 = vsel %vm1573_vm13, %v1569_v53, inf  ;;  %1211 = vmin.xlane.f32.xlu1 %v1210_v28  ;;  %v1316_v51 = vshra.s32 %v4446_v29, 16  ;;  %v4471_v53 = vsub.f32 %v4311_v36, %v412_v15 }
 0x2fa   :  { %v1330_v32 = vshra.s32 %v4450_v42, 16  ;;  %1575 = vmin.xlane.f32.xlu0 %v1574_v60  ;;  %v2116_v37 = vpop.f32.mrf.mxu2 }
 0x2fb   :  { %v2117_v6 = vadd.f32 %v2116_v37, %v1947_v1  ;;  %v1089_v1 = vshll.u32 %v1088_v48, 16  ;;  %v4466_v26 = vcvt.s32.f32 %v1316_v51  ;;  %v1245_v51 = vand.u32 65535, %v4110_v24  ;;  %v2927_v24 = vld [vmem:[%s5432_s0 + $0x38] sm:$0xff] }
 0x2fc   :  { %v4456_v5 = vcvt.s32.f32 %v1330_v32  ;;  %v1949_v17 = vpop.f32.mrf.mxu1  ;;  %v5630_v32 = vld [vmem:[#allocation3_spill] sm:$0xff] }
 0x2fd   :  { %2267 = vst [vmem:[%s5435_s4 + $0x30] sm:$0xff] %v2117_v6  ;;  %v2331_v55 = vsub.f32 %v2117_v6, %v2926_v45  ;;  %v413_v37 = vmul.f32 2.0, %v5630_v32  ;;  %v1536_v6 = vcvt.f32.s32 %v5631_v25  ;;  %v1247_v32 = vcvt.s32.f32 %v1245_v51 }
 0x2fe   :  { %1333 = vmin.xlane.f32.xlu2 %v4456_v5  ;;  %v1086_v18 = vpop.xlane.xlu2 %1085  ;;  %v1102_v51 = vcvt.f32.s32 %v4145_v35 }
 0x2ff   :  { %v2395_v2 = vmul.f32 %v2331_v55, %v2331_v55  ;;  %v4468_v47 = vpop.xlane.xlu1 %1249  ;;  %v1087_v54 = vcvt.f32.s32 %v1086_v18  ;;  %v4482_v55 = vpop.xlane.xlu0 %1613  ;;  %v4499_v33 = vsub.f32 %v4311_v36, %v413_v37  ;;  %v1609_v37 = vand.u32 65535, %v4107_v46  ;;  %v2928_v46 = vld [vmem:[%s5432_s0 + $0x40] sm:$0xff] }
 0x300   :  { %vm1251_vm8 = vcmp.eq.f32.partialorder %v4128_v0, %v4468_v47  ;;  %vm1615_vm12 = vcmp.eq.f32.partialorder %v4130_v62, %v4482_v55  ;;  %v1595_v62 = vand.u32 65535, %v4167_v31 }
 0x301   :  { %v2458_v28 = vadd.f32 %v2457_v59, %v2395_v2  ;;  %v1090_v60 = vadd.s32 %v1089_v1, %v1087_v54  ;;  %1319 = vmin.xlane.f32.xlu1 %v4466_v26  ;;  %v5632_v59 = vld [vmem:[#allocation35_spill] sm:$0xff]  ;;  %v1238_v2 = vsel %vm1237_vm2, %v1233_v30, inf  ;;  %v1252_v30 = vsel %vm1251_vm8, %v1247_v32, inf }
 0x302   :  { %591 = vmin.xlane.f32.xlu0 %v4471_v53  ;;  %v2118_v48 = vpop.f32.mrf.mxu2  ;;  %v1522_v15 = vcvt.f32.s32 %v5632_v59  ;;  %v1103_v32 = vshll.u32 %v1102_v51, 16 }
 0x303   :  { %v2119_v45 = vadd.f32 %v2118_v48, %v1949_v17  ;;  %vm1674_vm5 = vcmp.eq.s32.totalorder %v3302_v52, %v1090_v60  ;;  %v1537_v60 = vshll.u32 %v1536_v6, 16 }
 0x304   :  { %v1952_v18 = vpop.f32.mrf.mxu1  ;;  %v2664_v1 = vsel %vm1674_vm5, 1.0, %v5568_v16  ;;  %vm2759_vm7 = vmpackc.low %vm1674_vm5, %vm1673_vm10 }
 0x305   :  { %2268 = vst [vmem:[%s5435_s4 + $0x38] sm:$0xff] %v2119_v45  ;;  %v2332_v17 = vsub.f32 %v2119_v45, %v2927_v24  ;;  %2760 = vmatmul.msk.bf16.gmra.mxu1 %vm2759_vm7, %v5572_v56  ;;  %v2549_v22 = vadd.f32 %v2664_v1, %v2548_v27  ;;  %2824 = vmatmul.msk.bf16.gmra.mxu2 %vm2759_vm7, %v5572_v56  ;;  %v1523_v27 = vshll.u32 %v1522_v15, 16  ;;  %v1116_v1 = vcvt.f32.s32 %v4151_v39 }
 0x306   :  { %1239 = vmin.xlane.f32.xlu2 %v1238_v2  ;;  %v1534_v54 = vpop.xlane.xlu2 %1533 }
 0x307   :  { %v2396_v25 = vmul.f32 %v2332_v17, %v2332_v17  ;;  %v1520_v48 = vpop.xlane.xlu1 %1519  ;;  %v1535_v45 = vcvt.f32.s32 %v1534_v54  ;;  %v1117_v39 = vshll.u32 %v1116_v1, 16 }
 0x308   :  { %v1521_v59 = vcvt.f32.s32 %v1520_v48 }
 0x309   :  { %v2459_v24 = vadd.f32 %v2458_v28, %v2396_v25  ;;  %v4504_v21 = vadd.s32 %v1537_v60, %v1535_v45  ;;  %593 = vmin.xlane.f32.xlu1 %v4499_v33 }
 0x30a   :  { %v4508_v0 = vadd.s32 %v1523_v27, %v1521_v59  ;;  %1253 = vmin.xlane.f32.xlu0 %v1252_v30  ;;  %v2121_v6 = vpop.f32.mrf.mxu2 }
 0x30b   :  { %v2122_v17 = vadd.f32 %v2121_v6, %v1952_v18  ;;  %vm5509_vm9 = vcmp.eq.s32.totalorder %v3302_v52, %v4504_v21  ;;  %v1611_v18 = vcvt.s32.f32 %v1609_v37 }
 0x30c   :  { %v1114_v15 = vpop.xlane.xlu0 %1113  ;;  %vm1705_vm10 = vcmp.eq.s32.totalorder %v3302_v52, %v4508_v0  ;;  %v1954_v54 = vpop.f32.mrf.mxu1 }
 0x30d   :  { %2269 = vst [vmem:[%s5435_s4 + $0x40] sm:$0xff] %v2122_v17  ;;  %v2333_v28 = vsub.f32 %v2122_v17, %v2928_v46  ;;  %v1115_v2 = vcvt.f32.s32 %v1114_v15  ;;  %vm4527_vm11 = vmpackc.low %vm5509_vm9, %vm1705_vm10  ;;  %v1616_v30 = vsel %vm1615_vm12, %v1611_v18, inf  ;;  %v2695_v44 = vsel %vm1705_vm10, 1.0, %v5568_v16 }
 0x30e   :  { %2792 = vmatmul.msk.bf16.gmra.mxu3 %vm4527_vm11, %v5572_v56  ;;  %v1100_v60 = vpop.xlane.xlu2 %1099 }
 0x30f   :  { %v2397_v25 = vmul.f32 %v2333_v28, %v2333_v28  ;;  %v1118_v48 = vadd.s32 %v1117_v39, %v1115_v2  ;;  %v4536_v45 = vpop.xlane.xlu1 %1263  ;;  %v1101_v27 = vcvt.f32.s32 %v1100_v60 }
 0x311   :  { %v2460_v59 = vadd.f32 %v2459_v24, %v2397_v25  ;;  %v1104_v1 = vadd.s32 %v1103_v32, %v1101_v27  ;;  %vm1676_vm15 = vcmp.eq.s32.totalorder %v3302_v52, %v1118_v48  ;;  %v2929_v24 = vld [vmem:[%s5432_s0 + $0x48] sm:$0xff] }
 0x312   :  { %1617 = vmin.xlane.f32.xlu0 %v1616_v30  ;;  %v2123_v37 = vpop.f32.mrf.mxu2  ;;  %v2666_v46 = vsel %vm1676_vm15, 1.0, %v5568_v16 }
 0x313   :  { %v2124_v6 = vadd.f32 %v2123_v37, %v1954_v54  ;;  %vm1675_vm13 = vcmp.eq.s32.totalorder %v3302_v52, %v1104_v1 }
 0x314   :  { %v584_v17 = vpop.xlane.xlu0 %583  ;;  %v2665_v51 = vsel %vm1675_vm13, 1.0, %v5568_v16  ;;  %vm2761_vm2 = vmpackc.low %vm1676_vm15, %vm1675_vm13  ;;  %v1957_v32 = vpop.f32.mrf.mxu1 }
 0x315   :  { %2270 = vst [vmem:[%s5435_s4 + $0x48] sm:$0xff] %v2124_v6  ;;  %v2334_v15 = vsub.f32 %v2124_v6, %v2929_v24  ;;  %vm669_vm5 = vcmp.eq.f32.partialorder %v4173_v20, %v584_v17  ;;  %2762 = vmatmul.msk.bf16.gmra.mxu1 %vm2761_vm2, %v5572_v56  ;;  %v2550_v39 = vadd.f32 %v2665_v51, %v2549_v22  ;;  %v1597_v20 = vcvt.s32.f32 %v1595_v62  ;;  %v2930_v51 = vld [vmem:[%s5432_s0 + $0x50] sm:$0xff] }
 0x316   :  { %2826 = vmatmul.msk.bf16.gmra.mxu2 %vm2761_vm2, %v5572_v56  ;;  %v4552_v31 = vsel %vm669_vm5, %v3302_v52, 128  ;;  %v4555_v28 = vpop.xlane.xlu2 %1599  ;;  %v1144_v22 = vcvt.f32.s32 %v4153_v14  ;;  %v1130_v6 = vcvt.f32.s32 %v4176_v23  ;;  %v5635_v14 = vld [vmem:[#allocation5_spill] sm:$0xff] }
 0x317   :  { %v2398_v2 = vmul.f32 %v2334_v15, %v2334_v15  ;;  %v1344_v18 = vshra.s32 %v4552_v31, 16  ;;  %v2551_v54 = vadd.f32 %v2666_v46, %v2550_v39  ;;  %v586_v60 = vpop.xlane.xlu1 %585  ;;  %vm1601_vm7 = vcmp.eq.f32.partialorder %v4183_v43, %v4555_v28  ;;  %v5636_v15 = vld [vmem:[#allocation27_spill] sm:$0xff] }
 0x318   :  { %vm670_vm8 = vcmp.eq.f32.partialorder %v4179_v34, %v586_v60  ;;  %v1602_v30 = vsel %vm1601_vm7, %v1597_v20, inf  ;;  %v1145_v62 = vshll.u32 %v1144_v22, 16  ;;  %v1259_v39 = vand.u32 65535, %v5636_v15 }
 0x319   :  { %v2461_v25 = vadd.f32 %v2460_v59, %v2398_v2  ;;  %v4562_v48 = vcvt.s32.f32 %v1344_v18  ;;  %v4565_v27 = vsel %vm670_vm8, %v3302_v52, 128  ;;  %1603 = vmin.xlane.f32.xlu2 %v1602_v30  ;;  %v415_v59 = vmul.f32 2.0, %v5635_v14  ;;  %v5637_v30 = vld [vmem:[#allocation29_spill] sm:$0xff]  ;;  %v5638_v14 = vld [vmem:[#allocation28_spill] sm:$0xff] }
 0x31a   :  { %v1358_v1 = vshra.s32 %v4565_v27, 16  ;;  %v2126_v37 = vpop.f32.mrf.mxu2  ;;  %v1131_v2 = vshll.u32 %v1130_v6, 16  ;;  %vm1265_vm12 = vcmp.eq.f32.partialorder %v5638_v14, %v4536_v45 }
 0x31b   :  { %v2127_v17 = vadd.f32 %v2126_v37, %v1957_v32  ;;  %1347 = vmin.xlane.f32.xlu0 %v4562_v48  ;;  %v4582_v20 = vsub.f32 %v4311_v36, %v415_v59  ;;  %v1273_v37 = vand.u32 65535, %v5637_v30 }
 0x31c   :  { %v4570_v34 = vcvt.s32.f32 %v1358_v1  ;;  %v1142_v43 = vpop.xlane.xlu0 %1141 }
 0x31d   :  { %2271 = vst [vmem:[%s5435_s4 + $0x50] sm:$0xff] %v2127_v17  ;;  %v2335_v24 = vsub.f32 %v2127_v17, %v2930_v51  ;;  %v1143_v23 = vcvt.f32.s32 %v1142_v43  ;;  %v1959_v17 = vpop.f32.mrf.mxu1  ;;  %v1261_v51 = vcvt.s32.f32 %v1259_v39  ;;  %v1275_v39 = vcvt.s32.f32 %v1273_v37 }
 0x31e   :  { %1361 = vmin.xlane.f32.xlu1 %v4570_v34  ;;  %v1128_v46 = vpop.xlane.xlu2 %1127  ;;  %v1158_v37 = vcvt.f32.s32 %v4194_v38 }
 0x31f   :  { %v2399_v18 = vmul.f32 %v2335_v24, %v2335_v24  ;;  %v1146_v60 = vadd.s32 %v1145_v62, %v1143_v23  ;;  %v1129_v32 = vcvt.f32.s32 %v1128_v46  ;;  %v1266_v23 = vsel %vm1265_vm12, %v1261_v51, inf }
 0x321   :  { %v2462_v22 = vadd.f32 %v2461_v25, %v2399_v18  ;;  %v1132_v1 = vadd.s32 %v1131_v2, %v1129_v32  ;;  %vm1678_vm15 = vcmp.eq.s32.totalorder %v3302_v52, %v1146_v60  ;;  %v2931_v25 = vld [vmem:[%s5432_s0 + $0x58] sm:$0xff]  ;;  %v5639_v32 = vld [vmem:[#allocation14_spill] sm:$0xff] }
 0x322   :  { %v2128_v43 = vpop.f32.mrf.mxu2  ;;  %v2668_v46 = vsel %vm1678_vm15, 1.0, %v5568_v16 }
 0x323   :  { %v2129_v15 = vadd.f32 %v2128_v43, %v1959_v17  ;;  %597 = vmin.xlane.f32.xlu0 %v4582_v20  ;;  %vm1677_vm13 = vcmp.eq.s32.totalorder %v3302_v52, %v1132_v1  ;;  %v5640_v43 = vld [vmem:[#allocation4_spill] sm:$0xff] }
 0x324   :  { %v1562_v6 = vpop.xlane.xlu0 %1561  ;;  %v2667_v59 = vsel %vm1677_vm13, 1.0, %v5568_v16  ;;  %vm2763_vm2 = vmpackc.low %vm1678_vm15, %vm1677_vm13  ;;  %v414_v14 = vmul.f32 2.0, %v5640_v43 }
 0x325   :  { %2272 = vst [vmem:[%s5435_s4 + $0x58] sm:$0xff] %v2129_v15  ;;  %v2336_v62 = vsub.f32 %v2129_v15, %v2931_v25  ;;  %2764 = vmatmul.msk.bf16.gmra.mxu1 %vm2763_vm2, %v5572_v56  ;;  %v2552_v24 = vadd.f32 %v2667_v59, %v2551_v54  ;;  %v1172_v54 = vcvt.f32.s32 %v4187_v19  ;;  %v1563_v43 = vcvt.f32.s32 %v1562_v6 }
 0x326   :  { %2828 = vmatmul.msk.bf16.gmra.mxu2 %vm2763_vm2, %v5572_v56  ;;  %1267 = vmin.xlane.f32.xlu1 %v1266_v23  ;;  %v4603_v2 = vpop.xlane.xlu2 %1277 }
 0x327   :  { %v2400_v18 = vmul.f32 %v2336_v62, %v2336_v62  ;;  %v2553_v60 = vadd.f32 %v2668_v46, %v2552_v24  ;;  %vm1279_vm5 = vcmp.eq.f32.partialorder %v5639_v32, %v4603_v2  ;;  %v1173_v15 = vshll.u32 %v1172_v54, 16  ;;  %v5641_v32 = vld [vmem:[#allocation30_spill] sm:$0xff] }
 0x328   :  { %v1280_v1 = vsel %vm1279_vm5, %v1275_v39, inf  ;;  %v4611_v62 = vsub.f32 %v4311_v36, %v414_v14  ;;  %v1159_v24 = vshll.u32 %v1158_v37, 16  ;;  %v1564_v19 = vcvt.f32.s32 %v5641_v32  ;;  %v2932_v36 = vld [vmem:[%s5432_s0 + $0x60] sm:$0xff] }
 0x329   :  { %v2463_v30 = vadd.f32 %v2462_v22, %v2400_v18  ;;  %1281 = vmin.xlane.f32.xlu2 %v1280_v1  ;;  %v1550_v1 = vcvt.f32.s32 %v4261_v41 }
 0x32a   :  { %v1962_v17 = vpop.f32.mrf.mxu1  ;;  %v1565_v14 = vshll.u32 %v1564_v19, 16 }
 0x32b   :  { %v1551_v37 = vshll.u32 %v1550_v1, 16  ;;  %v1637_v1 = vand.u32 65535, %v4284_v9 }
 0x32c   :  { %v1170_v51 = vpop.xlane.xlu0 %1169 }
 0x32d   :  { %v1171_v59 = vcvt.f32.s32 %v1170_v51 }
 0x32e   :  { %v1156_v25 = vpop.xlane.xlu2 %1155 }
 0x32f   :  { %v1174_v23 = vadd.s32 %v1173_v15, %v1171_v59  ;;  %v1157_v46 = vcvt.f32.s32 %v1156_v25  ;;  %v4628_v59 = vadd.s32 %v1565_v14, %v1563_v43  ;;  %v2934_v14 = vld [vmem:[%s5432_s0 + $0x70] sm:$0xff] }
 0x330   :  { %v2131_v39 = vpop.f32.mrf.mxu2 }
 0x331   :  { %v1160_v22 = vadd.s32 %v1159_v24, %v1157_v46  ;;  %v2132_v18 = vadd.f32 %v2131_v39, %v1962_v17  ;;  %595 = vmin.xlane.f32.xlu2 %v4611_v62  ;;  %vm1680_vm8 = vcmp.eq.s32.totalorder %v3302_v52, %v1174_v23  ;;  %5642 = vst [vmem:[#allocation26_spill] sm:$0xff] %v4628_v59 }
 0x332   :  { %v1964_v38 = vpop.f32.mrf.mxu1  ;;  %v2670_v51 = vsel %vm1680_vm8, 1.0, %v5568_v16  ;;  %vm5503_vm15 = vcmp.eq.s32.totalorder %v3302_v52, %v4628_v59 }
 0x333   :  { %2273 = vst [vmem:[%s5435_s4 + $0x60] sm:$0xff] %v2132_v18  ;;  %v2337_v54 = vsub.f32 %v2132_v18, %v2932_v36  ;;  %vm1679_vm7 = vcmp.eq.s32.totalorder %v3302_v52, %v1160_v22  ;;  %v1639_v36 = vcvt.s32.f32 %v1637_v1  ;;  %v5645_v1 = vld [vmem:[#allocation15_spill] sm:$0xff] }
 0x334   :  { %v2669_v17 = vsel %vm1679_vm7, 1.0, %v5568_v16  ;;  %vm2765_vm12 = vmpackc.low %vm1680_vm8, %vm1679_vm7 }
 0x335   :  { %v2401_v41 = vmul.f32 %v2337_v54, %v2337_v54  ;;  %2766 = vmatmul.msk.bf16.gmra.mxu1 %vm2765_vm12, %v5572_v56  ;;  %v2554_v6 = vadd.f32 %v2669_v17, %v2553_v60  ;;  %v2933_v60 = vld [vmem:[%s5432_s0 + $0x68] sm:$0xff] }
 0x336   :  { %2830 = vmatmul.msk.bf16.gmra.mxu2 %vm2765_vm12, %v5572_v56  ;;  %v1548_v15 = vpop.xlane.xlu2 %1547 }
 0x337   :  { %v2464_v25 = vadd.f32 %v2463_v30, %v2401_v41  ;;  %v4630_v24 = vadd.f32 %v2670_v51, %v2554_v6  ;;  %v1549_v23 = vcvt.f32.s32 %v1548_v15 }
 0x338   :  { %v2133_v46 = vpop.f32.mrf.mxu2  ;;  %v5659_v0 = vld [vmem:[#allocation26_spill] sm:$0xff] }
 0x339   :  { %v4632_v39 = vadd.s32 %v1551_v37, %v1549_v23  ;;  %v2134_v32 = vadd.f32 %v2133_v46, %v1964_v38  ;;  %v1623_v37 = vand.u32 65535, %v4305_v3  ;;  %v2935_v3 = vld [vmem:[%s5432_s0 + $0x78] sm:$0xff] }
 0x33b   :  { %2274 = vst [vmem:[%s5435_s4 + $0x68] sm:$0xff] %v2134_v32  ;;  %v2338_v19 = vsub.f32 %v2134_v32, %v2933_v60  ;;  %v1967_v22 = vpop.f32.mrf.mxu1  ;;  %vm5504_vm13 = vcmp.eq.s32.totalorder %v3302_v52, %v4632_v39 }
 0x33c   :  { %vm4650_vm2 = vmpackc.low %vm5503_vm15, %vm5504_vm13 }
 0x33d   :  { %v2402_v18 = vmul.f32 %v2338_v19, %v2338_v19  ;;  %2794 = vmatmul.msk.bf16.gmra.mxu3 %vm4650_vm2, %v5572_v56 }
 0x33f   :  { %v2465_v38 = vadd.f32 %v2464_v25, %v2402_v18  ;;  %v1625_v25 = vcvt.s32.f32 %v1623_v37  ;;  %v1287_v18 = vand.u32 65535, %v4338_v63  ;;  %v5646_v63 = vld [vmem:[#allocation17_spill] sm:$0xff] }
 0x341   :  { %v2136_v43 = vpop.f32.mrf.mxu2 }
 0x342   :  { %v2137_v54 = vadd.f32 %v2136_v43, %v1967_v22  ;;  %v4658_v17 = vpop.xlane.xlu1 %1641 }
 0x343   :  { %vm1643_vm5 = vcmp.eq.f32.partialorder %v4289_v57, %v4658_v17  ;;  %v1969_v6 = vpop.f32.mrf.mxu1 }
 0x344   :  { %2275 = vst [vmem:[%s5435_s4 + $0x70] sm:$0xff] %v2137_v54  ;;  %v2339_v41 = vsub.f32 %v2137_v54, %v2934_v14  ;;  %v1644_v9 = vsel %vm1643_vm5, %v1639_v36, inf  ;;  %v1200_v36 = vcvt.f32.s32 %v4259_v49 }
 0x345   :  { %1645 = vmin.xlane.f32.xlu2 %v1644_v9 }
 0x346   :  { %v2403_v51 = vmul.f32 %v2339_v41, %v2339_v41  ;;  %v1289_v41 = vcvt.s32.f32 %v1287_v18 }
 0x348   :  { %v2466_v15 = vadd.f32 %v2465_v38, %v2403_v51 }
 0x349   :  { %v2138_v23 = vpop.f32.mrf.mxu2  ;;  %v4669_v46 = vpop.xlane.xlu0 %1627 }
 0x34a   :  { %v2139_v57 = vadd.f32 %v2138_v23, %v1969_v6  ;;  %vm1629_vm7 = vcmp.eq.f32.partialorder %v4316_v10, %v4669_v46  ;;  %v588_v32 = vpop.xlane.xlu1 %587 }
 0x34b   :  { %vm671_vm8 = vcmp.eq.f32.partialorder %v4314_v11, %v588_v32  ;;  %v1630_v60 = vsel %vm1629_vm7, %v1625_v25, inf  ;;  %v1186_v11 = vcvt.f32.s32 %v5645_v1  ;;  %v1972_v43 = vpop.f32.mrf.mxu1 }
 0x34c   :  { %2276 = vst [vmem:[%s5435_s4 + $0x78] sm:$0xff] %v2139_v57  ;;  %v2340_v19 = vsub.f32 %v2139_v57, %v2935_v3  ;;  %v4681_v22 = vsel %vm671_vm8, %v3302_v52, 128  ;;  %1631 = vmin.xlane.f32.xlu1 %v1630_v60  ;;  %v1201_v57 = vshll.u32 %v1200_v36, 16 }
 0x34d   :  { %v1372_v10 = vshra.s32 %v4681_v22, 16  ;;  %v1187_v37 = vshll.u32 %v1186_v11, 16 }
 0x34e   :  { %v2404_v38 = vmul.f32 %v2340_v19, %v2340_v19 }
 0x34f   :  { %v4687_v54 = vcvt.s32.f32 %v1372_v10 }
 0x350   :  { %v2467_v14 = vadd.f32 %v2466_v15, %v2404_v38  ;;  %v2936_v15 = vld [vmem:[%s5432_s0 + $0x80] sm:$0xff] }
 0x351   :  { %1375 = vmin.xlane.f32.xlu2 %v4687_v54  ;;  %v2141_v6 = vpop.f32.mrf.mxu2  ;;  %v4690_v9 = vpop.xlane.xlu2 %1291 }
 0x352   :  { %v2142_v51 = vadd.f32 %v2141_v6, %v1972_v43  ;;  %vm1293_vm12 = vcmp.eq.f32.partialorder %v5646_v63, %v4690_v9  ;;  %v1184_v25 = vpop.xlane.xlu0 %1183  ;;  %v1198_v23 = vpop.xlane.xlu1 %1197 }
 0x353   :  { %v1185_v32 = vcvt.f32.s32 %v1184_v25  ;;  %v1199_v60 = vcvt.f32.s32 %v1198_v23  ;;  %v1294_v49 = vsel %vm1293_vm12, %v1289_v41, inf  ;;  %v1974_v11 = vpop.f32.mrf.mxu1  ;;  %v1301_v25 = vand.u32 65535, %v4374_v7 }
 0x354   :  { %2277 = vst [vmem:[%s5435_s4 + $0x80] sm:$0xff] %v2142_v51  ;;  %v2341_v3 = vsub.f32 %v2142_v51, %v2936_v15  ;;  %1295 = vmin.xlane.f32.xlu0 %v1294_v49  ;;  %v5647_v51 = vld [vmem:[#allocation7_spill] sm:$0xff] }
 0x355   :  { %v1188_v19 = vadd.s32 %v1187_v37, %v1185_v32  ;;  %v1202_v18 = vadd.s32 %v1201_v57, %v1199_v60  ;;  %v1303_v49 = vcvt.s32.f32 %v1301_v25 }
 0x356   :  { %v2405_v10 = vmul.f32 %v2341_v3, %v2341_v3 }
 0x357   :  { %vm1681_vm5 = vcmp.eq.s32.totalorder %v3302_v52, %v1188_v19  ;;  %vm1682_vm7 = vcmp.eq.s32.totalorder %v3302_v52, %v1202_v18 }
 0x358   :  { %v2468_v1 = vadd.f32 %v2467_v14, %v2405_v10  ;;  %v2671_v38 = vsel %vm1681_vm5, 1.0, %v5568_v16  ;;  %vm2767_vm8 = vmpackc.low %vm1682_vm7, %vm1681_vm5  ;;  %v2672_v6 = vsel %vm1682_vm7, 1.0, %v5568_v16 }
 0x359   :  { %2768 = vmatmul.msk.bf16.gmra.mxu1 %vm2767_vm8, %v5572_v56  ;;  %v2556_v43 = vadd.f32 %v2671_v38, %v4630_v24  ;;  %2832 = vmatmul.msk.bf16.gmra.mxu2 %vm2767_vm8, %v5572_v56  ;;  %v2143_v36 = vpop.f32.mrf.mxu2  ;;  %v590_v41 = vpop.xlane.xlu2 %589  ;;  %v2937_v24 = vld [vmem:[%s5432_s0 + $0x88] sm:$0xff]  ;;  %v1214_v38 = vcvt.f32.s32 %v4319_v58 }
 0x35a   :  { %v2144_v37 = vadd.f32 %v2143_v36, %v1974_v11  ;;  %vm672_vm12 = vcmp.eq.f32.partialorder %v5647_v51, %v590_v41  ;;  %v1228_v11 = vcvt.f32.s32 %v4327_v50  ;;  %v2938_v50 = vld [vmem:[%s5432_s0 + $0x90] sm:$0xff] }
 0x35b   :  { %v4708_v63 = vadd.f32 %v2672_v6, %v2556_v43  ;;  %v4711_v14 = vsel %vm672_vm12, %v3302_v52, 128  ;;  %v1592_v43 = vcvt.f32.s32 %v4415_v8  ;;  %v1578_v6 = vcvt.f32.s32 %v4440_v12 }
 0x35c   :  { %2278 = vst [vmem:[%s5435_s4 + $0x88] sm:$0xff] %v2144_v37  ;;  %v2342_v23 = vsub.f32 %v2144_v37, %v2937_v24  ;;  %v1386_v57 = vshra.s32 %v4711_v14, 16  ;;  %v1229_v25 = vshll.u32 %v1228_v11, 16  ;;  %v1215_v58 = vshll.u32 %v1214_v38, 16 }
 0x35d   :  { %v1593_v24 = vshll.u32 %v1592_v43, 16 }
 0x35e   :  { %v2406_v32 = vmul.f32 %v2342_v23, %v2342_v23  ;;  %v4721_v60 = vcvt.s32.f32 %v1386_v57  ;;  %v1329_v23 = vand.u32 65535, %v4450_v42 }
 0x360   :  { %v2469_v15 = vadd.f32 %v2468_v1, %v2406_v32  ;;  %1389 = vmin.xlane.f32.xlu0 %v4721_v60  ;;  %v4724_v3 = vpop.xlane.xlu0 %1305  ;;  %v1331_v38 = vcvt.s32.f32 %v1329_v23 }
 0x361   :  { %vm1307_vm5 = vcmp.eq.f32.partialorder %v4382_v13, %v4724_v3  ;;  %v1226_v10 = vpop.xlane.xlu2 %1225 }
 0x362   :  { %v1977_v7 = vpop.f32.mrf.mxu1  ;;  %v1308_v19 = vsel %vm1307_vm5, %v1303_v49, inf  ;;  %v1227_v1 = vcvt.f32.s32 %v1226_v10 }
 0x363   :  { %1309 = vmin.xlane.f32.xlu1 %v1308_v19 }
 0x364   :  { %v1590_v18 = vpop.xlane.xlu1 %1589  ;;  %v1230_v57 = vadd.s32 %v1229_v25, %v1227_v1 }
 0x365   :  { %v1591_v37 = vcvt.f32.s32 %v1590_v18 }
 0x366   :  { %vm1684_vm8 = vcmp.eq.s32.totalorder %v3302_v52, %v1230_v57 }
 0x367   :  { %v4739_v19 = vadd.s32 %v1593_v24, %v1591_v37  ;;  %v2674_v25 = vsel %vm1684_vm8, 1.0, %v5568_v16 }
 0x368   :  { %v2146_v36 = vpop.f32.mrf.mxu2 }
 0x369   :  { %v2147_v41 = vadd.f32 %v2146_v36, %v1977_v7  ;;  %v1579_v7 = vshll.u32 %v1578_v6, 16  ;;  %v1315_v36 = vand.u32 65535, %v4446_v29  ;;  %vm5505_vm13 = vcmp.eq.s32.totalorder %v3302_v52, %v4739_v19  ;;  %v2939_v29 = vld [vmem:[%s5432_s0 + $0x98] sm:$0xff] }
 0x36a   :  { %v1979_v51 = vpop.f32.mrf.mxu1  ;;  %vm5662_vm10 = vcmp.eq.s32.totalorder %v3302_v52, %v4739_v19 }
 0x36b   :  { %2279 = vst [vmem:[%s5435_s4 + $0x90] sm:$0xff] %v2147_v41  ;;  %v2343_v13 = vsub.f32 %v2147_v41, %v2938_v50 }
 0x36c   :  { %v1212_v8 = vpop.xlane.xlu1 %1211 }
 0x36d   :  { %v2407_v32 = vmul.f32 %v2343_v13, %v2343_v13  ;;  %v1576_v12 = vpop.xlane.xlu0 %1575  ;;  %v1213_v49 = vcvt.f32.s32 %v1212_v8  ;;  %v1242_v8 = vcvt.f32.s32 %v4421_v61 }
 0x36e   :  { %v1577_v18 = vcvt.f32.s32 %v1576_v12 }
 0x36f   :  { %v2470_v10 = vadd.f32 %v2469_v15, %v2407_v32  ;;  %v1216_v11 = vadd.s32 %v1215_v58, %v1213_v49 }
 0x370   :  { %v4742_v59 = vadd.s32 %v1579_v7, %v1577_v18  ;;  %v2148_v41 = vpop.f32.mrf.mxu2 }
 0x371   :  { %v2149_v43 = vadd.f32 %v2148_v41, %v1979_v51  ;;  %v4744_v50 = vpop.xlane.xlu2 %1333  ;;  %vm1683_vm7 = vcmp.eq.s32.totalorder %v3302_v52, %v1216_v11  ;;  %v1317_v51 = vcvt.s32.f32 %v1315_v36  ;;  %v1243_v11 = vshll.u32 %v1242_v8, 16 }
 0x372   :  { %vm1335_vm12 = vcmp.eq.f32.partialorder %v4456_v5, %v4744_v50  ;;  %v1982_v42 = vpop.f32.mrf.mxu1  ;;  %v2673_v15 = vsel %vm1683_vm7, 1.0, %v5568_v16  ;;  %vm2769_vm5 = vmpackc.low %vm1684_vm8, %vm1683_vm7  ;;  %vm5508_vm15 = vcmp.eq.s32.totalorder %v3302_v52, %v4742_v59  ;;  %v1256_v36 = vcvt.f32.s32 %v4468_v47 }
 0x373   :  { %2280 = vst [vmem:[%s5435_s4 + $0x98] sm:$0xff] %v2149_v43  ;;  %v2344_v5 = vsub.f32 %v2149_v43, %v2939_v29  ;;  %2770 = vmatmul.msk.bf16.gmra.mxu1 %vm2769_vm5, %v5572_v56  ;;  %v2558_v1 = vadd.f32 %v2673_v15, %v4708_v63  ;;  %vm4771_vm7 = vmpackc.low %vm5505_vm13, %vm5508_vm15  ;;  %2834 = vmatmul.msk.bf16.gmra.mxu2 %vm2769_vm5, %v5572_v56  ;;  %v1336_v37 = vsel %vm1335_vm12, %v1331_v38, inf }
 0x374   :  { %2796 = vmatmul.msk.bf16.gmra.mxu3 %vm4771_vm7, %v5572_v56  ;;  %1337 = vmin.xlane.f32.xlu2 %v1336_v37  ;;  %v4782_v63 = vpop.xlane.xlu1 %1319  ;;  %v1257_v47 = vshll.u32 %v1256_v36, 16 }
 0x375   :  { %v2408_v13 = vmul.f32 %v2344_v5, %v2344_v5  ;;  %v2559_v58 = vadd.f32 %v2674_v25, %v2558_v1  ;;  %v592_v24 = vpop.xlane.xlu0 %591  ;;  %vm1321_vm13 = vcmp.eq.f32.partialorder %v4466_v26, %v4782_v63 }
 0x376   :  { %vm673_vm12 = vcmp.eq.f32.partialorder %v4471_v53, %v592_v24  ;;  %v1322_v23 = vsel %vm1321_vm13, %v1317_v51, inf  ;;  %v2940_v53 = vld [vmem:[%s5432_s0 + $0xa0] sm:$0xff] }
 0x377   :  { %v2471_v57 = vadd.f32 %v2470_v10, %v2408_v13  ;;  %v4789_v32 = vsel %vm673_vm12, %v3302_v52, 128  ;;  %1323 = vmin.xlane.f32.xlu1 %v1322_v23 }
 0x378   :  { %v1400_v12 = vshra.s32 %v4789_v32, 16  ;;  %v2151_v49 = vpop.f32.mrf.mxu2  ;;  %v1399_v4 = vand.u32 65535, %v4789_v32 }
 0x379   :  { %v2152_v7 = vadd.f32 %v2151_v49, %v1982_v42  ;;  %v1240_v18 = vpop.xlane.xlu2 %1239 }
 0x37a   :  { %v4793_v41 = vcvt.s32.f32 %v1400_v12  ;;  %v1241_v26 = vcvt.f32.s32 %v1240_v18  ;;  %v1984_v61 = vpop.f32.mrf.mxu1 }
 0x37b   :  { %2281 = vst [vmem:[%s5435_s4 + $0xa0] sm:$0xff] %v2152_v7  ;;  %v2345_v10 = vsub.f32 %v2152_v7, %v2940_v53  ;;  %v1343_v53 = vand.u32 65535, %v4552_v31 }
 0x37c   :  { %v1244_v38 = vadd.s32 %v1243_v11, %v1241_v26  ;;  %1403 = vmin.xlane.f32.xlu0 %v4793_v41  ;;  %v594_v43 = vpop.xlane.xlu1 %593  ;;  %v1620_v26 = vcvt.f32.s32 %v4482_v55 }
 0x37d   :  { %v2409_v42 = vmul.f32 %v2345_v10, %v2345_v10  ;;  %v1254_v15 = vpop.xlane.xlu0 %1253  ;;  %vm674_vm13 = vcmp.eq.f32.partialorder %v4499_v33, %v594_v43  ;;  %v1606_v10 = vcvt.f32.s32 %v4555_v28 }
 0x37e   :  { %v1255_v29 = vcvt.f32.s32 %v1254_v15  ;;  %v4804_v5 = vsel %vm674_vm13, %v3302_v52, 128  ;;  %vm1685_vm8 = vcmp.eq.s32.totalorder %v3302_v52, %v1244_v38 }
 0x37f   :  { %v2472_v1 = vadd.f32 %v2471_v57, %v2409_v42  ;;  %v1414_v37 = vshra.s32 %v4804_v5, 16  ;;  %v2675_v51 = vsel %vm1685_vm8, 1.0, %v5568_v16  ;;  %v2941_v57 = vld [vmem:[%s5432_s0 + $0xa8] sm:$0xff]  ;;  %v2942_v42 = vld [vmem:[%s5432_s0 + $0xb0] sm:$0xff] }
 0x380   :  { %v1258_v25 = vadd.s32 %v1257_v47, %v1255_v29  ;;  %v2153_v13 = vpop.f32.mrf.mxu2  ;;  %v2560_v24 = vadd.f32 %v2675_v51, %v2559_v58  ;;  %v1621_v47 = vshll.u32 %v1620_v26, 16  ;;  %v1357_v29 = vand.u32 65535, %v4565_v27 }
 0x381   :  { %v4811_v8 = vcvt.s32.f32 %v1414_v37  ;;  %v2154_v33 = vadd.f32 %v2153_v13, %v1984_v61  ;;  %v1607_v37 = vshll.u32 %v1606_v10, 16 }
 0x382   :  { %v1987_v23 = vpop.f32.mrf.mxu1  ;;  %vm1686_vm5 = vcmp.eq.s32.totalorder %v3302_v52, %v1258_v25 }
 0x383   :  { %2282 = vst [vmem:[%s5435_s4 + $0xa8] sm:$0xff] %v2154_v33  ;;  %v2346_v12 = vsub.f32 %v2154_v33, %v2941_v57  ;;  %1417 = vmin.xlane.f32.xlu1 %v4811_v8  ;;  %v2676_v49 = vsel %vm1686_vm5, 1.0, %v5568_v16  ;;  %vm2771_vm12 = vmpackc.low %vm1686_vm5, %vm1685_vm8 }
 0x384   :  { %2772 = vmatmul.msk.bf16.gmra.mxu1 %vm2771_vm12, %v5572_v56  ;;  %v4825_v58 = vadd.f32 %v2676_v49, %v2560_v24  ;;  %2836 = vmatmul.msk.bf16.gmra.mxu2 %vm2771_vm12, %v5572_v56 }
 0x385   :  { %v2410_v7 = vmul.f32 %v2346_v12, %v2346_v12  ;;  %v1618_v18 = vpop.xlane.xlu0 %1617 }
 0x386   :  { %v1619_v38 = vcvt.f32.s32 %v1618_v18 }
 0x387   :  { %v2473_v11 = vadd.f32 %v2472_v1, %v2410_v7  ;;  %v1345_v1 = vcvt.s32.f32 %v1343_v53 }
 0x388   :  { %v2156_v36 = vpop.f32.mrf.mxu2  ;;  %v4840_v28 = vadd.s32 %v1621_v47, %v1619_v38 }
 0x389   :  { %v2157_v61 = vadd.f32 %v2156_v36, %v1987_v23  ;;  %v1359_v23 = vcvt.s32.f32 %v1357_v29  ;;  %v1270_v36 = vcvt.f32.s32 %v4536_v45  ;;  %v2944_v45 = vld [vmem:[%s5432_s0 + $0xc0] sm:$0xff] }
 0x38a   :  { %v1989_v43 = vpop.f32.mrf.mxu1  ;;  %vm5506_vm12 = vcmp.eq.s32.totalorder %v3302_v52, %v4840_v28 }
 0x38b   :  { %2283 = vst [vmem:[%s5435_s4 + $0xb0] sm:$0xff] %v2157_v61  ;;  %v2347_v15 = vsub.f32 %v2157_v61, %v2942_v42  ;;  %v1271_v47 = vshll.u32 %v1270_v36, 16 }
 0x38c   :  { %v1604_v31 = vpop.xlane.xlu2 %1603 }
 0x38d   :  { %v2411_v55 = vmul.f32 %v2347_v15, %v2347_v15  ;;  %v1605_v13 = vcvt.f32.s32 %v1604_v31 }
 0x38e   :  { %v4838_v51 = vpop.xlane.xlu0 %1347 }
 0x38f   :  { %v2474_v25 = vadd.f32 %v2473_v11, %v2411_v55  ;;  %vm1349_vm13 = vcmp.eq.f32.partialorder %v4562_v48, %v4838_v51  ;;  %v4844_v57 = vadd.s32 %v1607_v37, %v1605_v13  ;;  %v2943_v48 = vld [vmem:[%s5432_s0 + $0xb8] sm:$0xff] }
 0x390   :  { %v2158_v24 = vpop.f32.mrf.mxu2  ;;  %v1350_v33 = vsel %vm1349_vm13, %v1345_v1, inf }
 0x391   :  { %v2159_v12 = vadd.f32 %v2158_v24, %v1989_v43  ;;  %v4846_v27 = vpop.xlane.xlu1 %1361  ;;  %1351 = vmin.xlane.f32.xlu2 %v1350_v33  ;;  %vm5507_vm5 = vcmp.eq.s32.totalorder %v3302_v52, %v4844_v57  ;;  %v1284_v43 = vcvt.f32.s32 %v4603_v2 }
 0x392   :  { %vm1363_vm8 = vcmp.eq.f32.partialorder %v4570_v34, %v4846_v27  ;;  %v1992_v49 = vpop.f32.mrf.mxu1  ;;  %vm4866_vm13 = vmpackc.low %vm5506_vm12, %vm5507_vm5  ;;  %v2957_v34 = vld [vmem:[%s5432_s0 + $0x128] sm:$0xff] }
 0x393   :  { %2284 = vst [vmem:[%s5435_s4 + $0xb8] sm:$0xff] %v2159_v12  ;;  %v2348_v7 = vsub.f32 %v2159_v12, %v2943_v48  ;;  %v1364_v18 = vsel %vm1363_vm8, %v1359_v23, inf  ;;  %2798 = vmatmul.msk.bf16.gmra.mxu3 %vm4866_vm13, %v5572_v56  ;;  %v1285_v31 = vshll.u32 %v1284_v43, 16 }
 0x394   :  { %1365 = vmin.xlane.f32.xlu0 %v1364_v18 }
 0x395   :  { %v2412_v11 = vmul.f32 %v2348_v7, %v2348_v7 }
 0x396   :  { %v598_v26 = vpop.xlane.xlu0 %597 }
 0x397   :  { %v2475_v61 = vadd.f32 %v2474_v25, %v2412_v11  ;;  %vm676_vm8 = vcmp.eq.f32.partialorder %v4582_v20, %v598_v26  ;;  %v2945_v11 = vld [vmem:[%s5432_s0 + $0xc8] sm:$0xff] }
 0x398   :  { %v4876_v53 = vsel %vm676_vm8, %v3302_v52, 128 }
 0x399   :  { %v2161_v10 = vpop.f32.mrf.mxu2  ;;  %v1442_v38 = vshra.s32 %v4876_v53, 16  ;;  %v1268_v15 = vpop.xlane.xlu1 %1267 }
 0x39a   :  { %v2162_v42 = vadd.f32 %v2161_v10, %v1992_v49  ;;  %v1269_v29 = vcvt.f32.s32 %v1268_v15  ;;  %v1994_v55 = vpop.f32.mrf.mxu1 }
 0x39b   :  { %v4880_v1 = vcvt.s32.f32 %v1442_v38 }
 0x39c   :  { %2285 = vst [vmem:[%s5435_s4 + $0xc0] sm:$0xff] %v2162_v42  ;;  %v2349_v20 = vsub.f32 %v2162_v42, %v2944_v45  ;;  %v1272_v37 = vadd.s32 %v1271_v47, %v1269_v29  ;;  %v1282_v2 = vpop.xlane.xlu2 %1281  ;;  %v2946_v29 = vld [vmem:[%s5432_s0 + $0xd0] sm:$0xff] }
 0x39d   :  { %v1283_v13 = vcvt.f32.s32 %v1282_v2  ;;  %1445 = vmin.xlane.f32.xlu2 %v4880_v1 }
 0x39e   :  { %v2413_v25 = vmul.f32 %v2349_v20, %v2349_v20  ;;  %vm1687_vm8 = vcmp.eq.s32.totalorder %v3302_v52, %v1272_v37 }
 0x39f   :  { %v1286_v33 = vadd.s32 %v1285_v31, %v1283_v13  ;;  %v2677_v23 = vsel %vm1687_vm8, 1.0, %v5568_v16  ;;  %v2947_v31 = vld [vmem:[%s5432_s0 + $0xd8] sm:$0xff] }
 0x3a0   :  { %v2476_v24 = vadd.f32 %v2475_v61, %v2413_v25  ;;  %v2562_v49 = vadd.f32 %v2677_v23, %v4825_v58 }
 0x3a1   :  { %v2163_v12 = vpop.f32.mrf.mxu2  ;;  %vm1688_vm12 = vcmp.eq.s32.totalorder %v3302_v52, %v1286_v33 }
 0x3a2   :  { %v2164_v48 = vadd.f32 %v2163_v12, %v1994_v55  ;;  %v1997_v7 = vpop.f32.mrf.mxu1  ;;  %v2678_v18 = vsel %vm1688_vm12, 1.0, %v5568_v16  ;;  %vm2773_vm5 = vmpackc.low %vm1688_vm12, %vm1687_vm8 }
 0x3a3   :  { %2774 = vmatmul.msk.bf16.gmra.mxu1 %vm2773_vm5, %v5572_v56  ;;  %v4901_v26 = vadd.f32 %v2678_v18, %v2562_v49  ;;  %2838 = vmatmul.msk.bf16.gmra.mxu2 %vm2773_vm5, %v5572_v56 }
 0x3a4   :  { %2286 = vst [vmem:[%s5435_s4 + $0xc8] sm:$0xff] %v2164_v48  ;;  %v2350_v36 = vsub.f32 %v2164_v48, %v2945_v11  ;;  %v596_v58 = vpop.xlane.xlu2 %595  ;;  %v1648_v48 = vcvt.f32.s32 %v4658_v17  ;;  %v1634_v11 = vcvt.f32.s32 %v4669_v46  ;;  %v2949_v46 = vld [vmem:[%s5432_s0 + $0xe8] sm:$0xff] }
 0x3a5   :  { %vm675_vm15 = vcmp.eq.f32.partialorder %v4611_v62, %v596_v58 }
 0x3a6   :  { %v2414_v61 = vmul.f32 %v2350_v36, %v2350_v36  ;;  %v4906_v10 = vsel %vm675_vm15, %v3302_v52, 128 }
 0x3a7   :  { %v1428_v38 = vshra.s32 %v4906_v10, 16 }
 0x3a8   :  { %v2477_v43 = vadd.f32 %v2476_v24, %v2414_v61  ;;  %v1649_v61 = vshll.u32 %v1648_v48, 16 }
 0x3a9   :  { %v2166_v42 = vpop.f32.mrf.mxu2  ;;  %v4909_v15 = vcvt.s32.f32 %v1428_v38 }
 0x3aa   :  { %v2167_v47 = vadd.f32 %v2166_v42, %v1997_v7  ;;  %v1999_v62 = vpop.f32.mrf.mxu1  ;;  %v2948_v7 = vld [vmem:[%s5432_s0 + $0xe0] sm:$0xff]  ;;  %v1635_v42 = vshll.u32 %v1634_v11, 16  ;;  %v1312_v11 = vcvt.f32.s32 %v4724_v3 }
 0x3ab   :  { %1431 = vmin.xlane.f32.xlu1 %v4909_v15 }
 0x3ac   :  { %2287 = vst [vmem:[%s5435_s4 + $0xd0] sm:$0xff] %v2167_v47  ;;  %v2351_v55 = vsub.f32 %v2167_v47, %v2946_v29  ;;  %v1371_v47 = vand.u32 65535, %v4681_v22  ;;  %v1298_v22 = vcvt.f32.s32 %v4690_v9 }
 0x3ae   :  { %v2415_v45 = vmul.f32 %v2351_v55, %v2351_v55 }
 0x3b0   :  { %v2478_v20 = vadd.f32 %v2477_v43, %v2415_v45 }
 0x3b1   :  { %v2168_v37 = vpop.f32.mrf.mxu2 }
 0x3b2   :  { %v2169_v2 = vadd.f32 %v2168_v37, %v1999_v62  ;;  %v2002_v24 = vpop.f32.mrf.mxu1 }
 0x3b4   :  { %2288 = vst [vmem:[%s5435_s4 + $0xd8] sm:$0xff] %v2169_v2  ;;  %v2352_v25 = vsub.f32 %v2169_v2, %v2947_v31  ;;  %v1373_v2 = vcvt.s32.f32 %v1371_v47 }
 0x3b6   :  { %v2416_v13 = vmul.f32 %v2352_v25, %v2352_v25 }
 0x3b8   :  { %v2479_v33 = vadd.f32 %v2478_v20, %v2416_v13  ;;  %v1646_v12 = vpop.xlane.xlu2 %1645 }
 0x3b9   :  { %v2171_v23 = vpop.f32.mrf.mxu2  ;;  %v1647_v36 = vcvt.f32.s32 %v1646_v12 }
 0x3ba   :  { %v2172_v49 = vadd.f32 %v2171_v23, %v2002_v24  ;;  %v2004_v29 = vpop.f32.mrf.mxu1  ;;  %v1299_v23 = vshll.u32 %v1298_v22, 16 }
 0x3bb   :  { %v4933_v17 = vadd.s32 %v1649_v61, %v1647_v36 }
 0x3bc   :  { %2289 = vst [vmem:[%s5435_s4 + $0xe0] sm:$0xff] %v2172_v49  ;;  %v2353_v18 = vsub.f32 %v2172_v49, %v2948_v7  ;;  %v1385_v7 = vand.u32 65535, %v4711_v14 }
 0x3bd   :  { %vm5510_vm5 = vcmp.eq.s32.totalorder %v3302_v52, %v4933_v17 }
 0x3be   :  { %v2417_v58 = vmul.f32 %v2353_v18, %v2353_v18  ;;  %v1387_v18 = vcvt.s32.f32 %v1385_v7 }
 0x3bf   :  { %v1632_v38 = vpop.xlane.xlu1 %1631 }
 0x3c0   :  { %v2480_v43 = vadd.f32 %v2479_v33, %v2417_v58  ;;  %v1633_v55 = vcvt.f32.s32 %v1632_v38  ;;  %v1313_v38 = vshll.u32 %v1312_v11, 16 }
 0x3c1   :  { %v2173_v62 = vpop.f32.mrf.mxu2 }
 0x3c2   :  { %v2174_v45 = vadd.f32 %v2173_v62, %v2004_v29  ;;  %v4935_v20 = vadd.s32 %v1635_v42, %v1633_v55  ;;  %v2950_v62 = vld [vmem:[%s5432_s0 + $0xf0] sm:$0xff] }
 0x3c4   :  { %2290 = vst [vmem:[%s5435_s4 + $0xe8] sm:$0xff] %v2174_v45  ;;  %v2354_v37 = vsub.f32 %v2174_v45, %v2949_v46  ;;  %v4944_v31 = vpop.xlane.xlu2 %1375  ;;  %vm5511_vm15 = vcmp.eq.s32.totalorder %v3302_v52, %v4935_v20 }
 0x3c5   :  { %vm1377_vm12 = vcmp.eq.f32.partialorder %v4687_v54, %v4944_v31  ;;  %vm4958_vm8 = vmpackc.low %vm5510_vm5, %vm5511_vm15 }
 0x3c6   :  { %v2418_v25 = vmul.f32 %v2354_v37, %v2354_v37  ;;  %2800 = vmatmul.msk.bf16.gmra.mxu3 %vm4958_vm8, %v5572_v56  ;;  %v1378_v13 = vsel %vm1377_vm12, %v1373_v2, inf }
 0x3c7   :  { %1379 = vmin.xlane.f32.xlu0 %v1378_v13  ;;  %v1296_v33 = vpop.xlane.xlu0 %1295 }
 0x3c8   :  { %v2481_v24 = vadd.f32 %v2480_v43, %v2418_v25  ;;  %v1297_v54 = vcvt.f32.s32 %v1296_v33  ;;  %v1340_v25 = vcvt.f32.s32 %v4744_v50  ;;  %v1326_v33 = vcvt.f32.s32 %v4782_v63 }
 0x3ca   :  { %v1300_v12 = vadd.s32 %v1299_v23, %v1297_v54  ;;  %v1327_v63 = vshll.u32 %v1326_v33, 16 }
 0x3cc   :  { %vm1689_vm9 = vcmp.eq.s32.totalorder %v3302_v52, %v1300_v12 }
 0x3cd   :  { %v2679_v49 = vsel %vm1689_vm9, 1.0, %v5568_v16 }
 0x3ce   :  { %v2564_v48 = vadd.f32 %v2679_v49, %v4901_v26  ;;  %v1341_v49 = vshll.u32 %v1340_v25, 16 }
 0x3d3   :  { %v4972_v36 = vpop.xlane.xlu0 %1389 }
 0x3d4   :  { %vm1391_vm12 = vcmp.eq.f32.partialorder %v4721_v60, %v4972_v36  ;;  %v4983_v60 = vpop.f32.mrf.mxu3 }
 0x3d5   :  { %v1392_v58 = vsel %vm1391_vm12, %v1387_v18, inf }
 0x3d6   :  { %1393 = vmin.xlane.f32.xlu1 %v1392_v58  ;;  %2852 = vmatmul.msk.bf16.vlgmr.msra.gmra.mxu3 %vm4250_vm1, %v5572_v56  ;;  %v1310_v43 = vpop.xlane.xlu1 %1309  ;;  %v2007_v47 = vpop.f32.mrf.mxu1 }
 0x3d7   :  { %v1311_v42 = vcvt.f32.s32 %v1310_v43 }
 0x3d9   :  { %v1314_v26 = vadd.s32 %v1313_v38, %v1311_v42  ;;  %v1401_v38 = vcvt.s32.f32 %v1399_v4 }
 0x3db   :  { %vm1690_vm5 = vcmp.eq.s32.totalorder %v3302_v52, %v1314_v26 }
 0x3dc   :  { %v2176_v14 = vpop.f32.mrf.mxu2  ;;  %v2680_v3 = vsel %vm1690_vm5, 1.0, %v5568_v16  ;;  %vm2775_vm15 = vmpackc.low %vm1690_vm5, %vm1689_vm9  ;;  %v4998_v23 = vpop.f32.mrf.mxu3 }
 0x3dd   :  { %v2177_v29 = vadd.f32 %v2176_v14, %v2007_v47  ;;  %2776 = vmatmul.msk.bf16.gmra.mxu1 %vm2775_vm15, %v5572_v56  ;;  %v2565_v55 = vadd.f32 %v2680_v3, %v2564_v48  ;;  %2840 = vmatmul.msk.bf16.gmra.mxu2 %vm2775_vm15, %v5572_v56  ;;  %v1413_v3 = vand.u32 65535, %v4804_v5  ;;  %v2952_v5 = vld [vmem:[%s5432_s0 + $0x100] sm:$0xff] }
 0x3de   :  { %v2009_v2 = vpop.f32.mrf.mxu1 }
 0x3df   :  { %2291 = vst [vmem:[%s5435_s4 + $0xf0] sm:$0xff] %v2177_v29  ;;  %v2355_v45 = vsub.f32 %v2177_v29, %v2950_v62 }
 0x3e1   :  { %v2419_v46 = vmul.f32 %v2355_v45, %v2355_v45  ;;  %v1415_v45 = vcvt.s32.f32 %v1413_v3 }
 0x3e3   :  { %v2482_v37 = vadd.f32 %v2481_v24, %v2419_v46  ;;  %v2951_v24 = vld [vmem:[%s5432_s0 + $0xf8] sm:$0xff] }
 0x3e4   :  { %v2178_v22 = vpop.f32.mrf.mxu2  ;;  %v5007_v43 = vpop.f32.mrf.mxu3 }
 0x3e5   :  { %v2179_v13 = vadd.f32 %v2178_v22, %v2009_v2 }
 0x3e6   :  { %2854 = vmatmul.msk.bf16.gmra.mxu3 %vm4402_vm6, %v5572_v56 }
 0x3e7   :  { %2292 = vst [vmem:[%s5435_s4 + $0xf8] sm:$0xff] %v2179_v13  ;;  %v2356_v54 = vsub.f32 %v2179_v13, %v2951_v24  ;;  %v1338_v12 = vpop.xlane.xlu2 %1337 }
 0x3e8   :  { %v1339_v50 = vcvt.f32.s32 %v1338_v12  ;;  %v2953_v12 = vld [vmem:[%s5432_s0 + $0x108] sm:$0xff] }
 0x3e9   :  { %v2420_v48 = vmul.f32 %v2356_v54, %v2356_v54 }
 0x3ea   :  { %v1324_v7 = vpop.xlane.xlu1 %1323  ;;  %v1342_v11 = vadd.s32 %v1341_v49, %v1339_v50 }
 0x3eb   :  { %v2483_v18 = vadd.f32 %v2482_v37, %v2420_v48  ;;  %v1325_v58 = vcvt.f32.s32 %v1324_v7  ;;  %v1368_v48 = vcvt.f32.s32 %v4846_v27  ;;  %v2954_v27 = vld [vmem:[%s5432_s0 + $0x110] sm:$0xff] }
 0x3ec   :  { %vm1692_vm6 = vcmp.eq.s32.totalorder %v3302_v52, %v1342_v11  ;;  %v5027_v2 = vpop.f32.mrf.mxu3 }
 0x3ed   :  { %v1328_v61 = vadd.s32 %v1327_v63, %v1325_v58  ;;  %v2682_v29 = vsel %vm1692_vm6, 1.0, %v5568_v16 }
 0x3ef   :  { %v5009_v42 = vpop.xlane.xlu0 %1403  ;;  %vm1691_vm1 = vcmp.eq.s32.totalorder %v3302_v52, %v1328_v61 }
 0x3f0   :  { %vm1405_vm9 = vcmp.eq.f32.partialorder %v4793_v41, %v5009_v42  ;;  %v2681_v26 = vsel %vm1691_vm1, 1.0, %v5568_v16  ;;  %vm2777_vm15 = vmpackc.low %vm1692_vm6, %vm1691_vm1  ;;  %v2012_v32 = vpop.f32.mrf.mxu1 }
 0x3f1   :  { %v1406_v47 = vsel %vm1405_vm9, %v1401_v38, inf  ;;  %2778 = vmatmul.msk.bf16.gmra.mxu1 %vm2777_vm15, %v5572_v56  ;;  %v2566_v14 = vadd.f32 %v2681_v26, %v2565_v55  ;;  %2842 = vmatmul.msk.bf16.gmra.mxu2 %vm2777_vm15, %v5572_v56  ;;  %v1369_v38 = vshll.u32 %v1368_v48, 16 }
 0x3f2   :  { %1407 = vmin.xlane.f32.xlu2 %v1406_v47 }
 0x3f3   :  { %v2567_v62 = vadd.f32 %v2682_v29, %v2566_v14 }
 0x3f4   :  { %v5036_v54 = vpop.f32.mrf.mxu3 }
 0x3f6   :  { %2856 = vmatmul.msk.bf16.gmra.mxu3 %vm4527_vm11, %v5572_v56  ;;  %v5023_v41 = vpop.xlane.xlu1 %1417  ;;  %v2181_v46 = vpop.f32.mrf.mxu2 }
 0x3f7   :  { %vm1419_vm5 = vcmp.eq.f32.partialorder %v4811_v8, %v5023_v41  ;;  %v2182_v55 = vadd.f32 %v2181_v46, %v2012_v32  ;;  %v1354_v8 = vcvt.f32.s32 %v4838_v51 }
 0x3f8   :  { %v1420_v37 = vsel %vm1419_vm5, %v1415_v45, inf  ;;  %v2014_v25 = vpop.f32.mrf.mxu1  ;;  %v1441_v45 = vand.u32 65535, %v4876_v53  ;;  %v2955_v53 = vld [vmem:[%s5432_s0 + $0x118] sm:$0xff] }
 0x3f9   :  { %2293 = vst [vmem:[%s5435_s4 + $0x100] sm:$0xff] %v2182_v55  ;;  %v2357_v35 = vsub.f32 %v2182_v55, %v2952_v5  ;;  %1421 = vmin.xlane.f32.xlu0 %v1420_v37  ;;  %v1355_v7 = vshll.u32 %v1354_v8, 16 }
 0x3fb   :  { %v2421_v22 = vmul.f32 %v2357_v35, %v2357_v35 }
 0x3fc   :  { %v5056_v3 = vpop.f32.mrf.mxu3 }
 0x3fd   :  { %v2484_v13 = vadd.f32 %v2483_v18, %v2421_v22 }
 0x3fe   :  { %v2183_v33 = vpop.f32.mrf.mxu2 }
 0x3ff   :  { %v2184_v24 = vadd.f32 %v2183_v33, %v2014_v25  ;;  %v1443_v25 = vcvt.s32.f32 %v1441_v45 }
 0x401   :  { %2294 = vst [vmem:[%s5435_s4 + $0x108] sm:$0xff] %v2184_v24  ;;  %v2358_v50 = vsub.f32 %v2184_v24, %v2953_v12  ;;  %v2017_v18 = vpop.f32.mrf.mxu1 }
 0x403   :  { %v2422_v49 = vmul.f32 %v2358_v50, %v2358_v50 }
 0x404   :  { %v1352_v63 = vpop.xlane.xlu2 %1351  ;;  %v5073_v8 = vpop.f32.mrf.mxu3 }
 0x405   :  { %v2485_v4 = vadd.f32 %v2484_v13, %v2422_v49  ;;  %v1353_v11 = vcvt.f32.s32 %v1352_v63 }
 0x406   :  { %2858 = vmatmul.msk.bf16.gmra.mxu3 %vm4650_vm2, %v5572_v56 }
 0x407   :  { %v1356_v51 = vadd.s32 %v1355_v7, %v1353_v11  ;;  %v1366_v58 = vpop.xlane.xlu0 %1365  ;;  %v2186_v61 = vpop.f32.mrf.mxu2 }
 0x408   :  { %v1367_v26 = vcvt.f32.s32 %v1366_v58  ;;  %v2187_v32 = vadd.f32 %v2186_v61, %v2017_v18 }
 0x409   :  { %vm1693_vm11 = vcmp.eq.s32.totalorder %v3302_v52, %v1356_v51  ;;  %v2019_v35 = vpop.f32.mrf.mxu1 }
 0x40a   :  { %v1370_v47 = vadd.s32 %v1369_v38, %v1367_v26  ;;  %2295 = vst [vmem:[%s5435_s4 + $0x110] sm:$0xff] %v2187_v32  ;;  %v2359_v14 = vsub.f32 %v2187_v32, %v2954_v27  ;;  %v2683_v30 = vsel %vm1693_vm11, 1.0, %v5568_v16 }
 0x40b   :  { %v2568_v29 = vadd.f32 %v2683_v30, %v2567_v62  ;;  %v1382_v30 = vcvt.f32.s32 %v4944_v31 }
 0x40c   :  { %v2423_v46 = vmul.f32 %v2359_v14, %v2359_v14  ;;  %vm1694_vm2 = vcmp.eq.s32.totalorder %v3302_v52, %v1370_v47  ;;  %v5079_v49 = vpop.f32.mrf.mxu3 }
 0x40d   :  { %v2684_v55 = vsel %vm1694_vm2, 1.0, %v5568_v16  ;;  %vm2779_vm12 = vmpackc.low %vm1694_vm2, %vm1693_vm11 }
 0x40e   :  { %v2486_v37 = vadd.f32 %v2485_v4, %v2423_v46  ;;  %2780 = vmatmul.msk.bf16.gmra.mxu1 %vm2779_vm12, %v5572_v56  ;;  %v2569_v5 = vadd.f32 %v2684_v55, %v2568_v29  ;;  %2844 = vmatmul.msk.bf16.gmra.mxu2 %vm2779_vm12, %v5572_v56  ;;  %v1383_v46 = vshll.u32 %v1382_v30, 16 }
 0x40f   :  { %v2188_v22 = vpop.f32.mrf.mxu2 }
 0x410   :  { %v2189_v13 = vadd.f32 %v2188_v22, %v2019_v35  ;;  %v5063_v33 = vpop.xlane.xlu2 %1445 }
 0x411   :  { %vm1447_vm1 = vcmp.eq.f32.partialorder %v4880_v1, %v5063_v33  ;;  %v1427_v1 = vand.u32 65535, %v4906_v10  ;;  %v2956_v10 = vld [vmem:[%s5432_s0 + $0x120] sm:$0xff] }
 0x412   :  { %2296 = vst [vmem:[%s5435_s4 + $0x118] sm:$0xff] %v2189_v13  ;;  %v2360_v62 = vsub.f32 %v2189_v13, %v2955_v53  ;;  %v1448_v24 = vsel %vm1447_vm1, %v1443_v25, inf  ;;  %v1396_v13 = vcvt.f32.s32 %v4972_v36  ;;  %vm5663_vm1 = vcmp.eq.s32.totalorder %v3302_v52, %v4844_v57 }
 0x413   :  { %1449 = vmin.xlane.f32.xlu2 %v1448_v24  ;;  %v1429_v48 = vcvt.s32.f32 %v1427_v1 }
 0x414   :  { %v2424_v12 = vmul.f32 %v2360_v62, %v2360_v62  ;;  %v5085_v18 = vpop.f32.mrf.mxu3  ;;  %v1397_v62 = vshll.u32 %v1396_v13, 16 }
 0x416   :  { %v2487_v50 = vadd.f32 %v2486_v37, %v2424_v12  ;;  %2860 = vmatmul.msk.bf16.gmra.mxu3 %vm4771_vm7, %v5572_v56 }
 0x41c   :  { %v5096_v26 = vpop.f32.mrf.mxu3 }
 0x41e   :  { %v5081_v63 = vpop.xlane.xlu1 %1431 }
 0x41f   :  { %vm1433_vm6 = vcmp.eq.f32.partialorder %v4909_v15, %v5081_v63 }
 0x420   :  { %v1434_v7 = vsel %vm1433_vm6, %v1429_v48, inf  ;;  %v2022_v4 = vpop.f32.mrf.mxu1  ;;  %vm5664_vm6 = vcmp.eq.s32.totalorder %v3302_v52, %v4840_v28 }
 0x421   :  { %1435 = vmin.xlane.f32.xlu1 %v1434_v7 }
 0x424   :  { %v5108_v29 = vpop.f32.mrf.mxu3 }
 0x426   :  { %2862 = vmatmul.msk.bf16.gmra.mxu3 %vm4866_vm13, %v5572_v56  ;;  %v2191_v6 = vpop.f32.mrf.mxu2 }
 0x427   :  { %v2192_v11 = vadd.f32 %v2191_v6, %v2022_v4 }
 0x428   :  { %v2024_v61 = vpop.f32.mrf.mxu1 }
 0x429   :  { %2297 = vst [vmem:[%s5435_s4 + $0x120] sm:$0xff] %v2192_v11  ;;  %v2361_v15 = vsub.f32 %v2192_v11, %v2956_v10  ;;  %v1410_v11 = vcvt.f32.s32 %v5009_v42 }
 0x42b   :  { %v2425_v51 = vmul.f32 %v2361_v15, %v2361_v15  ;;  %v1411_v42 = vshll.u32 %v1410_v11, 16 }
 0x42c   :  { %v5112_v22 = vpop.f32.mrf.mxu3 }
 0x42d   :  { %v2488_v58 = vadd.f32 %v2487_v50, %v2425_v51 }
 0x42e   :  { %v2193_v38 = vpop.f32.mrf.mxu2 }
 0x42f   :  { %v2194_v32 = vadd.f32 %v2193_v38, %v2024_v61 }
 0x431   :  { %2298 = vst [vmem:[%s5435_s4 + $0x128] sm:$0xff] %v2194_v32  ;;  %v2362_v47 = vsub.f32 %v2194_v32, %v2957_v34 }
 0x433   :  { %v2426_v27 = vmul.f32 %v2362_v47, %v2362_v47  ;;  %v1424_v47 = vcvt.f32.s32 %v5023_v41 }
 0x435   :  { %v2489_v14 = vadd.f32 %v2488_v58, %v2426_v27 }
 0x436   :  { %2864 = vmatmul.msk.bf16.gmra.mxu3 %vm4958_vm8, %v5572_v56 }
 0x43a   :  { %v1380_v45 = vpop.xlane.xlu0 %1379 }
 0x43b   :  { %v1381_v55 = vcvt.f32.s32 %v1380_v45 }
 0x43d   :  { %v1384_v37 = vadd.s32 %v1383_v46, %v1381_v55 }
 0x43f   :  { %vm1695_vm7 = vcmp.eq.s32.totalorder %v3302_v52, %v1384_v37  ;;  %v1425_v37 = vshll.u32 %v1424_v47, 16 }
 0x440   :  { %v2685_v35 = vsel %vm1695_vm7, 1.0, %v5568_v16 }
 0x441   :  { %v2570_v25 = vadd.f32 %v2685_v35, %v2569_v5 }
 0x449   :  { %v1394_v53 = vpop.xlane.xlu1 %1393  ;;  %v5115_v9 = vpop.f32.mrf.mxu3 }
 0x44a   :  { %v1395_v31 = vcvt.f32.s32 %v1394_v53 }
 0x44c   :  { %v1398_v24 = vadd.s32 %v1397_v62, %v1395_v31 }
 0x44e   :  { %vm1696_vm13 = vcmp.eq.s32.totalorder %v3302_v52, %v1398_v24 }
 0x44f   :  { %v2686_v12 = vsel %vm1696_vm13, 1.0, %v5568_v16  ;;  %vm2781_vm8 = vmpackc.low %vm1696_vm13, %vm1695_vm7  ;;  %vm5665_vm7 = vcmp.eq.s32.totalorder %v3302_v52, %v4935_v20  ;;  %vm5666_vm13 = vcmp.eq.s32.totalorder %v3302_v52, %v4933_v17 }
 0x450   :  { %2782 = vmatmul.msk.bf16.gmra.mxu1 %vm2781_vm8, %v5572_v56  ;;  %v2571_v50 = vadd.f32 %v2686_v12, %v2570_v25  ;;  %2846 = vmatmul.msk.bf16.gmra.mxu2 %vm2781_vm8, %v5572_v56  ;;  %v2703_v57 = vsel %vm5665_vm7, 1.0, %v5568_v16 }
 0x451   :  { %v5121_v1 = vpop.f32.mrf.mxu3 }
 0x459   :  { %v2226_v5 = vpop.f32.mrf.mxu3 }
 0x45a   :  { %v5124_v36 = vadd.f32 %v2226_v5, %v4983_v60  ;;  %v2027_v48 = vpop.f32.mrf.mxu1  ;;  %v2958_v60 = vld [vmem:[%s5432_s0 + $0x130] sm:$0xff] }
 0x45c   :  { %2311 = vst [vmem:[%s5435_s4 + $0x190] sm:$0xff] %v5124_v36 }
 0x460   :  { %v2196_v7 = vpop.f32.mrf.mxu2 }
 0x461   :  { %v2197_v4 = vadd.f32 %v2196_v7, %v2027_v48  ;;  %v2228_v6 = vpop.f32.mrf.mxu3 }
 0x462   :  { %v5132_v10 = vadd.f32 %v2228_v6, %v4998_v23  ;;  %v2029_v38 = vpop.f32.mrf.mxu1 }
 0x463   :  { %2299 = vst [vmem:[%s5435_s4 + $0x130] sm:$0xff] %v2197_v4  ;;  %v2363_v15 = vsub.f32 %v2197_v4, %v2958_v60 }
 0x464   :  { %2312 = vst [vmem:[%s5435_s4 + $0x198] sm:$0xff] %v5132_v10 }
 0x465   :  { %v2427_v51 = vmul.f32 %v2363_v15, %v2363_v15  ;;  %v1408_v58 = vpop.xlane.xlu2 %1407 }
 0x466   :  { %v1409_v61 = vcvt.f32.s32 %v1408_v58 }
 0x467   :  { %v2490_v23 = vadd.f32 %v2489_v14, %v2427_v51  ;;  %v2959_v14 = vld [vmem:[%s5432_s0 + $0x138] sm:$0xff] }
 0x468   :  { %v1412_v32 = vadd.s32 %v1411_v42, %v1409_v61  ;;  %v2198_v34 = vpop.f32.mrf.mxu2  ;;  %v2961_v42 = vld [vmem:[%s5432_s0 + $0x148] sm:$0xff] }
 0x469   :  { %v2199_v27 = vadd.f32 %v2198_v34, %v2029_v38  ;;  %v2231_v30 = vpop.f32.mrf.mxu3 }
 0x46a   :  { %v5146_v45 = vadd.f32 %v2231_v30, %v5007_v43  ;;  %vm1697_vm9 = vcmp.eq.s32.totalorder %v3302_v52, %v1412_v32 }
 0x46b   :  { %2300 = vst [vmem:[%s5435_s4 + $0x138] sm:$0xff] %v2199_v27  ;;  %v2364_v46 = vsub.f32 %v2199_v27, %v2959_v14  ;;  %v2687_v41 = vsel %vm1697_vm9, 1.0, %v5568_v16  ;;  %v1438_v14 = vcvt.f32.s32 %v5081_v63 }
 0x46c   :  { %2313 = vst [vmem:[%s5435_s4 + $0x1a0] sm:$0xff] %v5146_v45  ;;  %v1422_v43 = vpop.xlane.xlu0 %1421  ;;  %v2572_v55 = vadd.f32 %v2687_v41, %v2571_v50 }
 0x46d   :  { %v2428_v35 = vmul.f32 %v2364_v46, %v2364_v46  ;;  %v1423_v25 = vcvt.f32.s32 %v1422_v43 }
 0x46e   :  { %v2032_v31 = vpop.f32.mrf.mxu1 }
 0x46f   :  { %v2491_v13 = vadd.f32 %v2490_v23, %v2428_v35  ;;  %v1426_v53 = vadd.s32 %v1425_v37, %v1423_v25  ;;  %v2962_v35 = vld [vmem:[%s5432_s0 + $0x150] sm:$0xff] }
 0x471   :  { %v2233_v62 = vpop.f32.mrf.mxu3  ;;  %vm1698_vm15 = vcmp.eq.s32.totalorder %v3302_v52, %v1426_v53 }
 0x472   :  { %v5164_v24 = vadd.f32 %v2233_v62, %v5027_v2  ;;  %v2688_v12 = vsel %vm1698_vm15, 1.0, %v5568_v16  ;;  %vm2783_vm5 = vmpackc.low %vm1698_vm15, %vm1697_vm9  ;;  %v2960_v2 = vld [vmem:[%s5432_s0 + $0x140] sm:$0xff] }
 0x473   :  { %2784 = vmatmul.msk.bf16.gmra.mxu1 %vm2783_vm5, %v5572_v56  ;;  %v2573_v50 = vadd.f32 %v2688_v12, %v2572_v55  ;;  %2848 = vmatmul.msk.bf16.gmra.mxu2 %vm2783_vm5, %v5572_v56 }
 0x474   :  { %2314 = vst [vmem:[%s5435_s4 + $0x1a8] sm:$0xff] %v5164_v24  ;;  %v2201_v5 = vpop.f32.mrf.mxu2 }
 0x475   :  { %v2202_v48 = vadd.f32 %v2201_v5, %v2032_v31 }
 0x476   :  { %v2034_v15 = vpop.f32.mrf.mxu1 }
 0x477   :  { %2301 = vst [vmem:[%s5435_s4 + $0x140] sm:$0xff] %v2202_v48  ;;  %v2365_v7 = vsub.f32 %v2202_v48, %v2960_v2 }
 0x479   :  { %v2429_v4 = vmul.f32 %v2365_v7, %v2365_v7  ;;  %v2236_v6 = vpop.f32.mrf.mxu3 }
 0x47a   :  { %v5182_v11 = vadd.f32 %v2236_v6, %v5036_v54 }
 0x47b   :  { %v2492_v60 = vadd.f32 %v2491_v13, %v2429_v4  ;;  %v1439_v13 = vshll.u32 %v1438_v14, 16  ;;  %v2694_v14 = vsel %vm1704_vm4, 1.0, %v5568_v16  ;;  %vm5661_vm4 = vcmp.eq.s32.totalorder %v3302_v52, %v4742_v59 }
 0x47c   :  { %2315 = vst [vmem:[%s5435_s4 + $0x1b0] sm:$0xff] %v5182_v11  ;;  %v2203_v51 = vpop.f32.mrf.mxu2  ;;  %v2702_v59 = vsel %vm5664_vm6, 1.0, %v5568_v16 }
 0x47d   :  { %v2204_v58 = vadd.f32 %v2203_v51, %v2034_v15  ;;  %v2963_v15 = vld [vmem:[%s5432_s0 + $0x158] sm:$0xff] }
 0x47f   :  { %2302 = vst [vmem:[%s5435_s4 + $0x148] sm:$0xff] %v2204_v58  ;;  %v2366_v61 = vsub.f32 %v2204_v58, %v2961_v42 }
 0x481   :  { %v2430_v54 = vmul.f32 %v2366_v61, %v2366_v61  ;;  %v2238_v23 = vpop.f32.mrf.mxu3  ;;  %v2965_v61 = vld [vmem:[%s5432_s0 + $0x168] sm:$0xff] }
 0x482   :  { %v5195_v38 = vadd.f32 %v2238_v23, %v5056_v3  ;;  %v1452_v3 = vcvt.f32.s32 %v5063_v33 }
 0x483   :  { %v2493_v32 = vadd.f32 %v2492_v60, %v2430_v54  ;;  %v2692_v54 = vsel %vm1702_vm14, 1.0, %v5568_v16  ;;  %vm5657_vm14 = vcmp.eq.s32.totalorder %v3302_v52, %v4504_v21 }
 0x484   :  { %2316 = vst [vmem:[%s5435_s4 + $0x1b8] sm:$0xff] %v5195_v38 }
 0x486   :  { %v1450_v27 = vpop.xlane.xlu2 %1449 }
 0x487   :  { %v1451_v46 = vcvt.f32.s32 %v1450_v27  ;;  %v2693_v27 = vsel %vm1703_vm3, 1.0, %v5568_v16  ;;  %vm5660_vm3 = vcmp.eq.s32.totalorder %v3302_v52, %v5659_v0 }
 0x489   :  { %v2241_v34 = vpop.f32.mrf.mxu3 }
 0x48a   :  { %v5202_v47 = vadd.f32 %v2241_v34, %v5073_v8  ;;  %v1453_v8 = vshll.u32 %v1452_v3, 16 }
 0x48b   :  { %v2037_v30 = vpop.f32.mrf.mxu1 }
 0x48c   :  { %2317 = vst [vmem:[%s5435_s4 + $0x1c0] sm:$0xff] %v5202_v47  ;;  %v1454_v63 = vadd.s32 %v1453_v8, %v1451_v46 }
 0x48e   :  { %vm1700_vm11 = vcmp.eq.s32.totalorder %v3302_v52, %v1454_v63 }
 0x48f   :  { %v2690_v60 = vsel %vm1700_vm11, 1.0, %v5568_v16 }
 0x491   :  { %v2206_v41 = vpop.f32.mrf.mxu2  ;;  %v2243_v43 = vpop.f32.mrf.mxu3 }
 0x492   :  { %v2207_v55 = vadd.f32 %v2206_v41, %v2037_v30  ;;  %v5211_v37 = vadd.f32 %v2243_v43, %v5079_v49 }
 0x493   :  { %v2039_v12 = vpop.f32.mrf.mxu1 }
 0x494   :  { %2303 = vst [vmem:[%s5435_s4 + $0x150] sm:$0xff] %v2207_v55  ;;  %v2367_v25 = vsub.f32 %v2207_v55, %v2962_v35  ;;  %v1436_v33 = vpop.xlane.xlu1 %1435 }
 0x495   :  { %2318 = vst [vmem:[%s5435_s4 + $0x1c8] sm:$0xff] %v5211_v37  ;;  %v1437_v49 = vcvt.f32.s32 %v1436_v33 }
 0x496   :  { %v2431_v53 = vmul.f32 %v2367_v25, %v2367_v25  ;;  %v2698_v25 = vsel %vm5660_vm3, 1.0, %v5568_v16 }
 0x497   :  { %v1440_v62 = vadd.s32 %v1439_v13, %v1437_v49  ;;  %v2701_v49 = vsel %vm5663_vm1, 1.0, %v5568_v16 }
 0x498   :  { %v2494_v31 = vadd.f32 %v2493_v32, %v2431_v53 }
 0x499   :  { %vm1699_vm2 = vcmp.eq.s32.totalorder %v3302_v52, %v1440_v62  ;;  %v2208_v5 = vpop.f32.mrf.mxu2  ;;  %v2246_v48 = vpop.f32.mrf.mxu3 }
 0x49a   :  { %v2689_v2 = vsel %vm1699_vm2, 1.0, %v5568_v16  ;;  %v2209_v7 = vadd.f32 %v2208_v5, %v2039_v12  ;;  %v5227_v4 = vadd.f32 %v2246_v48, %v5085_v18  ;;  %vm2785_vm12 = vmpackc.low %vm1700_vm11, %vm1699_vm2  ;;  %v2691_v18 = vsel %vm1701_vm0, 1.0, %v5568_v16 }
 0x49b   :  { %v2574_v6 = vadd.f32 %v2689_v2, %v2573_v50  ;;  %2786 = vmatmul.msk.bf16.gmra.mxu1 %vm2785_vm12, %v5572_v56  ;;  %2850 = vmatmul.msk.bf16.gmra.mxu2 %vm2785_vm12, %v5572_v56  ;;  %vm5658_vm0 = vcmp.eq.s32.totalorder %v3302_v52, %v4632_v39  ;;  %v2699_v39 = vsel %vm5661_vm4, 1.0, %v5568_v16 }
 0x49c   :  { %2304 = vst [vmem:[%s5435_s4 + $0x158] sm:$0xff] %v2209_v7  ;;  %v2368_v51 = vsub.f32 %v2209_v7, %v2963_v15  ;;  %v2697_v55 = vsel %vm5658_vm0, 1.0, %v5568_v16 }
 0x49d   :  { %v2575_v58 = vadd.f32 %v2690_v60, %v2574_v6  ;;  %2319 = vst [vmem:[%s5435_s4 + $0x1d0] sm:$0xff] %v5227_v4 }
 0x49e   :  { %v2432_v50 = vmul.f32 %v2368_v51, %v2368_v51 }
 0x49f   :  { %v2576_v42 = vadd.f32 %v2691_v18, %v2575_v58 }
 0x4a0   :  { %v2495_v23 = vadd.f32 %v2494_v31, %v2432_v50 }
 0x4a1   :  { %v2577_v32 = vadd.f32 %v2692_v54, %v2576_v42  ;;  %v2248_v34 = vpop.f32.mrf.mxu3 }
 0x4a2   :  { %v5255_v30 = vadd.f32 %v2248_v34, %v5096_v26  ;;  %v2696_v26 = vsel %vm5657_vm14, 1.0, %v5568_v16 }
 0x4a3   :  { %v2578_v3 = vadd.f32 %v2693_v27, %v2577_v32 }
 0x4a4   :  { %2320 = vst [vmem:[%s5435_s4 + $0x1d8] sm:$0xff] %v5255_v30 }
 0x4a5   :  { %v2579_v46 = vadd.f32 %v2694_v14, %v2578_v3 }
 0x4a7   :  { %v2580_v41 = vadd.f32 %v2695_v44, %v2579_v46 }
 0x4a9   :  { %v2581_v43 = vadd.f32 %v2696_v26, %v2580_v41  ;;  %v2251_v40 = vpop.f32.mrf.mxu3 }
 0x4aa   :  { %v5278_v8 = vadd.f32 %v2251_v40, %v5108_v29  ;;  %v2700_v29 = vsel %vm5662_vm10, 1.0, %v5568_v16 }
 0x4ab   :  { %v2582_v35 = vadd.f32 %v2697_v55, %v2581_v43  ;;  %v2966_v43 = vld [vmem:[%s5432_s0 + $0x170] sm:$0xff] }
 0x4ac   :  { %2321 = vst [vmem:[%s5435_s4 + $0x1e0] sm:$0xff] %v5278_v8 }
 0x4ad   :  { %v2583_v21 = vadd.f32 %v2698_v25, %v2582_v35  ;;  %v2967_v35 = vld [vmem:[%s5432_s0 + $0x178] sm:$0xff] }
 0x4af   :  { %v2584_v33 = vadd.f32 %v2699_v39, %v2583_v21  ;;  %v2968_v21 = vld [vmem:[%s5432_s0 + $0x180] sm:$0xff] }
 0x4b1   :  { %v2585_v13 = vadd.f32 %v2700_v29, %v2584_v33  ;;  %v2253_v63 = vpop.f32.mrf.mxu3 }
 0x4b2   :  { %v5301_v53 = vadd.f32 %v2253_v63, %v5112_v22  ;;  %v2704_v22 = vsel %vm5666_vm13, 1.0, %v5568_v16 }
 0x4b3   :  { %v2586_v62 = vadd.f32 %v2701_v49, %v2585_v13 }
 0x4b4   :  { %2322 = vst [vmem:[%s5435_s4 + $0x1e8] sm:$0xff] %v5301_v53 }
 0x4b5   :  { %v2587_v19 = vadd.f32 %v2702_v59, %v2586_v62  ;;  %v2969_v59 = vld [vmem:[%s5432_s0 + $0x190] sm:$0xff] }
 0x4b7   :  { %v2588_v31 = vadd.f32 %v2703_v57, %v2587_v19  ;;  %v2375_v19 = vsub.f32 %v5124_v36, %v2969_v59  ;;  %v2972_v36 = vld [vmem:[%s5432_s0 + $0x1a0] sm:$0xff] }
 0x4b9   :  { %v2589_v12 = vadd.f32 %v2704_v22, %v2588_v31  ;;  %v2256_v28 = vpop.f32.mrf.mxu3  ;;  %v2970_v31 = vld [vmem:[%s5432_s0 + $0x188] sm:$0xff] }
 0x4ba   :  { %v5320_v5 = vadd.f32 %v2256_v28, %v5115_v9 }
 0x4bb   :  { %v2590_v48 = vrot.slane %v2589_v12, 4 }
 0x4bc   :  { %2323 = vst [vmem:[%s5435_s4 + $0x1f0] sm:$0xff] %v5320_v5 }
 0x4bd   :  { %v2591_v2 = vadd.f32 %v2590_v48, %v2589_v12  ;;  %v2971_v12 = vld [vmem:[%s5432_s0 + $0x198] sm:$0xff] }
 0x4be   :  { %v2376_v28 = vsub.f32 %v5132_v10, %v2971_v12  ;;  %v2974_v10 = vld [vmem:[%s5432_s0 + $0x1b0] sm:$0xff] }
 0x4bf   :  { %v2592_v20 = vrot.slane %v2591_v2, 2 }
 0x4c1   :  { %v2593_v7 = vadd.f32 %v2592_v20, %v2591_v2  ;;  %v2258_v6 = vpop.f32.mrf.mxu3  ;;  %v2439_v20 = vmul.f32 %v2375_v19, %v2375_v19 }
 0x4c2   :  { %v5327_v60 = vadd.f32 %v2258_v6, %v5121_v1  ;;  %v2964_v1 = vld [vmem:[%s5432_s0 + $0x160] sm:$0xff] }
 0x4c3   :  { %v2594_v52 = vrot.slane %v2593_v7, 1 }
 0x4c4   :  { %2324 = vst [vmem:[%s5435_s4 + $0x1f8] sm:$0xff] %v5327_v60 }
 0x4c5   :  { %v2595_v16 = vadd.f32 %v2594_v52, %v2593_v7  ;;  %v2377_v7 = vsub.f32 %v5146_v45, %v2972_v36  ;;  %v2440_v52 = vmul.f32 %v2376_v28, %v2376_v28  ;;  %v2975_v45 = vld [vmem:[%s5432_s0 + $0x1b8] sm:$0xff] }
 0x4c7   :  { %2596 = vst [vmem:[%s5436_s5] sm:$0x1] %v2595_v16  ;;  %v2973_v16 = vld [vmem:[%s5432_s0 + $0x1a8] sm:$0xff] }
 0x4cd   :  { %v2042_v17 = vpop.f32.mrf.mxu1 }
 0x4d3   :  { %v2211_v9 = vpop.f32.mrf.mxu2 }
 0x4d4   :  { %v2212_v15 = vadd.f32 %v2211_v9, %v2042_v17  ;;  %v2378_v17 = vsub.f32 %v5164_v24, %v2973_v16  ;;  %v2976_v24 = vld [vmem:[%s5432_s0 + $0x1c0] sm:$0xff] }
 0x4d5   :  { %v2044_v18 = vpop.f32.mrf.mxu1 }
 0x4d6   :  { %2305 = vst [vmem:[%s5435_s4 + $0x160] sm:$0xff] %v2212_v15  ;;  %v2369_v51 = vsub.f32 %v2212_v15, %v2964_v1  ;;  %v2441_v15 = vmul.f32 %v2377_v7, %v2377_v7  ;;  %v2379_v1 = vsub.f32 %v5182_v11, %v2974_v10  ;;  %v2977_v11 = vld [vmem:[%s5432_s0 + $0x1c8] sm:$0xff] }
 0x4d8   :  { %v2433_v58 = vmul.f32 %v2369_v51, %v2369_v51 }
 0x4da   :  { %v2496_v56 = vadd.f32 %v2495_v23, %v2433_v58  ;;  %v2442_v58 = vmul.f32 %v2378_v17, %v2378_v17 }
 0x4db   :  { %v2213_v50 = vpop.f32.mrf.mxu2 }
 0x4dc   :  { %v2214_v42 = vadd.f32 %v2213_v50, %v2044_v18  ;;  %v2443_v50 = vmul.f32 %v2379_v1, %v2379_v1 }
 0x4de   :  { %2306 = vst [vmem:[%s5435_s4 + $0x168] sm:$0xff] %v2214_v42  ;;  %v2370_v54 = vsub.f32 %v2214_v42, %v2965_v61  ;;  %v2381_v42 = vsub.f32 %v5202_v47, %v2976_v24  ;;  %v2979_v47 = vld [vmem:[%s5432_s0 + $0x1d8] sm:$0xff] }
 0x4e0   :  { %v2434_v32 = vmul.f32 %v2370_v54, %v2370_v54 }
 0x4e2   :  { %v2497_v34 = vadd.f32 %v2496_v56, %v2434_v32  ;;  %v2380_v56 = vsub.f32 %v5195_v38, %v2975_v45  ;;  %v2382_v32 = vsub.f32 %v5211_v37, %v2977_v11  ;;  %v2978_v38 = vld [vmem:[%s5432_s0 + $0x1d0] sm:$0xff]  ;;  %v2980_v37 = vld [vmem:[%s5432_s0 + $0x1e0] sm:$0xff] }
 0x4e4   :  { %v2444_v54 = vmul.f32 %v2380_v56, %v2380_v56 }
 0x4f0   :  { %v2047_v27 = vpop.f32.mrf.mxu1 }
 0x4f6   :  { %v2216_v3 = vpop.f32.mrf.mxu2 }
 0x4f7   :  { %v2217_v14 = vadd.f32 %v2216_v3, %v2047_v27  ;;  %v2445_v27 = vmul.f32 %v2381_v42, %v2381_v42  ;;  %v2383_v3 = vsub.f32 %v5227_v4, %v2978_v38  ;;  %v2981_v4 = vld [vmem:[%s5432_s0 + $0x1e8] sm:$0xff] }
 0x4f8   :  { %v2049_v23 = vpop.f32.mrf.mxu1 }
 0x4f9   :  { %2307 = vst [vmem:[%s5435_s4 + $0x170] sm:$0xff] %v2217_v14  ;;  %v2371_v40 = vsub.f32 %v2217_v14, %v2966_v43 }
 0x4fb   :  { %v2435_v25 = vmul.f32 %v2371_v40, %v2371_v40 }
 0x4fd   :  { %v2498_v63 = vadd.f32 %v2497_v34, %v2435_v25 }
 0x4fe   :  { %v2218_v46 = vpop.f32.mrf.mxu2 }
 0x4ff   :  { %v2219_v44 = vadd.f32 %v2218_v46, %v2049_v23  ;;  %v2446_v23 = vmul.f32 %v2382_v32, %v2382_v32  ;;  %v2384_v46 = vsub.f32 %v5255_v30, %v2979_v47  ;;  %v2982_v30 = vld [vmem:[%s5432_s0 + $0x1f0] sm:$0xff] }
 0x500   :  { %v2387_v25 = vsub.f32 %v5320_v5, %v2982_v30 }
 0x501   :  { %2308 = vst [vmem:[%s5435_s4 + $0x178] sm:$0xff] %v2219_v44  ;;  %v2372_v0 = vsub.f32 %v2219_v44, %v2967_v35  ;;  %v2448_v40 = vmul.f32 %v2384_v46, %v2384_v46 }
 0x503   :  { %v2436_v33 = vmul.f32 %v2372_v0, %v2372_v0 }
 0x505   :  { %v2499_v57 = vadd.f32 %v2498_v63, %v2436_v33 }
 0x518   :  { %v2052_v41 = vpop.f32.mrf.mxu1 }
 0x51e   :  { %v2221_v26 = vpop.f32.mrf.mxu2 }
 0x51f   :  { %v2222_v55 = vadd.f32 %v2221_v26, %v2052_v41  ;;  %v2447_v41 = vmul.f32 %v2383_v3, %v2383_v3  ;;  %v2385_v26 = vsub.f32 %v5278_v8, %v2980_v37  ;;  %v2983_v8 = vld [vmem:[%s5432_s0 + $0x1f8] sm:$0xff] }
 0x520   :  { %v2054_v29 = vpop.f32.mrf.mxu1  ;;  %v2388_v33 = vsub.f32 %v5327_v60, %v2983_v8 }
 0x521   :  { %2309 = vst [vmem:[%s5435_s4 + $0x180] sm:$0xff] %v2222_v55  ;;  %v2373_v39 = vsub.f32 %v2222_v55, %v2968_v21  ;;  %v2386_v55 = vsub.f32 %v5301_v53, %v2981_v4  ;;  %v2449_v0 = vmul.f32 %v2385_v26, %v2385_v26 }
 0x522   :  { %v2452_v53 = vmul.f32 %v2388_v33, %v2388_v33 }
 0x523   :  { %v2437_v49 = vmul.f32 %v2373_v39, %v2373_v39  ;;  %v2450_v39 = vmul.f32 %v2386_v55, %v2386_v55 }
 0x525   :  { %v2500_v48 = vadd.f32 %v2499_v57, %v2437_v49 }
 0x526   :  { %v2223_v13 = vpop.f32.mrf.mxu2 }
 0x527   :  { %v2224_v62 = vadd.f32 %v2223_v13, %v2054_v29  ;;  %v2451_v13 = vmul.f32 %v2387_v25, %v2387_v25 }
 0x529   :  { %2310 = vst [vmem:[%s5435_s4 + $0x188] sm:$0xff] %v2224_v62  ;;  %v2374_v22 = vsub.f32 %v2224_v62, %v2970_v31 }
 0x52b   :  { %v2438_v2 = vmul.f32 %v2374_v22, %v2374_v22 }
 0x52d   :  { %v2501_v6 = vadd.f32 %v2500_v48, %v2438_v2 }
 0x52f   :  { %v2502_v9 = vadd.f32 %v2501_v6, %v2439_v20 }
 0x531   :  { %v2503_v51 = vadd.f32 %v2502_v9, %v2440_v52 }
 0x533   :  { %v2504_v18 = vadd.f32 %v2503_v51, %v2441_v15 }
 0x535   :  { %v2505_v61 = vadd.f32 %v2504_v18, %v2442_v58 }
 0x537   :  { %v2506_v34 = vadd.f32 %v2505_v61, %v2443_v50 }
 0x539   :  { %v2507_v14 = vadd.f32 %v2506_v34, %v2444_v54 }
 0x53b   :  { %v2508_v44 = vadd.f32 %v2507_v14, %v2445_v27 }
 0x53d   :  { %v2509_v43 = vadd.f32 %v2508_v44, %v2446_v23 }
 0x53f   :  { %v2510_v35 = vadd.f32 %v2509_v43, %v2447_v41 }
 0x541   :  { %v2511_v21 = vadd.f32 %v2510_v35, %v2448_v40 }
 0x543   :  { %v2512_v29 = vadd.f32 %v2511_v21, %v2449_v0 }
 0x545   :  { %v2513_v63 = vadd.f32 %v2512_v29, %v2450_v39 }
 0x547   :  { %v2514_v49 = vadd.f32 %v2513_v63, %v2451_v13 }
 0x549   :  { %v2515_v62 = vadd.f32 %v2514_v49, %v2452_v53 }
 0x54b   :  { %2516 = vadd.xlane.f32.xlu0 %v2515_v62 }
 0x5be   :  { %v2517_v59 = vpop.xlane.xlu0 %2516 }
 0x5bf   :  { %v2518_v19 = vrot.slane %v2517_v59, 4 }
 0x5c1   :  { %v2519_v57 = vadd.f32 %v2518_v19, %v2517_v59 }
 0x5c3   :  { %v2520_v31 = vrot.slane %v2519_v57, 2 }
 0x5c5   :  { %v2521_v5 = vadd.f32 %v2520_v31, %v2519_v57 }
 0x5c7   :  { %v2522_v22 = vrot.slane %v2521_v5, 1 }
 0x5c9   :  { %v2523_v12 = vadd.f32 %v2522_v22, %v2521_v5 }
 0x5cb   :  { %2905 = vpush %v2523_v12 }
 0x5fc   :  { %s2906_s3 = spop %2905 }
 0x5fd   :  { %v2525_v28 = vstv %s2906_s3 }
 0x5fe   :  { %2526 = vst [vmem:[%s5437_s6] sm:$0x1] %v2525_v28 }

</bundles_post_ra>
